<compile_context>
chip_gen: v7x
topology: tpu7x:2x2x1
jax: 0.10.0
libtpu: 0.0.40
codegen_flags: <defaults>
</compile_context>

<pallas_src>
import functools

import numpy as np
import jax
import jax.numpy as jnp
from jax import lax
from jax.experimental import pallas as pl
from jax.experimental.pallas import tpu as pltpu


# ----------------------------------------------------------------------------
# Fused kernel: embedding-projected input -> n_layers bidirectional GRU.
# Inputs : x [T*Bp, E], lens [Bp, 1], then per layer (wih, whh, bih, bhh).
# Outputs: outputs_flat [T*Bp, H] (fwd+bwd of last layer),
#          hidden [2*n_layers, Bp, H] (layer-major, fwd then bwd).
# Scratch: two [2, T*Bp, H] ping-pong buffers for per-layer activations.
# ----------------------------------------------------------------------------
def _encoder_kernel(x_ref, lens_ref, *refs, T, Bp, H, n_layers, compute_dtype):
    w_refs = refs[:4 * n_layers]
    out_ref = refs[4 * n_layers]
    hid_ref = refs[4 * n_layers + 1]
    ybufs = refs[4 * n_layers + 2: 4 * n_layers + 4]

    # ---- layer-invariant tables (hoisted once) -----------------------------
    lens_v = lens_ref[...]                                        # [Bp, 1] int32
    # Step i updates fwd at t=i and bwd at t=T-1-i; 0/1 masks pre-broadcast to
    # the full [2, Bp, H] tile so the loop body has no per-step broadcasts.
    masks = [(lens_v > t).astype(jnp.float32) for t in range(T)]  # [Bp, 1]
    mask_pair = [
        jnp.broadcast_to(jnp.stack([masks[i], masks[T - 1 - i]], axis=0),
                         (2, Bp, H))
        for i in range(T)
    ]

    # Layer-0 input: one slab, already flattened to [T*Bp, E] by the wrapper.
    cur_slabs = [x_ref[...]]

    for l in range(n_layers):
        S = 1 if l == 0 else 2
        wih_v = w_refs[4 * l][...]                                # [2,S,Hin,3H]
        whh_v = w_refs[4 * l + 1][...]                            # [2,H,3H]
        bih_v = w_refs[4 * l + 2][...]                            # [2,1,3H]
        bhh_v = w_refs[4 * l + 3][...]                            # [2,1,3H]

        # Fold b_hh's r|z thirds into the hoisted bias; the n third must stay
        # inside r * (h @ W_hh_n + b_hh_n).
        gi_bias = jnp.concatenate(
            [bih_v[:, 0, :2 * H] + bhh_v[:, 0, :2 * H], bih_v[:, 0, 2 * H:]],
            axis=-1)                                              # [2, 3H]
        bhh_n = jnp.broadcast_to(bhh_v[:, 0:1, 2 * H:], (2, Bp, H))

        # ---- hoisted input projection (off the recurrent critical path) ----
        # One [T*Bp, Hin] @ [Hin, 3H] matmul per (direction, slab); summing the
        # two slabs == projecting the concat of fwd/bwd features.
        gi_dirs = []
        for d in range(2):
            acc = None
            for s in range(S):
                prod = jnp.dot(cur_slabs[s].astype(compute_dtype),
                               wih_v[d, s].astype(compute_dtype),
                               preferred_element_type=jnp.float32)
                acc = prod if acc is None else acc + prod
            gi_dirs.append(acc + gi_bias[d])                      # [T*Bp, 3H]

        # Pair per-step gi tiles (static slices, hoisted).
        gi_pair = [
            jnp.stack([gi_dirs[0][i * Bp:(i + 1) * Bp],
                       gi_dirs[1][(T - 1 - i) * Bp:(T - i) * Bp]], axis=0)
            for i in range(T)
        ]                                                         # [2, Bp, 3H]

        ybuf = ybufs[l % 2]

        # ---- serial recurrence: both directions in one loop ----------------
        h = jnp.zeros((2, Bp, H), jnp.float32)
        for i in range(T):
            tf, tb = i, T - 1 - i
            # Single batched recurrence matmul: [2,Bp,H] @ [2,H,3H] (f32).
            gh = lax.dot_general(h, whh_v, (((2,), (1,)), ((0,), (0,))),
                                 preferred_element_type=jnp.float32)
            gi = gi_pair[i]
            rz = jax.nn.sigmoid(gi[:, :, :2 * H] + gh[:, :, :2 * H])
            r = rz[:, :, :H]
            z = rz[:, :, H:]
            n = jnp.tanh(gi[:, :, 2 * H:] + r * (gh[:, :, 2 * H:] + bhh_n))
            h_new = n + z * (h - n)            # == (1-z)*n + z*h
            m = mask_pair[i]
            h = h + m * (h_new - h)            # freeze h past the seq length
            y = m * h                          # pad_packed: zeros past length
            ybuf[0, pl.ds(tf * Bp, Bp)] = y[0]
            ybuf[1, pl.ds(tb * Bp, Bp)] = y[1]

        hid_ref[2 * l] = h[0]
        hid_ref[2 * l + 1] = h[1]

        if l + 1 < n_layers:
            # Next layer consumes the two direction slabs directly (no concat).
            cur_slabs = [ybuf[0], ybuf[1]]
        else:
            out_ref[...] = ybuf[0] + ybuf[1]   # fwd + bwd of the last layer


def make_encoder_call(T, Bp, E, H, n_layers, compute_dtype):
    kernel = functools.partial(_encoder_kernel, T=T, Bp=Bp, H=H,
                               n_layers=n_layers, compute_dtype=compute_dtype)
    n_in = 2 + 4 * n_layers
    vmem_spec = pl.BlockSpec(memory_space=pltpu.MemorySpace.VMEM)
    return pl.pallas_call(
        kernel,
        out_shape=(
            jax.ShapeDtypeStruct((T * Bp, H), jnp.float32),          # outputs
            jax.ShapeDtypeStruct((2 * n_layers, Bp, H), jnp.float32),  # hidden
        ),
        in_specs=[vmem_spec] * n_in,
        out_specs=(vmem_spec, vmem_spec),
        scratch_shapes=[
            pltpu.VMEM((2, T * Bp, H), jnp.float32),   # layer activations (ping)
            pltpu.VMEM((2, T * Bp, H), jnp.float32),   # layer activations (pong)
        ],
    )


# ----------------------------------------------------------------------------
# Parameter construction (deterministic, synthetic), fused-gate layout.
#   wih : [2, S, Hin, 3H]  (direction, input-slab, in, r|z|n)
#   whh : [2, H, 3H]       bih/bhh : [2, 1, 3H]
# ----------------------------------------------------------------------------
def init_params(key, vocab, E, H, n_layers):
    params = {}
    k_emb, key = jax.random.split(key)
    params["embedding"] = jax.random.normal(k_emb, (vocab, E), jnp.float32) * 0.1
    scale = 1.0 / np.sqrt(H)
    for l in range(n_layers):
        S, Hin = (1, E) if l == 0 else (2, H)
        key, k1, k2, k3, k4 = jax.random.split(key, 5)
        params[f"layer{l}"] = dict(
            wih=jax.random.uniform(k1, (2, S, Hin, 3 * H), jnp.float32, -scale, scale),
            whh=jax.random.uniform(k2, (2, H, 3 * H), jnp.float32, -scale, scale),
            bih=jax.random.uniform(k3, (2, 1, 3 * H), jnp.float32, -scale, scale),
            bhh=jax.random.uniform(k4, (2, 1, 3 * H), jnp.float32, -scale, scale),
        )
    return params


# ----------------------------------------------------------------------------
# Forward pass: embedding gather + padding in JAX, the rest in ONE Pallas call.
# ----------------------------------------------------------------------------
def simple_dynamic_encoder_forward(params, input_seqs, input_lens_np, E, H,
                                   n_layers, compute_dtype=jnp.float32):
    T, B = input_seqs.shape
    Bp = ((B + 7) // 8) * 8                                  # pad batch to sublanes

    embedded = jnp.take(params["embedding"], input_seqs, axis=0)   # [T, B, E]

    lens = jnp.zeros((Bp, 1), jnp.int32)
    lens = lens.at[:B, 0].set(jnp.asarray(np.asarray(input_lens_np), jnp.int32))

    x = jnp.zeros((T, Bp, E), jnp.float32).at[:, :B, :].set(embedded)
    x = x.reshape(T * Bp, E)                                 # flattened in wrapper

    args = [x, lens]
    for l in range(n_layers):
        p = params[f"layer{l}"]
        args.extend([p["wih"], p["whh"], p["bih"], p["bhh"]])

    call = make_encoder_call(T, Bp, E, H, n_layers, compute_dtype)
    out_flat, hidden_p = call(*args)

    outputs = out_flat.reshape(T, Bp, H)[:, :B, :]           # original batch order
    hidden = hidden_p[:, :B, :]                              # [2*n_layers, B, H]

    # Module returns `embedded` length-sorted while outputs/hidden stay in the
    # original batch order (faithful to the PyTorch code).
    sort_idx = np.argsort(-np.asarray(input_lens_np))
    embedded_sorted = embedded[:, jnp.asarray(sort_idx), :]
    return outputs, hidden, embedded_sorted


# ----------------------------------------------------------------------------
# Pure-numpy reference (packed bidirectional GRU semantics).
# ----------------------------------------------------------------------------
def _sigmoid(x):
    return 1.0 / (1.0 + np.exp(-x))


def _ref_bi_gru_layer(x_slabs, lens, p):
    wih = np.asarray(p["wih"], np.float32)
    whh = np.asarray(p["whh"], np.float32)
    bih = np.asarray(p["bih"], np.float32)
    bhh = np.asarray(p["bhh"], np.float32)
    S, T, B, _ = x_slabs.shape
    H = whh.shape[1]
    y = np.zeros((2, T, B, H), np.float32)
    hf = np.zeros((2, B, H), np.float32)
    for d in range(2):
        h = np.zeros((B, H), np.float32)
        order = range(T) if d == 0 else range(T - 1, -1, -1)
        for t in order:
            gi = sum(x_slabs[s, t] @ wih[d, s] for s in range(S)) + bih[d, 0]
            gh = h @ whh[d] + bhh[d, 0]
            r = _sigmoid(gi[:, :H] + gh[:, :H])
            z = _sigmoid(gi[:, H:2 * H] + gh[:, H:2 * H])
            n = np.tanh(gi[:, 2 * H:] + r * gh[:, 2 * H:])
            h_new = (1.0 - z) * n + z * h
            mask = (t < lens)[:, None]
            h = np.where(mask, h_new, h)
            y[d, t] = np.where(mask, h, 0.0)
        hf[d] = h
    return y, hf


def ref_forward(params, seqs_np, lens_np, E, H, n_layers):
    emb = np.asarray(params["embedding"])[seqs_np].astype(np.float32)   # [T,B,E]
    x = emb[None]                                                       # [1,T,B,E]
    hiddens = []
    y = None
    for l in range(n_layers):
        y, h = _ref_bi_gru_layer(x, lens_np, params[f"layer{l}"])
        hiddens.append(h)
        x = y
    outputs = y[0] + y[1]
    hidden = np.concatenate(hiddens, 0)
    sort_idx = np.argsort(-lens_np)
    return outputs, hidden, emb[:, sort_idx, :]


# ----------------------------------------------------------------------------
if __name__ == "__main__":
    VOCAB, E, H, N_LAYERS = 50, 16, 32, 2
    T, B = 8, 4

    key = jax.random.PRNGKey(0)
    params = init_params(key, VOCAB, E, H, N_LAYERS)

    k_seq, _ = jax.random.split(jax.random.PRNGKey(0))
    input_seqs = jax.random.randint(k_seq, (T, B), 0, VOCAB, dtype=jnp.int32)
    input_lens = np.array([8, 5, 3, 6], dtype=np.int64)   # numpy, like the module

    # f32 path (matches the PyTorch module numerics).
    outputs, hidden, embedded = simple_dynamic_encoder_forward(
        params, input_seqs, input_lens, E, H, N_LAYERS,
        compute_dtype=jnp.float32)
    jax.block_until_ready((outputs, hidden, embedded))

    assert outputs.shape == (T, B, H)
    assert hidden.shape == (2 * N_LAYERS, B, H)
    assert embedded.shape == (T, B, E)

    r_out, r_hid, r_emb = ref_forward(
        params, np.asarray(input_seqs), input_lens, E, H, N_LAYERS)
    np.testing.assert_allclose(np.asarray(outputs), r_out, rtol=1e-4, atol=1e-4)
    np.testing.assert_allclose(np.asarray(hidden), r_hid, rtol=1e-4, atol=1e-4)
    np.testing.assert_allclose(np.asarray(embedded), r_emb, rtol=1e-5, atol=1e-5)

    # bf16 path: only the hoisted input-projection matmul uses bf16 operands;
    # the recurrence, hidden state and gate math stay f32.
    out_bf, hid_bf, _ = simple_dynamic_encoder_forward(
        params, input_seqs, input_lens, E, H, N_LAYERS,
        compute_dtype=jnp.bfloat16)
    jax.block_until_ready((out_bf, hid_bf))
    np.testing.assert_allclose(np.asarray(out_bf), r_out, rtol=5e-2, atol=5e-2)
    np.testing.assert_allclose(np.asarray(hid_bf), r_hid, rtol=5e-2, atol=5e-2)

    print("KERNEL_OK")
</pallas_src>

<mosaic_0001>
module attributes {stable_mosaic.version = 11 : i64} {
  func.func @_encoder_kernel(%arg0: memref<64x16xf32, #tpu.memory_space<vmem>>, %arg1: memref<8x1xi32, #tpu.memory_space<vmem>>, %arg2: memref<2x1x16x96xf32, #tpu.memory_space<vmem>>, %arg3: memref<2x32x96xf32, #tpu.memory_space<vmem>>, %arg4: memref<2x1x96xf32, #tpu.memory_space<vmem>>, %arg5: memref<2x1x96xf32, #tpu.memory_space<vmem>>, %arg6: memref<2x2x32x96xf32, #tpu.memory_space<vmem>>, %arg7: memref<2x32x96xf32, #tpu.memory_space<vmem>>, %arg8: memref<2x1x96xf32, #tpu.memory_space<vmem>>, %arg9: memref<2x1x96xf32, #tpu.memory_space<vmem>>, %arg10: memref<64x32xf32, #tpu.memory_space<vmem>>, %arg11: memref<4x8x32xf32, #tpu.memory_space<vmem>>, %arg12: memref<2x64x32xf32, #tpu.memory_space<vmem>>, %arg13: memref<2x64x32xf32, #tpu.memory_space<vmem>>) attributes {dimension_semantics = [], scalar_prefetch = 0 : i64, scratch_operands = 2 : i64, tpu.core_type = #tpu.core_type<tc>} {
    %c0 = arith.constant 0 : index
    %c0_0 = arith.constant 0 : index
    %0 = vector.load %arg1[%c0, %c0_0] : memref<8x1xi32, #tpu.memory_space<vmem>>, vector<8x1xi32>
    %c0_i32 = arith.constant 0 : i32
    %1 = vector.broadcast %c0_i32 : i32 to vector<8x1xi32>
    %2 = arith.cmpi sgt, %0, %1 : vector<8x1xi32>
    %3 = arith.extui %2 : vector<8x1xi1> to vector<8x1xi32>
    %4 = arith.sitofp %3 : vector<8x1xi32> to vector<8x1xf32>
    %c1_i32 = arith.constant 1 : i32
    %5 = vector.broadcast %c1_i32 : i32 to vector<8x1xi32>
    %6 = arith.cmpi sgt, %0, %5 : vector<8x1xi32>
    %7 = arith.extui %6 : vector<8x1xi1> to vector<8x1xi32>
    %8 = arith.sitofp %7 : vector<8x1xi32> to vector<8x1xf32>
    %c2_i32 = arith.constant 2 : i32
    %9 = vector.broadcast %c2_i32 : i32 to vector<8x1xi32>
    %10 = arith.cmpi sgt, %0, %9 : vector<8x1xi32>
    %11 = arith.extui %10 : vector<8x1xi1> to vector<8x1xi32>
    %12 = arith.sitofp %11 : vector<8x1xi32> to vector<8x1xf32>
    %c3_i32 = arith.constant 3 : i32
    %13 = vector.broadcast %c3_i32 : i32 to vector<8x1xi32>
    %14 = arith.cmpi sgt, %0, %13 : vector<8x1xi32>
    %15 = arith.extui %14 : vector<8x1xi1> to vector<8x1xi32>
    %16 = arith.sitofp %15 : vector<8x1xi32> to vector<8x1xf32>
    %c4_i32 = arith.constant 4 : i32
    %17 = vector.broadcast %c4_i32 : i32 to vector<8x1xi32>
    %18 = arith.cmpi sgt, %0, %17 : vector<8x1xi32>
    %19 = arith.extui %18 : vector<8x1xi1> to vector<8x1xi32>
    %20 = arith.sitofp %19 : vector<8x1xi32> to vector<8x1xf32>
    %c5_i32 = arith.constant 5 : i32
    %21 = vector.broadcast %c5_i32 : i32 to vector<8x1xi32>
    %22 = arith.cmpi sgt, %0, %21 : vector<8x1xi32>
    %23 = arith.extui %22 : vector<8x1xi1> to vector<8x1xi32>
    %24 = arith.sitofp %23 : vector<8x1xi32> to vector<8x1xf32>
    %c6_i32 = arith.constant 6 : i32
    %25 = vector.broadcast %c6_i32 : i32 to vector<8x1xi32>
    %26 = arith.cmpi sgt, %0, %25 : vector<8x1xi32>
    %27 = arith.extui %26 : vector<8x1xi1> to vector<8x1xi32>
    %28 = arith.sitofp %27 : vector<8x1xi32> to vector<8x1xf32>
    %c7_i32 = arith.constant 7 : i32
    %29 = vector.broadcast %c7_i32 : i32 to vector<8x1xi32>
    %30 = arith.cmpi sgt, %0, %29 : vector<8x1xi32>
    %31 = arith.extui %30 : vector<8x1xi1> to vector<8x1xi32>
    %32 = arith.sitofp %31 : vector<8x1xi32> to vector<8x1xf32>
    %33 = vector.shape_cast %4 : vector<8x1xf32> to vector<1x8x1xf32>
    %34 = vector.shape_cast %32 : vector<8x1xf32> to vector<1x8x1xf32>
    %35 = tpu.concatenate %33, %34 in 0 : vector<1x8x1xf32>, vector<1x8x1xf32> -> vector<2x8x1xf32>
    %36 = vector.shape_cast %35 : vector<2x8x1xf32> to vector<2x8x1xf32>
    %37 = vector.broadcast %36 : vector<2x8x1xf32> to vector<2x8x32xf32>
    %38 = vector.shape_cast %8 : vector<8x1xf32> to vector<1x8x1xf32>
    %39 = vector.shape_cast %28 : vector<8x1xf32> to vector<1x8x1xf32>
    %40 = tpu.concatenate %38, %39 in 0 : vector<1x8x1xf32>, vector<1x8x1xf32> -> vector<2x8x1xf32>
    %41 = vector.shape_cast %40 : vector<2x8x1xf32> to vector<2x8x1xf32>
    %42 = vector.broadcast %41 : vector<2x8x1xf32> to vector<2x8x32xf32>
    %43 = vector.shape_cast %12 : vector<8x1xf32> to vector<1x8x1xf32>
    %44 = vector.shape_cast %24 : vector<8x1xf32> to vector<1x8x1xf32>
    %45 = tpu.concatenate %43, %44 in 0 : vector<1x8x1xf32>, vector<1x8x1xf32> -> vector<2x8x1xf32>
    %46 = vector.shape_cast %45 : vector<2x8x1xf32> to vector<2x8x1xf32>
    %47 = vector.broadcast %46 : vector<2x8x1xf32> to vector<2x8x32xf32>
    %48 = vector.shape_cast %16 : vector<8x1xf32> to vector<1x8x1xf32>
    %49 = vector.shape_cast %20 : vector<8x1xf32> to vector<1x8x1xf32>
    %50 = tpu.concatenate %48, %49 in 0 : vector<1x8x1xf32>, vector<1x8x1xf32> -> vector<2x8x1xf32>
    %51 = vector.shape_cast %50 : vector<2x8x1xf32> to vector<2x8x1xf32>
    %52 = vector.broadcast %51 : vector<2x8x1xf32> to vector<2x8x32xf32>
    %53 = vector.shape_cast %20 : vector<8x1xf32> to vector<1x8x1xf32>
    %54 = vector.shape_cast %16 : vector<8x1xf32> to vector<1x8x1xf32>
    %55 = tpu.concatenate %53, %54 in 0 : vector<1x8x1xf32>, vector<1x8x1xf32> -> vector<2x8x1xf32>
    %56 = vector.shape_cast %55 : vector<2x8x1xf32> to vector<2x8x1xf32>
    %57 = vector.broadcast %56 : vector<2x8x1xf32> to vector<2x8x32xf32>
    %58 = vector.shape_cast %24 : vector<8x1xf32> to vector<1x8x1xf32>
    %59 = vector.shape_cast %12 : vector<8x1xf32> to vector<1x8x1xf32>
    %60 = tpu.concatenate %58, %59 in 0 : vector<1x8x1xf32>, vector<1x8x1xf32> -> vector<2x8x1xf32>
    %61 = vector.shape_cast %60 : vector<2x8x1xf32> to vector<2x8x1xf32>
    %62 = vector.broadcast %61 : vector<2x8x1xf32> to vector<2x8x32xf32>
    %63 = vector.shape_cast %28 : vector<8x1xf32> to vector<1x8x1xf32>
    %64 = vector.shape_cast %8 : vector<8x1xf32> to vector<1x8x1xf32>
    %65 = tpu.concatenate %63, %64 in 0 : vector<1x8x1xf32>, vector<1x8x1xf32> -> vector<2x8x1xf32>
    %66 = vector.shape_cast %65 : vector<2x8x1xf32> to vector<2x8x1xf32>
    %67 = vector.broadcast %66 : vector<2x8x1xf32> to vector<2x8x32xf32>
    %68 = vector.shape_cast %32 : vector<8x1xf32> to vector<1x8x1xf32>
    %69 = vector.shape_cast %4 : vector<8x1xf32> to vector<1x8x1xf32>
    %70 = tpu.concatenate %68, %69 in 0 : vector<1x8x1xf32>, vector<1x8x1xf32> -> vector<2x8x1xf32>
    %71 = vector.shape_cast %70 : vector<2x8x1xf32> to vector<2x8x1xf32>
    %72 = vector.broadcast %71 : vector<2x8x1xf32> to vector<2x8x32xf32>
    %c0_1 = arith.constant 0 : index
    %c0_2 = arith.constant 0 : index
    %73 = vector.load %arg0[%c0_1, %c0_2] : memref<64x16xf32, #tpu.memory_space<vmem>>, vector<64x16xf32>
    %c0_3 = arith.constant 0 : index
    %c0_4 = arith.constant 0 : index
    %c0_5 = arith.constant 0 : index
    %c0_6 = arith.constant 0 : index
    %74 = vector.load %arg2[%c0_3, %c0_4, %c0_5, %c0_6] : memref<2x1x16x96xf32, #tpu.memory_space<vmem>>, vector<2x1x16x96xf32>
    %c0_7 = arith.constant 0 : index
    %c0_8 = arith.constant 0 : index
    %c0_9 = arith.constant 0 : index
    %75 = vector.load %arg3[%c0_7, %c0_8, %c0_9] : memref<2x32x96xf32, #tpu.memory_space<vmem>>, vector<2x32x96xf32>
    %c0_10 = arith.constant 0 : index
    %c0_11 = arith.constant 0 : index
    %c0_12 = arith.constant 0 : index
    %76 = vector.load %arg4[%c0_10, %c0_11, %c0_12] : memref<2x1x96xf32, #tpu.memory_space<vmem>>, vector<2x1x96xf32>
    %c0_13 = arith.constant 0 : index
    %c0_14 = arith.constant 0 : index
    %c0_15 = arith.constant 0 : index
    %77 = vector.load %arg5[%c0_13, %c0_14, %c0_15] : memref<2x1x96xf32, #tpu.memory_space<vmem>>, vector<2x1x96xf32>
    %78 = vector.extract_strided_slice %76 {offsets = [0, 0, 0], sizes = [2, 1, 64], strides = [1, 1, 1]} : vector<2x1x96xf32> to vector<2x1x64xf32>
    %79 = vector.shape_cast %78 : vector<2x1x64xf32> to vector<2x64xf32>
    %80 = vector.extract_strided_slice %77 {offsets = [0, 0, 0], sizes = [2, 1, 64], strides = [1, 1, 1]} : vector<2x1x96xf32> to vector<2x1x64xf32>
    %81 = vector.shape_cast %80 : vector<2x1x64xf32> to vector<2x64xf32>
    %82 = arith.addf %79, %81 : vector<2x64xf32>
    %83 = vector.extract_strided_slice %76 {offsets = [0, 0, 64], sizes = [2, 1, 32], strides = [1, 1, 1]} : vector<2x1x96xf32> to vector<2x1x32xf32>
    %84 = vector.shape_cast %83 : vector<2x1x32xf32> to vector<2x32xf32>
    %85 = tpu.concatenate %82, %84 in 1 : vector<2x64xf32>, vector<2x32xf32> -> vector<2x96xf32>
    %86 = vector.extract_strided_slice %77 {offsets = [0, 0, 64], sizes = [2, 1, 32], strides = [1, 1, 1]} : vector<2x1x96xf32> to vector<2x1x32xf32>
    %87 = vector.shape_cast %86 : vector<2x1x32xf32> to vector<2x1x32xf32>
    %88 = vector.broadcast %87 : vector<2x1x32xf32> to vector<2x8x32xf32>
    %89 = vector.extract_strided_slice %74 {offsets = [0, 0, 0, 0], sizes = [1, 1, 16, 96], strides = [1, 1, 1, 1]} : vector<2x1x16x96xf32> to vector<1x1x16x96xf32>
    %90 = vector.shape_cast %89 : vector<1x1x16x96xf32> to vector<16x96xf32>
    %cst = arith.constant dense<0.000000e+00> : vector<64x96xf32>
    %91 = tpu.matmul %73, %90, %cst {dimension_numbers = #tpu.dot_dimension_numbers<[1], [0], [0], [1], [0, 0, 1, 1], [], []>} : vector<64x16xf32>, vector<16x96xf32>, vector<64x96xf32> -> vector<64x96xf32>
    %92 = vector.extract_strided_slice %85 {offsets = [0, 0], sizes = [1, 96], strides = [1, 1]} : vector<2x96xf32> to vector<1x96xf32>
    %93 = vector.shape_cast %92 : vector<1x96xf32> to vector<96xf32>
    %94 = vector.shape_cast %93 : vector<96xf32> to vector<1x96xf32>
    %95 = vector.broadcast %94 : vector<1x96xf32> to vector<64x96xf32>
    %96 = arith.addf %91, %95 : vector<64x96xf32>
    %97 = vector.extract_strided_slice %74 {offsets = [1, 0, 0, 0], sizes = [1, 1, 16, 96], strides = [1, 1, 1, 1]} : vector<2x1x16x96xf32> to vector<1x1x16x96xf32>
    %98 = vector.shape_cast %97 : vector<1x1x16x96xf32> to vector<16x96xf32>
    %cst_16 = arith.constant dense<0.000000e+00> : vector<64x96xf32>
    %99 = tpu.matmul %73, %98, %cst_16 {dimension_numbers = #tpu.dot_dimension_numbers<[1], [0], [0], [1], [0, 0, 1, 1], [], []>} : vector<64x16xf32>, vector<16x96xf32>, vector<64x96xf32> -> vector<64x96xf32>
    %100 = vector.extract_strided_slice %85 {offsets = [1, 0], sizes = [1, 96], strides = [1, 1]} : vector<2x96xf32> to vector<1x96xf32>
    %101 = vector.shape_cast %100 : vector<1x96xf32> to vector<96xf32>
    %102 = vector.shape_cast %101 : vector<96xf32> to vector<1x96xf32>
    %103 = vector.broadcast %102 : vector<1x96xf32> to vector<64x96xf32>
    %104 = arith.addf %99, %103 : vector<64x96xf32>
    %105 = vector.extract_strided_slice %96 {offsets = [0, 0], sizes = [8, 96], strides = [1, 1]} : vector<64x96xf32> to vector<8x96xf32>
    %106 = vector.extract_strided_slice %104 {offsets = [56, 0], sizes = [8, 96], strides = [1, 1]} : vector<64x96xf32> to vector<8x96xf32>
    %107 = vector.shape_cast %105 : vector<8x96xf32> to vector<1x8x96xf32>
    %108 = vector.shape_cast %106 : vector<8x96xf32> to vector<1x8x96xf32>
    %109 = tpu.concatenate %107, %108 in 0 : vector<1x8x96xf32>, vector<1x8x96xf32> -> vector<2x8x96xf32>
    %110 = vector.extract_strided_slice %96 {offsets = [8, 0], sizes = [8, 96], strides = [1, 1]} : vector<64x96xf32> to vector<8x96xf32>
    %111 = vector.extract_strided_slice %104 {offsets = [48, 0], sizes = [8, 96], strides = [1, 1]} : vector<64x96xf32> to vector<8x96xf32>
    %112 = vector.shape_cast %110 : vector<8x96xf32> to vector<1x8x96xf32>
    %113 = vector.shape_cast %111 : vector<8x96xf32> to vector<1x8x96xf32>
    %114 = tpu.concatenate %112, %113 in 0 : vector<1x8x96xf32>, vector<1x8x96xf32> -> vector<2x8x96xf32>
    %115 = vector.extract_strided_slice %96 {offsets = [16, 0], sizes = [8, 96], strides = [1, 1]} : vector<64x96xf32> to vector<8x96xf32>
    %116 = vector.extract_strided_slice %104 {offsets = [40, 0], sizes = [8, 96], strides = [1, 1]} : vector<64x96xf32> to vector<8x96xf32>
    %117 = vector.shape_cast %115 : vector<8x96xf32> to vector<1x8x96xf32>
    %118 = vector.shape_cast %116 : vector<8x96xf32> to vector<1x8x96xf32>
    %119 = tpu.concatenate %117, %118 in 0 : vector<1x8x96xf32>, vector<1x8x96xf32> -> vector<2x8x96xf32>
    %120 = vector.extract_strided_slice %96 {offsets = [24, 0], sizes = [8, 96], strides = [1, 1]} : vector<64x96xf32> to vector<8x96xf32>
    %121 = vector.extract_strided_slice %104 {offsets = [32, 0], sizes = [8, 96], strides = [1, 1]} : vector<64x96xf32> to vector<8x96xf32>
    %122 = vector.shape_cast %120 : vector<8x96xf32> to vector<1x8x96xf32>
    %123 = vector.shape_cast %121 : vector<8x96xf32> to vector<1x8x96xf32>
    %124 = tpu.concatenate %122, %123 in 0 : vector<1x8x96xf32>, vector<1x8x96xf32> -> vector<2x8x96xf32>
    %125 = vector.extract_strided_slice %96 {offsets = [32, 0], sizes = [8, 96], strides = [1, 1]} : vector<64x96xf32> to vector<8x96xf32>
    %126 = vector.extract_strided_slice %104 {offsets = [24, 0], sizes = [8, 96], strides = [1, 1]} : vector<64x96xf32> to vector<8x96xf32>
    %127 = vector.shape_cast %125 : vector<8x96xf32> to vector<1x8x96xf32>
    %128 = vector.shape_cast %126 : vector<8x96xf32> to vector<1x8x96xf32>
    %129 = tpu.concatenate %127, %128 in 0 : vector<1x8x96xf32>, vector<1x8x96xf32> -> vector<2x8x96xf32>
    %130 = vector.extract_strided_slice %96 {offsets = [40, 0], sizes = [8, 96], strides = [1, 1]} : vector<64x96xf32> to vector<8x96xf32>
    %131 = vector.extract_strided_slice %104 {offsets = [16, 0], sizes = [8, 96], strides = [1, 1]} : vector<64x96xf32> to vector<8x96xf32>
    %132 = vector.shape_cast %130 : vector<8x96xf32> to vector<1x8x96xf32>
    %133 = vector.shape_cast %131 : vector<8x96xf32> to vector<1x8x96xf32>
    %134 = tpu.concatenate %132, %133 in 0 : vector<1x8x96xf32>, vector<1x8x96xf32> -> vector<2x8x96xf32>
    %135 = vector.extract_strided_slice %96 {offsets = [48, 0], sizes = [8, 96], strides = [1, 1]} : vector<64x96xf32> to vector<8x96xf32>
    %136 = vector.extract_strided_slice %104 {offsets = [8, 0], sizes = [8, 96], strides = [1, 1]} : vector<64x96xf32> to vector<8x96xf32>
    %137 = vector.shape_cast %135 : vector<8x96xf32> to vector<1x8x96xf32>
    %138 = vector.shape_cast %136 : vector<8x96xf32> to vector<1x8x96xf32>
    %139 = tpu.concatenate %137, %138 in 0 : vector<1x8x96xf32>, vector<1x8x96xf32> -> vector<2x8x96xf32>
    %140 = vector.extract_strided_slice %96 {offsets = [56, 0], sizes = [8, 96], strides = [1, 1]} : vector<64x96xf32> to vector<8x96xf32>
    %141 = vector.extract_strided_slice %104 {offsets = [0, 0], sizes = [8, 96], strides = [1, 1]} : vector<64x96xf32> to vector<8x96xf32>
    %142 = vector.shape_cast %140 : vector<8x96xf32> to vector<1x8x96xf32>
    %143 = vector.shape_cast %141 : vector<8x96xf32> to vector<1x8x96xf32>
    %144 = tpu.concatenate %142, %143 in 0 : vector<1x8x96xf32>, vector<1x8x96xf32> -> vector<2x8x96xf32>
    %cst_17 = arith.constant 0.000000e+00 : f32
    %145 = vector.broadcast %cst_17 : f32 to vector<2x8x32xf32>
    %cst_18 = arith.constant dense<0.000000e+00> : vector<2x8x96xf32>
    %146 = tpu.matmul %145, %75, %cst_18 {dimension_numbers = #tpu.dot_dimension_numbers<[2], [1], [1], [2], [0, 0, 0, 1, 1, 2], [0], [0]>} : vector<2x8x32xf32>, vector<2x32x96xf32>, vector<2x8x96xf32> -> vector<2x8x96xf32>
    %147 = vector.extract_strided_slice %109 {offsets = [0, 0, 0], sizes = [2, 8, 64], strides = [1, 1, 1]} : vector<2x8x96xf32> to vector<2x8x64xf32>
    %148 = vector.extract_strided_slice %146 {offsets = [0, 0, 0], sizes = [2, 8, 64], strides = [1, 1, 1]} : vector<2x8x96xf32> to vector<2x8x64xf32>
    %149 = arith.addf %147, %148 : vector<2x8x64xf32>
    %150 = arith.negf %149 : vector<2x8x64xf32>
    %151 = math.exp %150 : vector<2x8x64xf32>
    %cst_19 = arith.constant 1.000000e+00 : f32
    %152 = vector.broadcast %cst_19 : f32 to vector<2x8x64xf32>
    %153 = arith.addf %152, %151 : vector<2x8x64xf32>
    %154 = arith.divf %152, %153 : vector<2x8x64xf32>
    %155 = vector.extract_strided_slice %154 {offsets = [0, 0, 0], sizes = [2, 8, 32], strides = [1, 1, 1]} : vector<2x8x64xf32> to vector<2x8x32xf32>
    %156 = vector.extract_strided_slice %154 {offsets = [0, 0, 32], sizes = [2, 8, 32], strides = [1, 1, 1]} : vector<2x8x64xf32> to vector<2x8x32xf32>
    %157 = vector.extract_strided_slice %109 {offsets = [0, 0, 64], sizes = [2, 8, 32], strides = [1, 1, 1]} : vector<2x8x96xf32> to vector<2x8x32xf32>
    %158 = vector.extract_strided_slice %146 {offsets = [0, 0, 64], sizes = [2, 8, 32], strides = [1, 1, 1]} : vector<2x8x96xf32> to vector<2x8x32xf32>
    %159 = arith.addf %158, %88 : vector<2x8x32xf32>
    %160 = arith.mulf %155, %159 : vector<2x8x32xf32>
    %161 = arith.addf %157, %160 : vector<2x8x32xf32>
    %162 = math.tanh %161 : vector<2x8x32xf32>
    %163 = arith.subf %145, %162 : vector<2x8x32xf32>
    %164 = arith.mulf %156, %163 : vector<2x8x32xf32>
    %165 = arith.addf %162, %164 : vector<2x8x32xf32>
    %166 = arith.subf %165, %145 : vector<2x8x32xf32>
    %167 = arith.mulf %37, %166 : vector<2x8x32xf32>
    %168 = arith.addf %145, %167 : vector<2x8x32xf32>
    %169 = arith.mulf %37, %168 : vector<2x8x32xf32>
    %170 = vector.extract_strided_slice %169 {offsets = [0, 0, 0], sizes = [1, 8, 32], strides = [1, 1, 1]} : vector<2x8x32xf32> to vector<1x8x32xf32>
    %171 = vector.shape_cast %170 : vector<1x8x32xf32> to vector<8x32xf32>
    %c0_20 = arith.constant 0 : index
    %c0_21 = arith.constant 0 : index
    %c0_22 = arith.constant 0 : index
    %172 = vector.load %arg12[%c0_20, %c0_21, %c0_22] : memref<2x64x32xf32, #tpu.memory_space<vmem>>, vector<1x8x32xf32>
    %173 = vector.shape_cast %172 : vector<1x8x32xf32> to vector<8x32xf32>
    %174 = vector.shape_cast %171 : vector<8x32xf32> to vector<1x8x32xf32>
    tpu.vector_store %arg12[%c0_20, %c0_21, %c0_22], %174 {strides = array<i32>} : memref<2x64x32xf32, #tpu.memory_space<vmem>>, vector<1x8x32xf32>,
    %175 = vector.extract_strided_slice %169 {offsets = [1, 0, 0], sizes = [1, 8, 32], strides = [1, 1, 1]} : vector<2x8x32xf32> to vector<1x8x32xf32>
    %176 = vector.shape_cast %175 : vector<1x8x32xf32> to vector<8x32xf32>
    %c1 = arith.constant 1 : index
    %c56 = arith.constant 56 : index
    %c0_23 = arith.constant 0 : index
    %177 = vector.load %arg12[%c1, %c56, %c0_23] : memref<2x64x32xf32, #tpu.memory_space<vmem>>, vector<1x8x32xf32>
    %178 = vector.shape_cast %177 : vector<1x8x32xf32> to vector<8x32xf32>
    %179 = vector.shape_cast %176 : vector<8x32xf32> to vector<1x8x32xf32>
    tpu.vector_store %arg12[%c1, %c56, %c0_23], %179 {strides = array<i32>} : memref<2x64x32xf32, #tpu.memory_space<vmem>>, vector<1x8x32xf32>,
    %cst_24 = arith.constant dense<0.000000e+00> : vector<2x8x96xf32>
    %180 = tpu.matmul %168, %75, %cst_24 {dimension_numbers = #tpu.dot_dimension_numbers<[2], [1], [1], [2], [0, 0, 0, 1, 1, 2], [0], [0]>} : vector<2x8x32xf32>, vector<2x32x96xf32>, vector<2x8x96xf32> -> vector<2x8x96xf32>
    %181 = vector.extract_strided_slice %114 {offsets = [0, 0, 0], sizes = [2, 8, 64], strides = [1, 1, 1]} : vector<2x8x96xf32> to vector<2x8x64xf32>
    %182 = vector.extract_strided_slice %180 {offsets = [0, 0, 0], sizes = [2, 8, 64], strides = [1, 1, 1]} : vector<2x8x96xf32> to vector<2x8x64xf32>
    %183 = arith.addf %181, %182 : vector<2x8x64xf32>
    %184 = arith.negf %183 : vector<2x8x64xf32>
    %185 = math.exp %184 : vector<2x8x64xf32>
    %cst_25 = arith.constant 1.000000e+00 : f32
    %186 = vector.broadcast %cst_25 : f32 to vector<2x8x64xf32>
    %187 = arith.addf %186, %185 : vector<2x8x64xf32>
    %188 = arith.divf %186, %187 : vector<2x8x64xf32>
    %189 = vector.extract_strided_slice %188 {offsets = [0, 0, 0], sizes = [2, 8, 32], strides = [1, 1, 1]} : vector<2x8x64xf32> to vector<2x8x32xf32>
    %190 = vector.extract_strided_slice %188 {offsets = [0, 0, 32], sizes = [2, 8, 32], strides = [1, 1, 1]} : vector<2x8x64xf32> to vector<2x8x32xf32>
    %191 = vector.extract_strided_slice %114 {offsets = [0, 0, 64], sizes = [2, 8, 32], strides = [1, 1, 1]} : vector<2x8x96xf32> to vector<2x8x32xf32>
    %192 = vector.extract_strided_slice %180 {offsets = [0, 0, 64], sizes = [2, 8, 32], strides = [1, 1, 1]} : vector<2x8x96xf32> to vector<2x8x32xf32>
    %193 = arith.addf %192, %88 : vector<2x8x32xf32>
    %194 = arith.mulf %189, %193 : vector<2x8x32xf32>
    %195 = arith.addf %191, %194 : vector<2x8x32xf32>
    %196 = math.tanh %195 : vector<2x8x32xf32>
    %197 = arith.subf %168, %196 : vector<2x8x32xf32>
    %198 = arith.mulf %190, %197 : vector<2x8x32xf32>
    %199 = arith.addf %196, %198 : vector<2x8x32xf32>
    %200 = arith.subf %199, %168 : vector<2x8x32xf32>
    %201 = arith.mulf %42, %200 : vector<2x8x32xf32>
    %202 = arith.addf %168, %201 : vector<2x8x32xf32>
    %203 = arith.mulf %42, %202 : vector<2x8x32xf32>
    %204 = vector.extract_strided_slice %203 {offsets = [0, 0, 0], sizes = [1, 8, 32], strides = [1, 1, 1]} : vector<2x8x32xf32> to vector<1x8x32xf32>
    %205 = vector.shape_cast %204 : vector<1x8x32xf32> to vector<8x32xf32>
    %c0_26 = arith.constant 0 : index
    %c8 = arith.constant 8 : index
    %c0_27 = arith.constant 0 : index
    %206 = vector.load %arg12[%c0_26, %c8, %c0_27] : memref<2x64x32xf32, #tpu.memory_space<vmem>>, vector<1x8x32xf32>
    %207 = vector.shape_cast %206 : vector<1x8x32xf32> to vector<8x32xf32>
    %208 = vector.shape_cast %205 : vector<8x32xf32> to vector<1x8x32xf32>
    tpu.vector_store %arg12[%c0_26, %c8, %c0_27], %208 {strides = array<i32>} : memref<2x64x32xf32, #tpu.memory_space<vmem>>, vector<1x8x32xf32>,
    %209 = vector.extract_strided_slice %203 {offsets = [1, 0, 0], sizes = [1, 8, 32], strides = [1, 1, 1]} : vector<2x8x32xf32> to vector<1x8x32xf32>
    %210 = vector.shape_cast %209 : vector<1x8x32xf32> to vector<8x32xf32>
    %c1_28 = arith.constant 1 : index
    %c48 = arith.constant 48 : index
    %c0_29 = arith.constant 0 : index
    %211 = vector.load %arg12[%c1_28, %c48, %c0_29] : memref<2x64x32xf32, #tpu.memory_space<vmem>>, vector<1x8x32xf32>
    %212 = vector.shape_cast %211 : vector<1x8x32xf32> to vector<8x32xf32>
    %213 = vector.shape_cast %210 : vector<8x32xf32> to vector<1x8x32xf32>
    tpu.vector_store %arg12[%c1_28, %c48, %c0_29], %213 {strides = array<i32>} : memref<2x64x32xf32, #tpu.memory_space<vmem>>, vector<1x8x32xf32>,
    %cst_30 = arith.constant dense<0.000000e+00> : vector<2x8x96xf32>
    %214 = tpu.matmul %202, %75, %cst_30 {dimension_numbers = #tpu.dot_dimension_numbers<[2], [1], [1], [2], [0, 0, 0, 1, 1, 2], [0], [0]>} : vector<2x8x32xf32>, vector<2x32x96xf32>, vector<2x8x96xf32> -> vector<2x8x96xf32>
    %215 = vector.extract_strided_slice %119 {offsets = [0, 0, 0], sizes = [2, 8, 64], strides = [1, 1, 1]} : vector<2x8x96xf32> to vector<2x8x64xf32>
    %216 = vector.extract_strided_slice %214 {offsets = [0, 0, 0], sizes = [2, 8, 64], strides = [1, 1, 1]} : vector<2x8x96xf32> to vector<2x8x64xf32>
    %217 = arith.addf %215, %216 : vector<2x8x64xf32>
    %218 = arith.negf %217 : vector<2x8x64xf32>
    %219 = math.exp %218 : vector<2x8x64xf32>
    %cst_31 = arith.constant 1.000000e+00 : f32
    %220 = vector.broadcast %cst_31 : f32 to vector<2x8x64xf32>
    %221 = arith.addf %220, %219 : vector<2x8x64xf32>
    %222 = arith.divf %220, %221 : vector<2x8x64xf32>
    %223 = vector.extract_strided_slice %222 {offsets = [0, 0, 0], sizes = [2, 8, 32], strides = [1, 1, 1]} : vector<2x8x64xf32> to vector<2x8x32xf32>
    %224 = vector.extract_strided_slice %222 {offsets = [0, 0, 32], sizes = [2, 8, 32], strides = [1, 1, 1]} : vector<2x8x64xf32> to vector<2x8x32xf32>
    %225 = vector.extract_strided_slice %119 {offsets = [0, 0, 64], sizes = [2, 8, 32], strides = [1, 1, 1]} : vector<2x8x96xf32> to vector<2x8x32xf32>
    %226 = vector.extract_strided_slice %214 {offsets = [0, 0, 64], sizes = [2, 8, 32], strides = [1, 1, 1]} : vector<2x8x96xf32> to vector<2x8x32xf32>
    %227 = arith.addf %226, %88 : vector<2x8x32xf32>
    %228 = arith.mulf %223, %227 : vector<2x8x32xf32>
    %229 = arith.addf %225, %228 : vector<2x8x32xf32>
    %230 = math.tanh %229 : vector<2x8x32xf32>
    %231 = arith.subf %202, %230 : vector<2x8x32xf32>
    %232 = arith.mulf %224, %231 : vector<2x8x32xf32>
    %233 = arith.addf %230, %232 : vector<2x8x32xf32>
    %234 = arith.subf %233, %202 : vector<2x8x32xf32>
    %235 = arith.mulf %47, %234 : vector<2x8x32xf32>
    %236 = arith.addf %202, %235 : vector<2x8x32xf32>
    %237 = arith.mulf %47, %236 : vector<2x8x32xf32>
    %238 = vector.extract_strided_slice %237 {offsets = [0, 0, 0], sizes = [1, 8, 32], strides = [1, 1, 1]} : vector<2x8x32xf32> to vector<1x8x32xf32>
    %239 = vector.shape_cast %238 : vector<1x8x32xf32> to vector<8x32xf32>
    %c0_32 = arith.constant 0 : index
    %c16 = arith.constant 16 : index
    %c0_33 = arith.constant 0 : index
    %240 = vector.load %arg12[%c0_32, %c16, %c0_33] : memref<2x64x32xf32, #tpu.memory_space<vmem>>, vector<1x8x32xf32>
    %241 = vector.shape_cast %240 : vector<1x8x32xf32> to vector<8x32xf32>
    %242 = vector.shape_cast %239 : vector<8x32xf32> to vector<1x8x32xf32>
    tpu.vector_store %arg12[%c0_32, %c16, %c0_33], %242 {strides = array<i32>} : memref<2x64x32xf32, #tpu.memory_space<vmem>>, vector<1x8x32xf32>,
    %243 = vector.extract_strided_slice %237 {offsets = [1, 0, 0], sizes = [1, 8, 32], strides = [1, 1, 1]} : vector<2x8x32xf32> to vector<1x8x32xf32>
    %244 = vector.shape_cast %243 : vector<1x8x32xf32> to vector<8x32xf32>
    %c1_34 = arith.constant 1 : index
    %c40 = arith.constant 40 : index
    %c0_35 = arith.constant 0 : index
    %245 = vector.load %arg12[%c1_34, %c40, %c0_35] : memref<2x64x32xf32, #tpu.memory_space<vmem>>, vector<1x8x32xf32>
    %246 = vector.shape_cast %245 : vector<1x8x32xf32> to vector<8x32xf32>
    %247 = vector.shape_cast %244 : vector<8x32xf32> to vector<1x8x32xf32>
    tpu.vector_store %arg12[%c1_34, %c40, %c0_35], %247 {strides = array<i32>} : memref<2x64x32xf32, #tpu.memory_space<vmem>>, vector<1x8x32xf32>,
    %cst_36 = arith.constant dense<0.000000e+00> : vector<2x8x96xf32>
    %248 = tpu.matmul %236, %75, %cst_36 {dimension_numbers = #tpu.dot_dimension_numbers<[2], [1], [1], [2], [0, 0, 0, 1, 1, 2], [0], [0]>} : vector<2x8x32xf32>, vector<2x32x96xf32>, vector<2x8x96xf32> -> vector<2x8x96xf32>
    %249 = vector.extract_strided_slice %124 {offsets = [0, 0, 0], sizes = [2, 8, 64], strides = [1, 1, 1]} : vector<2x8x96xf32> to vector<2x8x64xf32>
    %250 = vector.extract_strided_slice %248 {offsets = [0, 0, 0], sizes = [2, 8, 64], strides = [1, 1, 1]} : vector<2x8x96xf32> to vector<2x8x64xf32>
    %251 = arith.addf %249, %250 : vector<2x8x64xf32>
    %252 = arith.negf %251 : vector<2x8x64xf32>
    %253 = math.exp %252 : vector<2x8x64xf32>
    %cst_37 = arith.constant 1.000000e+00 : f32
    %254 = vector.broadcast %cst_37 : f32 to vector<2x8x64xf32>
    %255 = arith.addf %254, %253 : vector<2x8x64xf32>
    %256 = arith.divf %254, %255 : vector<2x8x64xf32>
    %257 = vector.extract_strided_slice %256 {offsets = [0, 0, 0], sizes = [2, 8, 32], strides = [1, 1, 1]} : vector<2x8x64xf32> to vector<2x8x32xf32>
    %258 = vector.extract_strided_slice %256 {offsets = [0, 0, 32], sizes = [2, 8, 32], strides = [1, 1, 1]} : vector<2x8x64xf32> to vector<2x8x32xf32>
    %259 = vector.extract_strided_slice %124 {offsets = [0, 0, 64], sizes = [2, 8, 32], strides = [1, 1, 1]} : vector<2x8x96xf32> to vector<2x8x32xf32>
    %260 = vector.extract_strided_slice %248 {offsets = [0, 0, 64], sizes = [2, 8, 32], strides = [1, 1, 1]} : vector<2x8x96xf32> to vector<2x8x32xf32>
    %261 = arith.addf %260, %88 : vector<2x8x32xf32>
    %262 = arith.mulf %257, %261 : vector<2x8x32xf32>
    %263 = arith.addf %259, %262 : vector<2x8x32xf32>
    %264 = math.tanh %263 : vector<2x8x32xf32>
    %265 = arith.subf %236, %264 : vector<2x8x32xf32>
    %266 = arith.mulf %258, %265 : vector<2x8x32xf32>
    %267 = arith.addf %264, %266 : vector<2x8x32xf32>
    %268 = arith.subf %267, %236 : vector<2x8x32xf32>
    %269 = arith.mulf %52, %268 : vector<2x8x32xf32>
    %270 = arith.addf %236, %269 : vector<2x8x32xf32>
    %271 = arith.mulf %52, %270 : vector<2x8x32xf32>
    %272 = vector.extract_strided_slice %271 {offsets = [0, 0, 0], sizes = [1, 8, 32], strides = [1, 1, 1]} : vector<2x8x32xf32> to vector<1x8x32xf32>
    %273 = vector.shape_cast %272 : vector<1x8x32xf32> to vector<8x32xf32>
    %c0_38 = arith.constant 0 : index
    %c24 = arith.constant 24 : index
    %c0_39 = arith.constant 0 : index
    %274 = vector.load %arg12[%c0_38, %c24, %c0_39] : memref<2x64x32xf32, #tpu.memory_space<vmem>>, vector<1x8x32xf32>
    %275 = vector.shape_cast %274 : vector<1x8x32xf32> to vector<8x32xf32>
    %276 = vector.shape_cast %273 : vector<8x32xf32> to vector<1x8x32xf32>
    tpu.vector_store %arg12[%c0_38, %c24, %c0_39], %276 {strides = array<i32>} : memref<2x64x32xf32, #tpu.memory_space<vmem>>, vector<1x8x32xf32>,
    %277 = vector.extract_strided_slice %271 {offsets = [1, 0, 0], sizes = [1, 8, 32], strides = [1, 1, 1]} : vector<2x8x32xf32> to vector<1x8x32xf32>
    %278 = vector.shape_cast %277 : vector<1x8x32xf32> to vector<8x32xf32>
    %c1_40 = arith.constant 1 : index
    %c32 = arith.constant 32 : index
    %c0_41 = arith.constant 0 : index
    %279 = vector.load %arg12[%c1_40, %c32, %c0_41] : memref<2x64x32xf32, #tpu.memory_space<vmem>>, vector<1x8x32xf32>
    %280 = vector.shape_cast %279 : vector<1x8x32xf32> to vector<8x32xf32>
    %281 = vector.shape_cast %278 : vector<8x32xf32> to vector<1x8x32xf32>
    tpu.vector_store %arg12[%c1_40, %c32, %c0_41], %281 {strides = array<i32>} : memref<2x64x32xf32, #tpu.memory_space<vmem>>, vector<1x8x32xf32>,
    %cst_42 = arith.constant dense<0.000000e+00> : vector<2x8x96xf32>
    %282 = tpu.matmul %270, %75, %cst_42 {dimension_numbers = #tpu.dot_dimension_numbers<[2], [1], [1], [2], [0, 0, 0, 1, 1, 2], [0], [0]>} : vector<2x8x32xf32>, vector<2x32x96xf32>, vector<2x8x96xf32> -> vector<2x8x96xf32>
    %283 = vector.extract_strided_slice %129 {offsets = [0, 0, 0], sizes = [2, 8, 64], strides = [1, 1, 1]} : vector<2x8x96xf32> to vector<2x8x64xf32>
    %284 = vector.extract_strided_slice %282 {offsets = [0, 0, 0], sizes = [2, 8, 64], strides = [1, 1, 1]} : vector<2x8x96xf32> to vector<2x8x64xf32>
    %285 = arith.addf %283, %284 : vector<2x8x64xf32>
    %286 = arith.negf %285 : vector<2x8x64xf32>
    %287 = math.exp %286 : vector<2x8x64xf32>
    %cst_43 = arith.constant 1.000000e+00 : f32
    %288 = vector.broadcast %cst_43 : f32 to vector<2x8x64xf32>
    %289 = arith.addf %288, %287 : vector<2x8x64xf32>
    %290 = arith.divf %288, %289 : vector<2x8x64xf32>
    %291 = vector.extract_strided_slice %290 {offsets = [0, 0, 0], sizes = [2, 8, 32], strides = [1, 1, 1]} : vector<2x8x64xf32> to vector<2x8x32xf32>
    %292 = vector.extract_strided_slice %290 {offsets = [0, 0, 32], sizes = [2, 8, 32], strides = [1, 1, 1]} : vector<2x8x64xf32> to vector<2x8x32xf32>
    %293 = vector.extract_strided_slice %129 {offsets = [0, 0, 64], sizes = [2, 8, 32], strides = [1, 1, 1]} : vector<2x8x96xf32> to vector<2x8x32xf32>
    %294 = vector.extract_strided_slice %282 {offsets = [0, 0, 64], sizes = [2, 8, 32], strides = [1, 1, 1]} : vector<2x8x96xf32> to vector<2x8x32xf32>
    %295 = arith.addf %294, %88 : vector<2x8x32xf32>
    %296 = arith.mulf %291, %295 : vector<2x8x32xf32>
    %297 = arith.addf %293, %296 : vector<2x8x32xf32>
    %298 = math.tanh %297 : vector<2x8x32xf32>
    %299 = arith.subf %270, %298 : vector<2x8x32xf32>
    %300 = arith.mulf %292, %299 : vector<2x8x32xf32>
    %301 = arith.addf %298, %300 : vector<2x8x32xf32>
    %302 = arith.subf %301, %270 : vector<2x8x32xf32>
    %303 = arith.mulf %57, %302 : vector<2x8x32xf32>
    %304 = arith.addf %270, %303 : vector<2x8x32xf32>
    %305 = arith.mulf %57, %304 : vector<2x8x32xf32>
    %306 = vector.extract_strided_slice %305 {offsets = [0, 0, 0], sizes = [1, 8, 32], strides = [1, 1, 1]} : vector<2x8x32xf32> to vector<1x8x32xf32>
    %307 = vector.shape_cast %306 : vector<1x8x32xf32> to vector<8x32xf32>
    %c0_44 = arith.constant 0 : index
    %c32_45 = arith.constant 32 : index
    %c0_46 = arith.constant 0 : index
    %308 = vector.load %arg12[%c0_44, %c32_45, %c0_46] : memref<2x64x32xf32, #tpu.memory_space<vmem>>, vector<1x8x32xf32>
    %309 = vector.shape_cast %308 : vector<1x8x32xf32> to vector<8x32xf32>
    %310 = vector.shape_cast %307 : vector<8x32xf32> to vector<1x8x32xf32>
    tpu.vector_store %arg12[%c0_44, %c32_45, %c0_46], %310 {strides = array<i32>} : memref<2x64x32xf32, #tpu.memory_space<vmem>>, vector<1x8x32xf32>,
    %311 = vector.extract_strided_slice %305 {offsets = [1, 0, 0], sizes = [1, 8, 32], strides = [1, 1, 1]} : vector<2x8x32xf32> to vector<1x8x32xf32>
    %312 = vector.shape_cast %311 : vector<1x8x32xf32> to vector<8x32xf32>
    %c1_47 = arith.constant 1 : index
    %c24_48 = arith.constant 24 : index
    %c0_49 = arith.constant 0 : index
    %313 = vector.load %arg12[%c1_47, %c24_48, %c0_49] : memref<2x64x32xf32, #tpu.memory_space<vmem>>, vector<1x8x32xf32>
    %314 = vector.shape_cast %313 : vector<1x8x32xf32> to vector<8x32xf32>
    %315 = vector.shape_cast %312 : vector<8x32xf32> to vector<1x8x32xf32>
    tpu.vector_store %arg12[%c1_47, %c24_48, %c0_49], %315 {strides = array<i32>} : memref<2x64x32xf32, #tpu.memory_space<vmem>>, vector<1x8x32xf32>,
    %cst_50 = arith.constant dense<0.000000e+00> : vector<2x8x96xf32>
    %316 = tpu.matmul %304, %75, %cst_50 {dimension_numbers = #tpu.dot_dimension_numbers<[2], [1], [1], [2], [0, 0, 0, 1, 1, 2], [0], [0]>} : vector<2x8x32xf32>, vector<2x32x96xf32>, vector<2x8x96xf32> -> vector<2x8x96xf32>
    %317 = vector.extract_strided_slice %134 {offsets = [0, 0, 0], sizes = [2, 8, 64], strides = [1, 1, 1]} : vector<2x8x96xf32> to vector<2x8x64xf32>
    %318 = vector.extract_strided_slice %316 {offsets = [0, 0, 0], sizes = [2, 8, 64], strides = [1, 1, 1]} : vector<2x8x96xf32> to vector<2x8x64xf32>
    %319 = arith.addf %317, %318 : vector<2x8x64xf32>
    %320 = arith.negf %319 : vector<2x8x64xf32>
    %321 = math.exp %320 : vector<2x8x64xf32>
    %cst_51 = arith.constant 1.000000e+00 : f32
    %322 = vector.broadcast %cst_51 : f32 to vector<2x8x64xf32>
    %323 = arith.addf %322, %321 : vector<2x8x64xf32>
    %324 = arith.divf %322, %323 : vector<2x8x64xf32>
    %325 = vector.extract_strided_slice %324 {offsets = [0, 0, 0], sizes = [2, 8, 32], strides = [1, 1, 1]} : vector<2x8x64xf32> to vector<2x8x32xf32>
    %326 = vector.extract_strided_slice %324 {offsets = [0, 0, 32], sizes = [2, 8, 32], strides = [1, 1, 1]} : vector<2x8x64xf32> to vector<2x8x32xf32>
    %327 = vector.extract_strided_slice %134 {offsets = [0, 0, 64], sizes = [2, 8, 32], strides = [1, 1, 1]} : vector<2x8x96xf32> to vector<2x8x32xf32>
    %328 = vector.extract_strided_slice %316 {offsets = [0, 0, 64], sizes = [2, 8, 32], strides = [1, 1, 1]} : vector<2x8x96xf32> to vector<2x8x32xf32>
    %329 = arith.addf %328, %88 : vector<2x8x32xf32>
    %330 = arith.mulf %325, %329 : vector<2x8x32xf32>
    %331 = arith.addf %327, %330 : vector<2x8x32xf32>
    %332 = math.tanh %331 : vector<2x8x32xf32>
    %333 = arith.subf %304, %332 : vector<2x8x32xf32>
    %334 = arith.mulf %326, %333 : vector<2x8x32xf32>
    %335 = arith.addf %332, %334 : vector<2x8x32xf32>
    %336 = arith.subf %335, %304 : vector<2x8x32xf32>
    %337 = arith.mulf %62, %336 : vector<2x8x32xf32>
    %338 = arith.addf %304, %337 : vector<2x8x32xf32>
    %339 = arith.mulf %62, %338 : vector<2x8x32xf32>
    %340 = vector.extract_strided_slice %339 {offsets = [0, 0, 0], sizes = [1, 8, 32], strides = [1, 1, 1]} : vector<2x8x32xf32> to vector<1x8x32xf32>
    %341 = vector.shape_cast %340 : vector<1x8x32xf32> to vector<8x32xf32>
    %c0_52 = arith.constant 0 : index
    %c40_53 = arith.constant 40 : index
    %c0_54 = arith.constant 0 : index
    %342 = vector.load %arg12[%c0_52, %c40_53, %c0_54] : memref<2x64x32xf32, #tpu.memory_space<vmem>>, vector<1x8x32xf32>
    %343 = vector.shape_cast %342 : vector<1x8x32xf32> to vector<8x32xf32>
    %344 = vector.shape_cast %341 : vector<8x32xf32> to vector<1x8x32xf32>
    tpu.vector_store %arg12[%c0_52, %c40_53, %c0_54], %344 {strides = array<i32>} : memref<2x64x32xf32, #tpu.memory_space<vmem>>, vector<1x8x32xf32>,
    %345 = vector.extract_strided_slice %339 {offsets = [1, 0, 0], sizes = [1, 8, 32], strides = [1, 1, 1]} : vector<2x8x32xf32> to vector<1x8x32xf32>
    %346 = vector.shape_cast %345 : vector<1x8x32xf32> to vector<8x32xf32>
    %c1_55 = arith.constant 1 : index
    %c16_56 = arith.constant 16 : index
    %c0_57 = arith.constant 0 : index
    %347 = vector.load %arg12[%c1_55, %c16_56, %c0_57] : memref<2x64x32xf32, #tpu.memory_space<vmem>>, vector<1x8x32xf32>
    %348 = vector.shape_cast %347 : vector<1x8x32xf32> to vector<8x32xf32>
    %349 = vector.shape_cast %346 : vector<8x32xf32> to vector<1x8x32xf32>
    tpu.vector_store %arg12[%c1_55, %c16_56, %c0_57], %349 {strides = array<i32>} : memref<2x64x32xf32, #tpu.memory_space<vmem>>, vector<1x8x32xf32>,
    %cst_58 = arith.constant dense<0.000000e+00> : vector<2x8x96xf32>
    %350 = tpu.matmul %338, %75, %cst_58 {dimension_numbers = #tpu.dot_dimension_numbers<[2], [1], [1], [2], [0, 0, 0, 1, 1, 2], [0], [0]>} : vector<2x8x32xf32>, vector<2x32x96xf32>, vector<2x8x96xf32> -> vector<2x8x96xf32>
    %351 = vector.extract_strided_slice %139 {offsets = [0, 0, 0], sizes = [2, 8, 64], strides = [1, 1, 1]} : vector<2x8x96xf32> to vector<2x8x64xf32>
    %352 = vector.extract_strided_slice %350 {offsets = [0, 0, 0], sizes = [2, 8, 64], strides = [1, 1, 1]} : vector<2x8x96xf32> to vector<2x8x64xf32>
    %353 = arith.addf %351, %352 : vector<2x8x64xf32>
    %354 = arith.negf %353 : vector<2x8x64xf32>
    %355 = math.exp %354 : vector<2x8x64xf32>
    %cst_59 = arith.constant 1.000000e+00 : f32
    %356 = vector.broadcast %cst_59 : f32 to vector<2x8x64xf32>
    %357 = arith.addf %356, %355 : vector<2x8x64xf32>
    %358 = arith.divf %356, %357 : vector<2x8x64xf32>
    %359 = vector.extract_strided_slice %358 {offsets = [0, 0, 0], sizes = [2, 8, 32], strides = [1, 1, 1]} : vector<2x8x64xf32> to vector<2x8x32xf32>
    %360 = vector.extract_strided_slice %358 {offsets = [0, 0, 32], sizes = [2, 8, 32], strides = [1, 1, 1]} : vector<2x8x64xf32> to vector<2x8x32xf32>
    %361 = vector.extract_strided_slice %139 {offsets = [0, 0, 64], sizes = [2, 8, 32], strides = [1, 1, 1]} : vector<2x8x96xf32> to vector<2x8x32xf32>
    %362 = vector.extract_strided_slice %350 {offsets = [0, 0, 64], sizes = [2, 8, 32], strides = [1, 1, 1]} : vector<2x8x96xf32> to vector<2x8x32xf32>
    %363 = arith.addf %362, %88 : vector<2x8x32xf32>
    %364 = arith.mulf %359, %363 : vector<2x8x32xf32>
    %365 = arith.addf %361, %364 : vector<2x8x32xf32>
    %366 = math.tanh %365 : vector<2x8x32xf32>
    %367 = arith.subf %338, %366 : vector<2x8x32xf32>
    %368 = arith.mulf %360, %367 : vector<2x8x32xf32>
    %369 = arith.addf %366, %368 : vector<2x8x32xf32>
    %370 = arith.subf %369, %338 : vector<2x8x32xf32>
    %371 = arith.mulf %67, %370 : vector<2x8x32xf32>
    %372 = arith.addf %338, %371 : vector<2x8x32xf32>
    %373 = arith.mulf %67, %372 : vector<2x8x32xf32>
    %374 = vector.extract_strided_slice %373 {offsets = [0, 0, 0], sizes = [1, 8, 32], strides = [1, 1, 1]} : vector<2x8x32xf32> to vector<1x8x32xf32>
    %375 = vector.shape_cast %374 : vector<1x8x32xf32> to vector<8x32xf32>
    %c0_60 = arith.constant 0 : index
    %c48_61 = arith.constant 48 : index
    %c0_62 = arith.constant 0 : index
    %376 = vector.load %arg12[%c0_60, %c48_61, %c0_62] : memref<2x64x32xf32, #tpu.memory_space<vmem>>, vector<1x8x32xf32>
    %377 = vector.shape_cast %376 : vector<1x8x32xf32> to vector<8x32xf32>
    %378 = vector.shape_cast %375 : vector<8x32xf32> to vector<1x8x32xf32>
    tpu.vector_store %arg12[%c0_60, %c48_61, %c0_62], %378 {strides = array<i32>} : memref<2x64x32xf32, #tpu.memory_space<vmem>>, vector<1x8x32xf32>,
    %379 = vector.extract_strided_slice %373 {offsets = [1, 0, 0], sizes = [1, 8, 32], strides = [1, 1, 1]} : vector<2x8x32xf32> to vector<1x8x32xf32>
    %380 = vector.shape_cast %379 : vector<1x8x32xf32> to vector<8x32xf32>
    %c1_63 = arith.constant 1 : index
    %c8_64 = arith.constant 8 : index
    %c0_65 = arith.constant 0 : index
    %381 = vector.load %arg12[%c1_63, %c8_64, %c0_65] : memref<2x64x32xf32, #tpu.memory_space<vmem>>, vector<1x8x32xf32>
    %382 = vector.shape_cast %381 : vector<1x8x32xf32> to vector<8x32xf32>
    %383 = vector.shape_cast %380 : vector<8x32xf32> to vector<1x8x32xf32>
    tpu.vector_store %arg12[%c1_63, %c8_64, %c0_65], %383 {strides = array<i32>} : memref<2x64x32xf32, #tpu.memory_space<vmem>>, vector<1x8x32xf32>,
    %cst_66 = arith.constant dense<0.000000e+00> : vector<2x8x96xf32>
    %384 = tpu.matmul %372, %75, %cst_66 {dimension_numbers = #tpu.dot_dimension_numbers<[2], [1], [1], [2], [0, 0, 0, 1, 1, 2], [0], [0]>} : vector<2x8x32xf32>, vector<2x32x96xf32>, vector<2x8x96xf32> -> vector<2x8x96xf32>
    %385 = vector.extract_strided_slice %144 {offsets = [0, 0, 0], sizes = [2, 8, 64], strides = [1, 1, 1]} : vector<2x8x96xf32> to vector<2x8x64xf32>
    %386 = vector.extract_strided_slice %384 {offsets = [0, 0, 0], sizes = [2, 8, 64], strides = [1, 1, 1]} : vector<2x8x96xf32> to vector<2x8x64xf32>
    %387 = arith.addf %385, %386 : vector<2x8x64xf32>
    %388 = arith.negf %387 : vector<2x8x64xf32>
    %389 = math.exp %388 : vector<2x8x64xf32>
    %cst_67 = arith.constant 1.000000e+00 : f32
    %390 = vector.broadcast %cst_67 : f32 to vector<2x8x64xf32>
    %391 = arith.addf %390, %389 : vector<2x8x64xf32>
    %392 = arith.divf %390, %391 : vector<2x8x64xf32>
    %393 = vector.extract_strided_slice %392 {offsets = [0, 0, 0], sizes = [2, 8, 32], strides = [1, 1, 1]} : vector<2x8x64xf32> to vector<2x8x32xf32>
    %394 = vector.extract_strided_slice %392 {offsets = [0, 0, 32], sizes = [2, 8, 32], strides = [1, 1, 1]} : vector<2x8x64xf32> to vector<2x8x32xf32>
    %395 = vector.extract_strided_slice %144 {offsets = [0, 0, 64], sizes = [2, 8, 32], strides = [1, 1, 1]} : vector<2x8x96xf32> to vector<2x8x32xf32>
    %396 = vector.extract_strided_slice %384 {offsets = [0, 0, 64], sizes = [2, 8, 32], strides = [1, 1, 1]} : vector<2x8x96xf32> to vector<2x8x32xf32>
    %397 = arith.addf %396, %88 : vector<2x8x32xf32>
    %398 = arith.mulf %393, %397 : vector<2x8x32xf32>
    %399 = arith.addf %395, %398 : vector<2x8x32xf32>
    %400 = math.tanh %399 : vector<2x8x32xf32>
    %401 = arith.subf %372, %400 : vector<2x8x32xf32>
    %402 = arith.mulf %394, %401 : vector<2x8x32xf32>
    %403 = arith.addf %400, %402 : vector<2x8x32xf32>
    %404 = arith.subf %403, %372 : vector<2x8x32xf32>
    %405 = arith.mulf %72, %404 : vector<2x8x32xf32>
    %406 = arith.addf %372, %405 : vector<2x8x32xf32>
    %407 = arith.mulf %72, %406 : vector<2x8x32xf32>
    %408 = vector.extract_strided_slice %407 {offsets = [0, 0, 0], sizes = [1, 8, 32], strides = [1, 1, 1]} : vector<2x8x32xf32> to vector<1x8x32xf32>
    %409 = vector.shape_cast %408 : vector<1x8x32xf32> to vector<8x32xf32>
    %c0_68 = arith.constant 0 : index
    %c56_69 = arith.constant 56 : index
    %c0_70 = arith.constant 0 : index
    %410 = vector.load %arg12[%c0_68, %c56_69, %c0_70] : memref<2x64x32xf32, #tpu.memory_space<vmem>>, vector<1x8x32xf32>
    %411 = vector.shape_cast %410 : vector<1x8x32xf32> to vector<8x32xf32>
    %412 = vector.shape_cast %409 : vector<8x32xf32> to vector<1x8x32xf32>
    tpu.vector_store %arg12[%c0_68, %c56_69, %c0_70], %412 {strides = array<i32>} : memref<2x64x32xf32, #tpu.memory_space<vmem>>, vector<1x8x32xf32>,
    %413 = vector.extract_strided_slice %407 {offsets = [1, 0, 0], sizes = [1, 8, 32], strides = [1, 1, 1]} : vector<2x8x32xf32> to vector<1x8x32xf32>
    %414 = vector.shape_cast %413 : vector<1x8x32xf32> to vector<8x32xf32>
    %c1_71 = arith.constant 1 : index
    %c0_72 = arith.constant 0 : index
    %c0_73 = arith.constant 0 : index
    %415 = vector.load %arg12[%c1_71, %c0_72, %c0_73] : memref<2x64x32xf32, #tpu.memory_space<vmem>>, vector<1x8x32xf32>
    %416 = vector.shape_cast %415 : vector<1x8x32xf32> to vector<8x32xf32>
    %417 = vector.shape_cast %414 : vector<8x32xf32> to vector<1x8x32xf32>
    tpu.vector_store %arg12[%c1_71, %c0_72, %c0_73], %417 {strides = array<i32>} : memref<2x64x32xf32, #tpu.memory_space<vmem>>, vector<1x8x32xf32>,
    %418 = vector.extract_strided_slice %406 {offsets = [0, 0, 0], sizes = [1, 8, 32], strides = [1, 1, 1]} : vector<2x8x32xf32> to vector<1x8x32xf32>
    %419 = vector.shape_cast %418 : vector<1x8x32xf32> to vector<8x32xf32>
    %c0_74 = arith.constant 0 : index
    %c0_75 = arith.constant 0 : index
    %c0_76 = arith.constant 0 : index
    %420 = vector.load %arg11[%c0_74, %c0_75, %c0_76] : memref<4x8x32xf32, #tpu.memory_space<vmem>>, vector<1x8x32xf32>
    %421 = vector.shape_cast %420 : vector<1x8x32xf32> to vector<8x32xf32>
    %422 = vector.shape_cast %419 : vector<8x32xf32> to vector<1x8x32xf32>
    tpu.vector_store %arg11[%c0_74, %c0_75, %c0_76], %422 {strides = array<i32>} : memref<4x8x32xf32, #tpu.memory_space<vmem>>, vector<1x8x32xf32>,
    %423 = vector.extract_strided_slice %406 {offsets = [1, 0, 0], sizes = [1, 8, 32], strides = [1, 1, 1]} : vector<2x8x32xf32> to vector<1x8x32xf32>
    %424 = vector.shape_cast %423 : vector<1x8x32xf32> to vector<8x32xf32>
    %c1_77 = arith.constant 1 : index
    %c0_78 = arith.constant 0 : index
    %c0_79 = arith.constant 0 : index
    %425 = vector.load %arg11[%c1_77, %c0_78, %c0_79] : memref<4x8x32xf32, #tpu.memory_space<vmem>>, vector<1x8x32xf32>
    %426 = vector.shape_cast %425 : vector<1x8x32xf32> to vector<8x32xf32>
    %427 = vector.shape_cast %424 : vector<8x32xf32> to vector<1x8x32xf32>
    tpu.vector_store %arg11[%c1_77, %c0_78, %c0_79], %427 {strides = array<i32>} : memref<4x8x32xf32, #tpu.memory_space<vmem>>, vector<1x8x32xf32>,
    %c0_80 = arith.constant 0 : index
    %c0_81 = arith.constant 0 : index
    %c0_82 = arith.constant 0 : index
    %428 = vector.load %arg12[%c0_80, %c0_81, %c0_82] : memref<2x64x32xf32, #tpu.memory_space<vmem>>, vector<1x64x32xf32>
    %429 = vector.shape_cast %428 : vector<1x64x32xf32> to vector<64x32xf32>
    %c1_83 = arith.constant 1 : index
    %c0_84 = arith.constant 0 : index
    %c0_85 = arith.constant 0 : index
    %430 = vector.load %arg12[%c1_83, %c0_84, %c0_85] : memref<2x64x32xf32, #tpu.memory_space<vmem>>, vector<1x64x32xf32>
    %431 = vector.shape_cast %430 : vector<1x64x32xf32> to vector<64x32xf32>
    %c0_86 = arith.constant 0 : index
    %c0_87 = arith.constant 0 : index
    %c0_88 = arith.constant 0 : index
    %c0_89 = arith.constant 0 : index
    %432 = vector.load %arg6[%c0_86, %c0_87, %c0_88, %c0_89] : memref<2x2x32x96xf32, #tpu.memory_space<vmem>>, vector<2x2x32x96xf32>
    %c0_90 = arith.constant 0 : index
    %c0_91 = arith.constant 0 : index
    %c0_92 = arith.constant 0 : index
    %433 = vector.load %arg7[%c0_90, %c0_91, %c0_92] : memref<2x32x96xf32, #tpu.memory_space<vmem>>, vector<2x32x96xf32>
    %c0_93 = arith.constant 0 : index
    %c0_94 = arith.constant 0 : index
    %c0_95 = arith.constant 0 : index
    %434 = vector.load %arg8[%c0_93, %c0_94, %c0_95] : memref<2x1x96xf32, #tpu.memory_space<vmem>>, vector<2x1x96xf32>
    %c0_96 = arith.constant 0 : index
    %c0_97 = arith.constant 0 : index
    %c0_98 = arith.constant 0 : index
    %435 = vector.load %arg9[%c0_96, %c0_97, %c0_98] : memref<2x1x96xf32, #tpu.memory_space<vmem>>, vector<2x1x96xf32>
    %436 = vector.extract_strided_slice %434 {offsets = [0, 0, 0], sizes = [2, 1, 64], strides = [1, 1, 1]} : vector<2x1x96xf32> to vector<2x1x64xf32>
    %437 = vector.shape_cast %436 : vector<2x1x64xf32> to vector<2x64xf32>
    %438 = vector.extract_strided_slice %435 {offsets = [0, 0, 0], sizes = [2, 1, 64], strides = [1, 1, 1]} : vector<2x1x96xf32> to vector<2x1x64xf32>
    %439 = vector.shape_cast %438 : vector<2x1x64xf32> to vector<2x64xf32>
    %440 = arith.addf %437, %439 : vector<2x64xf32>
    %441 = vector.extract_strided_slice %434 {offsets = [0, 0, 64], sizes = [2, 1, 32], strides = [1, 1, 1]} : vector<2x1x96xf32> to vector<2x1x32xf32>
    %442 = vector.shape_cast %441 : vector<2x1x32xf32> to vector<2x32xf32>
    %443 = tpu.concatenate %440, %442 in 1 : vector<2x64xf32>, vector<2x32xf32> -> vector<2x96xf32>
    %444 = vector.extract_strided_slice %435 {offsets = [0, 0, 64], sizes = [2, 1, 32], strides = [1, 1, 1]} : vector<2x1x96xf32> to vector<2x1x32xf32>
    %445 = vector.shape_cast %444 : vector<2x1x32xf32> to vector<2x1x32xf32>
    %446 = vector.broadcast %445 : vector<2x1x32xf32> to vector<2x8x32xf32>
    %447 = vector.extract_strided_slice %432 {offsets = [0, 0, 0, 0], sizes = [1, 1, 32, 96], strides = [1, 1, 1, 1]} : vector<2x2x32x96xf32> to vector<1x1x32x96xf32>
    %448 = vector.shape_cast %447 : vector<1x1x32x96xf32> to vector<32x96xf32>
    %cst_99 = arith.constant dense<0.000000e+00> : vector<64x96xf32>
    %449 = tpu.matmul %429, %448, %cst_99 {dimension_numbers = #tpu.dot_dimension_numbers<[1], [0], [0], [1], [0, 0, 1, 1], [], []>} : vector<64x32xf32>, vector<32x96xf32>, vector<64x96xf32> -> vector<64x96xf32>
    %450 = vector.extract_strided_slice %432 {offsets = [0, 1, 0, 0], sizes = [1, 1, 32, 96], strides = [1, 1, 1, 1]} : vector<2x2x32x96xf32> to vector<1x1x32x96xf32>
    %451 = vector.shape_cast %450 : vector<1x1x32x96xf32> to vector<32x96xf32>
    %cst_100 = arith.constant dense<0.000000e+00> : vector<64x96xf32>
    %452 = tpu.matmul %431, %451, %cst_100 {dimension_numbers = #tpu.dot_dimension_numbers<[1], [0], [0], [1], [0, 0, 1, 1], [], []>} : vector<64x32xf32>, vector<32x96xf32>, vector<64x96xf32> -> vector<64x96xf32>
    %453 = arith.addf %449, %452 : vector<64x96xf32>
    %454 = vector.extract_strided_slice %443 {offsets = [0, 0], sizes = [1, 96], strides = [1, 1]} : vector<2x96xf32> to vector<1x96xf32>
    %455 = vector.shape_cast %454 : vector<1x96xf32> to vector<96xf32>
    %456 = vector.shape_cast %455 : vector<96xf32> to vector<1x96xf32>
    %457 = vector.broadcast %456 : vector<1x96xf32> to vector<64x96xf32>
    %458 = arith.addf %453, %457 : vector<64x96xf32>
    %459 = vector.extract_strided_slice %432 {offsets = [1, 0, 0, 0], sizes = [1, 1, 32, 96], strides = [1, 1, 1, 1]} : vector<2x2x32x96xf32> to vector<1x1x32x96xf32>
    %460 = vector.shape_cast %459 : vector<1x1x32x96xf32> to vector<32x96xf32>
    %cst_101 = arith.constant dense<0.000000e+00> : vector<64x96xf32>
    %461 = tpu.matmul %429, %460, %cst_101 {dimension_numbers = #tpu.dot_dimension_numbers<[1], [0], [0], [1], [0, 0, 1, 1], [], []>} : vector<64x32xf32>, vector<32x96xf32>, vector<64x96xf32> -> vector<64x96xf32>
    %462 = vector.extract_strided_slice %432 {offsets = [1, 1, 0, 0], sizes = [1, 1, 32, 96], strides = [1, 1, 1, 1]} : vector<2x2x32x96xf32> to vector<1x1x32x96xf32>
    %463 = vector.shape_cast %462 : vector<1x1x32x96xf32> to vector<32x96xf32>
    %cst_102 = arith.constant dense<0.000000e+00> : vector<64x96xf32>
    %464 = tpu.matmul %431, %463, %cst_102 {dimension_numbers = #tpu.dot_dimension_numbers<[1], [0], [0], [1], [0, 0, 1, 1], [], []>} : vector<64x32xf32>, vector<32x96xf32>, vector<64x96xf32> -> vector<64x96xf32>
    %465 = arith.addf %461, %464 : vector<64x96xf32>
    %466 = vector.extract_strided_slice %443 {offsets = [1, 0], sizes = [1, 96], strides = [1, 1]} : vector<2x96xf32> to vector<1x96xf32>
    %467 = vector.shape_cast %466 : vector<1x96xf32> to vector<96xf32>
    %468 = vector.shape_cast %467 : vector<96xf32> to vector<1x96xf32>
    %469 = vector.broadcast %468 : vector<1x96xf32> to vector<64x96xf32>
    %470 = arith.addf %465, %469 : vector<64x96xf32>
    %471 = vector.extract_strided_slice %458 {offsets = [0, 0], sizes = [8, 96], strides = [1, 1]} : vector<64x96xf32> to vector<8x96xf32>
    %472 = vector.extract_strided_slice %470 {offsets = [56, 0], sizes = [8, 96], strides = [1, 1]} : vector<64x96xf32> to vector<8x96xf32>
    %473 = vector.shape_cast %471 : vector<8x96xf32> to vector<1x8x96xf32>
    %474 = vector.shape_cast %472 : vector<8x96xf32> to vector<1x8x96xf32>
    %475 = tpu.concatenate %473, %474 in 0 : vector<1x8x96xf32>, vector<1x8x96xf32> -> vector<2x8x96xf32>
    %476 = vector.extract_strided_slice %458 {offsets = [8, 0], sizes = [8, 96], strides = [1, 1]} : vector<64x96xf32> to vector<8x96xf32>
    %477 = vector.extract_strided_slice %470 {offsets = [48, 0], sizes = [8, 96], strides = [1, 1]} : vector<64x96xf32> to vector<8x96xf32>
    %478 = vector.shape_cast %476 : vector<8x96xf32> to vector<1x8x96xf32>
    %479 = vector.shape_cast %477 : vector<8x96xf32> to vector<1x8x96xf32>
    %480 = tpu.concatenate %478, %479 in 0 : vector<1x8x96xf32>, vector<1x8x96xf32> -> vector<2x8x96xf32>
    %481 = vector.extract_strided_slice %458 {offsets = [16, 0], sizes = [8, 96], strides = [1, 1]} : vector<64x96xf32> to vector<8x96xf32>
    %482 = vector.extract_strided_slice %470 {offsets = [40, 0], sizes = [8, 96], strides = [1, 1]} : vector<64x96xf32> to vector<8x96xf32>
    %483 = vector.shape_cast %481 : vector<8x96xf32> to vector<1x8x96xf32>
    %484 = vector.shape_cast %482 : vector<8x96xf32> to vector<1x8x96xf32>
    %485 = tpu.concatenate %483, %484 in 0 : vector<1x8x96xf32>, vector<1x8x96xf32> -> vector<2x8x96xf32>
    %486 = vector.extract_strided_slice %458 {offsets = [24, 0], sizes = [8, 96], strides = [1, 1]} : vector<64x96xf32> to vector<8x96xf32>
    %487 = vector.extract_strided_slice %470 {offsets = [32, 0], sizes = [8, 96], strides = [1, 1]} : vector<64x96xf32> to vector<8x96xf32>
    %488 = vector.shape_cast %486 : vector<8x96xf32> to vector<1x8x96xf32>
    %489 = vector.shape_cast %487 : vector<8x96xf32> to vector<1x8x96xf32>
    %490 = tpu.concatenate %488, %489 in 0 : vector<1x8x96xf32>, vector<1x8x96xf32> -> vector<2x8x96xf32>
    %491 = vector.extract_strided_slice %458 {offsets = [32, 0], sizes = [8, 96], strides = [1, 1]} : vector<64x96xf32> to vector<8x96xf32>
    %492 = vector.extract_strided_slice %470 {offsets = [24, 0], sizes = [8, 96], strides = [1, 1]} : vector<64x96xf32> to vector<8x96xf32>
    %493 = vector.shape_cast %491 : vector<8x96xf32> to vector<1x8x96xf32>
    %494 = vector.shape_cast %492 : vector<8x96xf32> to vector<1x8x96xf32>
    %495 = tpu.concatenate %493, %494 in 0 : vector<1x8x96xf32>, vector<1x8x96xf32> -> vector<2x8x96xf32>
    %496 = vector.extract_strided_slice %458 {offsets = [40, 0], sizes = [8, 96], strides = [1, 1]} : vector<64x96xf32> to vector<8x96xf32>
    %497 = vector.extract_strided_slice %470 {offsets = [16, 0], sizes = [8, 96], strides = [1, 1]} : vector<64x96xf32> to vector<8x96xf32>
    %498 = vector.shape_cast %496 : vector<8x96xf32> to vector<1x8x96xf32>
    %499 = vector.shape_cast %497 : vector<8x96xf32> to vector<1x8x96xf32>
    %500 = tpu.concatenate %498, %499 in 0 : vector<1x8x96xf32>, vector<1x8x96xf32> -> vector<2x8x96xf32>
    %501 = vector.extract_strided_slice %458 {offsets = [48, 0], sizes = [8, 96], strides = [1, 1]} : vector<64x96xf32> to vector<8x96xf32>
    %502 = vector.extract_strided_slice %470 {offsets = [8, 0], sizes = [8, 96], strides = [1, 1]} : vector<64x96xf32> to vector<8x96xf32>
    %503 = vector.shape_cast %501 : vector<8x96xf32> to vector<1x8x96xf32>
    %504 = vector.shape_cast %502 : vector<8x96xf32> to vector<1x8x96xf32>
    %505 = tpu.concatenate %503, %504 in 0 : vector<1x8x96xf32>, vector<1x8x96xf32> -> vector<2x8x96xf32>
    %506 = vector.extract_strided_slice %458 {offsets = [56, 0], sizes = [8, 96], strides = [1, 1]} : vector<64x96xf32> to vector<8x96xf32>
    %507 = vector.extract_strided_slice %470 {offsets = [0, 0], sizes = [8, 96], strides = [1, 1]} : vector<64x96xf32> to vector<8x96xf32>
    %508 = vector.shape_cast %506 : vector<8x96xf32> to vector<1x8x96xf32>
    %509 = vector.shape_cast %507 : vector<8x96xf32> to vector<1x8x96xf32>
    %510 = tpu.concatenate %508, %509 in 0 : vector<1x8x96xf32>, vector<1x8x96xf32> -> vector<2x8x96xf32>
    %cst_103 = arith.constant 0.000000e+00 : f32
    %511 = vector.broadcast %cst_103 : f32 to vector<2x8x32xf32>
    %cst_104 = arith.constant dense<0.000000e+00> : vector<2x8x96xf32>
    %512 = tpu.matmul %511, %433, %cst_104 {dimension_numbers = #tpu.dot_dimension_numbers<[2], [1], [1], [2], [0, 0, 0, 1, 1, 2], [0], [0]>} : vector<2x8x32xf32>, vector<2x32x96xf32>, vector<2x8x96xf32> -> vector<2x8x96xf32>
    %513 = vector.extract_strided_slice %475 {offsets = [0, 0, 0], sizes = [2, 8, 64], strides = [1, 1, 1]} : vector<2x8x96xf32> to vector<2x8x64xf32>
    %514 = vector.extract_strided_slice %512 {offsets = [0, 0, 0], sizes = [2, 8, 64], strides = [1, 1, 1]} : vector<2x8x96xf32> to vector<2x8x64xf32>
    %515 = arith.addf %513, %514 : vector<2x8x64xf32>
    %516 = arith.negf %515 : vector<2x8x64xf32>
    %517 = math.exp %516 : vector<2x8x64xf32>
    %cst_105 = arith.constant 1.000000e+00 : f32
    %518 = vector.broadcast %cst_105 : f32 to vector<2x8x64xf32>
    %519 = arith.addf %518, %517 : vector<2x8x64xf32>
    %520 = arith.divf %518, %519 : vector<2x8x64xf32>
    %521 = vector.extract_strided_slice %520 {offsets = [0, 0, 0], sizes = [2, 8, 32], strides = [1, 1, 1]} : vector<2x8x64xf32> to vector<2x8x32xf32>
    %522 = vector.extract_strided_slice %520 {offsets = [0, 0, 32], sizes = [2, 8, 32], strides = [1, 1, 1]} : vector<2x8x64xf32> to vector<2x8x32xf32>
    %523 = vector.extract_strided_slice %475 {offsets = [0, 0, 64], sizes = [2, 8, 32], strides = [1, 1, 1]} : vector<2x8x96xf32> to vector<2x8x32xf32>
    %524 = vector.extract_strided_slice %512 {offsets = [0, 0, 64], sizes = [2, 8, 32], strides = [1, 1, 1]} : vector<2x8x96xf32> to vector<2x8x32xf32>
    %525 = arith.addf %524, %446 : vector<2x8x32xf32>
    %526 = arith.mulf %521, %525 : vector<2x8x32xf32>
    %527 = arith.addf %523, %526 : vector<2x8x32xf32>
    %528 = math.tanh %527 : vector<2x8x32xf32>
    %529 = arith.subf %511, %528 : vector<2x8x32xf32>
    %530 = arith.mulf %522, %529 : vector<2x8x32xf32>
    %531 = arith.addf %528, %530 : vector<2x8x32xf32>
    %532 = arith.subf %531, %511 : vector<2x8x32xf32>
    %533 = arith.mulf %37, %532 : vector<2x8x32xf32>
    %534 = arith.addf %511, %533 : vector<2x8x32xf32>
    %535 = arith.mulf %37, %534 : vector<2x8x32xf32>
    %536 = vector.extract_strided_slice %535 {offsets = [0, 0, 0], sizes = [1, 8, 32], strides = [1, 1, 1]} : vector<2x8x32xf32> to vector<1x8x32xf32>
    %537 = vector.shape_cast %536 : vector<1x8x32xf32> to vector<8x32xf32>
    %c0_106 = arith.constant 0 : index
    %c0_107 = arith.constant 0 : index
    %c0_108 = arith.constant 0 : index
    %538 = vector.load %arg13[%c0_106, %c0_107, %c0_108] : memref<2x64x32xf32, #tpu.memory_space<vmem>>, vector<1x8x32xf32>
    %539 = vector.shape_cast %538 : vector<1x8x32xf32> to vector<8x32xf32>
    %540 = vector.shape_cast %537 : vector<8x32xf32> to vector<1x8x32xf32>
    tpu.vector_store %arg13[%c0_106, %c0_107, %c0_108], %540 {strides = array<i32>} : memref<2x64x32xf32, #tpu.memory_space<vmem>>, vector<1x8x32xf32>,
    %541 = vector.extract_strided_slice %535 {offsets = [1, 0, 0], sizes = [1, 8, 32], strides = [1, 1, 1]} : vector<2x8x32xf32> to vector<1x8x32xf32>
    %542 = vector.shape_cast %541 : vector<1x8x32xf32> to vector<8x32xf32>
    %c1_109 = arith.constant 1 : index
    %c56_110 = arith.constant 56 : index
    %c0_111 = arith.constant 0 : index
    %543 = vector.load %arg13[%c1_109, %c56_110, %c0_111] : memref<2x64x32xf32, #tpu.memory_space<vmem>>, vector<1x8x32xf32>
    %544 = vector.shape_cast %543 : vector<1x8x32xf32> to vector<8x32xf32>
    %545 = vector.shape_cast %542 : vector<8x32xf32> to vector<1x8x32xf32>
    tpu.vector_store %arg13[%c1_109, %c56_110, %c0_111], %545 {strides = array<i32>} : memref<2x64x32xf32, #tpu.memory_space<vmem>>, vector<1x8x32xf32>,
    %cst_112 = arith.constant dense<0.000000e+00> : vector<2x8x96xf32>
    %546 = tpu.matmul %534, %433, %cst_112 {dimension_numbers = #tpu.dot_dimension_numbers<[2], [1], [1], [2], [0, 0, 0, 1, 1, 2], [0], [0]>} : vector<2x8x32xf32>, vector<2x32x96xf32>, vector<2x8x96xf32> -> vector<2x8x96xf32>
    %547 = vector.extract_strided_slice %480 {offsets = [0, 0, 0], sizes = [2, 8, 64], strides = [1, 1, 1]} : vector<2x8x96xf32> to vector<2x8x64xf32>
    %548 = vector.extract_strided_slice %546 {offsets = [0, 0, 0], sizes = [2, 8, 64], strides = [1, 1, 1]} : vector<2x8x96xf32> to vector<2x8x64xf32>
    %549 = arith.addf %547, %548 : vector<2x8x64xf32>
    %550 = arith.negf %549 : vector<2x8x64xf32>
    %551 = math.exp %550 : vector<2x8x64xf32>
    %cst_113 = arith.constant 1.000000e+00 : f32
    %552 = vector.broadcast %cst_113 : f32 to vector<2x8x64xf32>
    %553 = arith.addf %552, %551 : vector<2x8x64xf32>
    %554 = arith.divf %552, %553 : vector<2x8x64xf32>
    %555 = vector.extract_strided_slice %554 {offsets = [0, 0, 0], sizes = [2, 8, 32], strides = [1, 1, 1]} : vector<2x8x64xf32> to vector<2x8x32xf32>
    %556 = vector.extract_strided_slice %554 {offsets = [0, 0, 32], sizes = [2, 8, 32], strides = [1, 1, 1]} : vector<2x8x64xf32> to vector<2x8x32xf32>
    %557 = vector.extract_strided_slice %480 {offsets = [0, 0, 64], sizes = [2, 8, 32], strides = [1, 1, 1]} : vector<2x8x96xf32> to vector<2x8x32xf32>
    %558 = vector.extract_strided_slice %546 {offsets = [0, 0, 64], sizes = [2, 8, 32], strides = [1, 1, 1]} : vector<2x8x96xf32> to vector<2x8x32xf32>
    %559 = arith.addf %558, %446 : vector<2x8x32xf32>
    %560 = arith.mulf %555, %559 : vector<2x8x32xf32>
    %561 = arith.addf %557, %560 : vector<2x8x32xf32>
    %562 = math.tanh %561 : vector<2x8x32xf32>
    %563 = arith.subf %534, %562 : vector<2x8x32xf32>
    %564 = arith.mulf %556, %563 : vector<2x8x32xf32>
    %565 = arith.addf %562, %564 : vector<2x8x32xf32>
    %566 = arith.subf %565, %534 : vector<2x8x32xf32>
    %567 = arith.mulf %42, %566 : vector<2x8x32xf32>
    %568 = arith.addf %534, %567 : vector<2x8x32xf32>
    %569 = arith.mulf %42, %568 : vector<2x8x32xf32>
    %570 = vector.extract_strided_slice %569 {offsets = [0, 0, 0], sizes = [1, 8, 32], strides = [1, 1, 1]} : vector<2x8x32xf32> to vector<1x8x32xf32>
    %571 = vector.shape_cast %570 : vector<1x8x32xf32> to vector<8x32xf32>
    %c0_114 = arith.constant 0 : index
    %c8_115 = arith.constant 8 : index
    %c0_116 = arith.constant 0 : index
    %572 = vector.load %arg13[%c0_114, %c8_115, %c0_116] : memref<2x64x32xf32, #tpu.memory_space<vmem>>, vector<1x8x32xf32>
    %573 = vector.shape_cast %572 : vector<1x8x32xf32> to vector<8x32xf32>
    %574 = vector.shape_cast %571 : vector<8x32xf32> to vector<1x8x32xf32>
    tpu.vector_store %arg13[%c0_114, %c8_115, %c0_116], %574 {strides = array<i32>} : memref<2x64x32xf32, #tpu.memory_space<vmem>>, vector<1x8x32xf32>,
    %575 = vector.extract_strided_slice %569 {offsets = [1, 0, 0], sizes = [1, 8, 32], strides = [1, 1, 1]} : vector<2x8x32xf32> to vector<1x8x32xf32>
    %576 = vector.shape_cast %575 : vector<1x8x32xf32> to vector<8x32xf32>
    %c1_117 = arith.constant 1 : index
    %c48_118 = arith.constant 48 : index
    %c0_119 = arith.constant 0 : index
    %577 = vector.load %arg13[%c1_117, %c48_118, %c0_119] : memref<2x64x32xf32, #tpu.memory_space<vmem>>, vector<1x8x32xf32>
    %578 = vector.shape_cast %577 : vector<1x8x32xf32> to vector<8x32xf32>
    %579 = vector.shape_cast %576 : vector<8x32xf32> to vector<1x8x32xf32>
    tpu.vector_store %arg13[%c1_117, %c48_118, %c0_119], %579 {strides = array<i32>} : memref<2x64x32xf32, #tpu.memory_space<vmem>>, vector<1x8x32xf32>,
    %cst_120 = arith.constant dense<0.000000e+00> : vector<2x8x96xf32>
    %580 = tpu.matmul %568, %433, %cst_120 {dimension_numbers = #tpu.dot_dimension_numbers<[2], [1], [1], [2], [0, 0, 0, 1, 1, 2], [0], [0]>} : vector<2x8x32xf32>, vector<2x32x96xf32>, vector<2x8x96xf32> -> vector<2x8x96xf32>
    %581 = vector.extract_strided_slice %485 {offsets = [0, 0, 0], sizes = [2, 8, 64], strides = [1, 1, 1]} : vector<2x8x96xf32> to vector<2x8x64xf32>
    %582 = vector.extract_strided_slice %580 {offsets = [0, 0, 0], sizes = [2, 8, 64], strides = [1, 1, 1]} : vector<2x8x96xf32> to vector<2x8x64xf32>
    %583 = arith.addf %581, %582 : vector<2x8x64xf32>
    %584 = arith.negf %583 : vector<2x8x64xf32>
    %585 = math.exp %584 : vector<2x8x64xf32>
    %cst_121 = arith.constant 1.000000e+00 : f32
    %586 = vector.broadcast %cst_121 : f32 to vector<2x8x64xf32>
    %587 = arith.addf %586, %585 : vector<2x8x64xf32>
    %588 = arith.divf %586, %587 : vector<2x8x64xf32>
    %589 = vector.extract_strided_slice %588 {offsets = [0, 0, 0], sizes = [2, 8, 32], strides = [1, 1, 1]} : vector<2x8x64xf32> to vector<2x8x32xf32>
    %590 = vector.extract_strided_slice %588 {offsets = [0, 0, 32], sizes = [2, 8, 32], strides = [1, 1, 1]} : vector<2x8x64xf32> to vector<2x8x32xf32>
    %591 = vector.extract_strided_slice %485 {offsets = [0, 0, 64], sizes = [2, 8, 32], strides = [1, 1, 1]} : vector<2x8x96xf32> to vector<2x8x32xf32>
    %592 = vector.extract_strided_slice %580 {offsets = [0, 0, 64], sizes = [2, 8, 32], strides = [1, 1, 1]} : vector<2x8x96xf32> to vector<2x8x32xf32>
    %593 = arith.addf %592, %446 : vector<2x8x32xf32>
    %594 = arith.mulf %589, %593 : vector<2x8x32xf32>
    %595 = arith.addf %591, %594 : vector<2x8x32xf32>
    %596 = math.tanh %595 : vector<2x8x32xf32>
    %597 = arith.subf %568, %596 : vector<2x8x32xf32>
    %598 = arith.mulf %590, %597 : vector<2x8x32xf32>
    %599 = arith.addf %596, %598 : vector<2x8x32xf32>
    %600 = arith.subf %599, %568 : vector<2x8x32xf32>
    %601 = arith.mulf %47, %600 : vector<2x8x32xf32>
    %602 = arith.addf %568, %601 : vector<2x8x32xf32>
    %603 = arith.mulf %47, %602 : vector<2x8x32xf32>
    %604 = vector.extract_strided_slice %603 {offsets = [0, 0, 0], sizes = [1, 8, 32], strides = [1, 1, 1]} : vector<2x8x32xf32> to vector<1x8x32xf32>
    %605 = vector.shape_cast %604 : vector<1x8x32xf32> to vector<8x32xf32>
    %c0_122 = arith.constant 0 : index
    %c16_123 = arith.constant 16 : index
    %c0_124 = arith.constant 0 : index
    %606 = vector.load %arg13[%c0_122, %c16_123, %c0_124] : memref<2x64x32xf32, #tpu.memory_space<vmem>>, vector<1x8x32xf32>
    %607 = vector.shape_cast %606 : vector<1x8x32xf32> to vector<8x32xf32>
    %608 = vector.shape_cast %605 : vector<8x32xf32> to vector<1x8x32xf32>
    tpu.vector_store %arg13[%c0_122, %c16_123, %c0_124], %608 {strides = array<i32>} : memref<2x64x32xf32, #tpu.memory_space<vmem>>, vector<1x8x32xf32>,
    %609 = vector.extract_strided_slice %603 {offsets = [1, 0, 0], sizes = [1, 8, 32], strides = [1, 1, 1]} : vector<2x8x32xf32> to vector<1x8x32xf32>
    %610 = vector.shape_cast %609 : vector<1x8x32xf32> to vector<8x32xf32>
    %c1_125 = arith.constant 1 : index
    %c40_126 = arith.constant 40 : index
    %c0_127 = arith.constant 0 : index
    %611 = vector.load %arg13[%c1_125, %c40_126, %c0_127] : memref<2x64x32xf32, #tpu.memory_space<vmem>>, vector<1x8x32xf32>
    %612 = vector.shape_cast %611 : vector<1x8x32xf32> to vector<8x32xf32>
    %613 = vector.shape_cast %610 : vector<8x32xf32> to vector<1x8x32xf32>
    tpu.vector_store %arg13[%c1_125, %c40_126, %c0_127], %613 {strides = array<i32>} : memref<2x64x32xf32, #tpu.memory_space<vmem>>, vector<1x8x32xf32>,
    %cst_128 = arith.constant dense<0.000000e+00> : vector<2x8x96xf32>
    %614 = tpu.matmul %602, %433, %cst_128 {dimension_numbers = #tpu.dot_dimension_numbers<[2], [1], [1], [2], [0, 0, 0, 1, 1, 2], [0], [0]>} : vector<2x8x32xf32>, vector<2x32x96xf32>, vector<2x8x96xf32> -> vector<2x8x96xf32>
    %615 = vector.extract_strided_slice %490 {offsets = [0, 0, 0], sizes = [2, 8, 64], strides = [1, 1, 1]} : vector<2x8x96xf32> to vector<2x8x64xf32>
    %616 = vector.extract_strided_slice %614 {offsets = [0, 0, 0], sizes = [2, 8, 64], strides = [1, 1, 1]} : vector<2x8x96xf32> to vector<2x8x64xf32>
    %617 = arith.addf %615, %616 : vector<2x8x64xf32>
    %618 = arith.negf %617 : vector<2x8x64xf32>
    %619 = math.exp %618 : vector<2x8x64xf32>
    %cst_129 = arith.constant 1.000000e+00 : f32
    %620 = vector.broadcast %cst_129 : f32 to vector<2x8x64xf32>
    %621 = arith.addf %620, %619 : vector<2x8x64xf32>
    %622 = arith.divf %620, %621 : vector<2x8x64xf32>
    %623 = vector.extract_strided_slice %622 {offsets = [0, 0, 0], sizes = [2, 8, 32], strides = [1, 1, 1]} : vector<2x8x64xf32> to vector<2x8x32xf32>
    %624 = vector.extract_strided_slice %622 {offsets = [0, 0, 32], sizes = [2, 8, 32], strides = [1, 1, 1]} : vector<2x8x64xf32> to vector<2x8x32xf32>
    %625 = vector.extract_strided_slice %490 {offsets = [0, 0, 64], sizes = [2, 8, 32], strides = [1, 1, 1]} : vector<2x8x96xf32> to vector<2x8x32xf32>
    %626 = vector.extract_strided_slice %614 {offsets = [0, 0, 64], sizes = [2, 8, 32], strides = [1, 1, 1]} : vector<2x8x96xf32> to vector<2x8x32xf32>
    %627 = arith.addf %626, %446 : vector<2x8x32xf32>
    %628 = arith.mulf %623, %627 : vector<2x8x32xf32>
    %629 = arith.addf %625, %628 : vector<2x8x32xf32>
    %630 = math.tanh %629 : vector<2x8x32xf32>
    %631 = arith.subf %602, %630 : vector<2x8x32xf32>
    %632 = arith.mulf %624, %631 : vector<2x8x32xf32>
    %633 = arith.addf %630, %632 : vector<2x8x32xf32>
    %634 = arith.subf %633, %602 : vector<2x8x32xf32>
    %635 = arith.mulf %52, %634 : vector<2x8x32xf32>
    %636 = arith.addf %602, %635 : vector<2x8x32xf32>
    %637 = arith.mulf %52, %636 : vector<2x8x32xf32>
    %638 = vector.extract_strided_slice %637 {offsets = [0, 0, 0], sizes = [1, 8, 32], strides = [1, 1, 1]} : vector<2x8x32xf32> to vector<1x8x32xf32>
    %639 = vector.shape_cast %638 : vector<1x8x32xf32> to vector<8x32xf32>
    %c0_130 = arith.constant 0 : index
    %c24_131 = arith.constant 24 : index
    %c0_132 = arith.constant 0 : index
    %640 = vector.load %arg13[%c0_130, %c24_131, %c0_132] : memref<2x64x32xf32, #tpu.memory_space<vmem>>, vector<1x8x32xf32>
    %641 = vector.shape_cast %640 : vector<1x8x32xf32> to vector<8x32xf32>
    %642 = vector.shape_cast %639 : vector<8x32xf32> to vector<1x8x32xf32>
    tpu.vector_store %arg13[%c0_130, %c24_131, %c0_132], %642 {strides = array<i32>} : memref<2x64x32xf32, #tpu.memory_space<vmem>>, vector<1x8x32xf32>,
    %643 = vector.extract_strided_slice %637 {offsets = [1, 0, 0], sizes = [1, 8, 32], strides = [1, 1, 1]} : vector<2x8x32xf32> to vector<1x8x32xf32>
    %644 = vector.shape_cast %643 : vector<1x8x32xf32> to vector<8x32xf32>
    %c1_133 = arith.constant 1 : index
    %c32_134 = arith.constant 32 : index
    %c0_135 = arith.constant 0 : index
    %645 = vector.load %arg13[%c1_133, %c32_134, %c0_135] : memref<2x64x32xf32, #tpu.memory_space<vmem>>, vector<1x8x32xf32>
    %646 = vector.shape_cast %645 : vector<1x8x32xf32> to vector<8x32xf32>
    %647 = vector.shape_cast %644 : vector<8x32xf32> to vector<1x8x32xf32>
    tpu.vector_store %arg13[%c1_133, %c32_134, %c0_135], %647 {strides = array<i32>} : memref<2x64x32xf32, #tpu.memory_space<vmem>>, vector<1x8x32xf32>,
    %cst_136 = arith.constant dense<0.000000e+00> : vector<2x8x96xf32>
    %648 = tpu.matmul %636, %433, %cst_136 {dimension_numbers = #tpu.dot_dimension_numbers<[2], [1], [1], [2], [0, 0, 0, 1, 1, 2], [0], [0]>} : vector<2x8x32xf32>, vector<2x32x96xf32>, vector<2x8x96xf32> -> vector<2x8x96xf32>
    %649 = vector.extract_strided_slice %495 {offsets = [0, 0, 0], sizes = [2, 8, 64], strides = [1, 1, 1]} : vector<2x8x96xf32> to vector<2x8x64xf32>
    %650 = vector.extract_strided_slice %648 {offsets = [0, 0, 0], sizes = [2, 8, 64], strides = [1, 1, 1]} : vector<2x8x96xf32> to vector<2x8x64xf32>
    %651 = arith.addf %649, %650 : vector<2x8x64xf32>
    %652 = arith.negf %651 : vector<2x8x64xf32>
    %653 = math.exp %652 : vector<2x8x64xf32>
    %cst_137 = arith.constant 1.000000e+00 : f32
    %654 = vector.broadcast %cst_137 : f32 to vector<2x8x64xf32>
    %655 = arith.addf %654, %653 : vector<2x8x64xf32>
    %656 = arith.divf %654, %655 : vector<2x8x64xf32>
    %657 = vector.extract_strided_slice %656 {offsets = [0, 0, 0], sizes = [2, 8, 32], strides = [1, 1, 1]} : vector<2x8x64xf32> to vector<2x8x32xf32>
    %658 = vector.extract_strided_slice %656 {offsets = [0, 0, 32], sizes = [2, 8, 32], strides = [1, 1, 1]} : vector<2x8x64xf32> to vector<2x8x32xf32>
    %659 = vector.extract_strided_slice %495 {offsets = [0, 0, 64], sizes = [2, 8, 32], strides = [1, 1, 1]} : vector<2x8x96xf32> to vector<2x8x32xf32>
    %660 = vector.extract_strided_slice %648 {offsets = [0, 0, 64], sizes = [2, 8, 32], strides = [1, 1, 1]} : vector<2x8x96xf32> to vector<2x8x32xf32>
    %661 = arith.addf %660, %446 : vector<2x8x32xf32>
    %662 = arith.mulf %657, %661 : vector<2x8x32xf32>
    %663 = arith.addf %659, %662 : vector<2x8x32xf32>
    %664 = math.tanh %663 : vector<2x8x32xf32>
    %665 = arith.subf %636, %664 : vector<2x8x32xf32>
    %666 = arith.mulf %658, %665 : vector<2x8x32xf32>
    %667 = arith.addf %664, %666 : vector<2x8x32xf32>
    %668 = arith.subf %667, %636 : vector<2x8x32xf32>
    %669 = arith.mulf %57, %668 : vector<2x8x32xf32>
    %670 = arith.addf %636, %669 : vector<2x8x32xf32>
    %671 = arith.mulf %57, %670 : vector<2x8x32xf32>
    %672 = vector.extract_strided_slice %671 {offsets = [0, 0, 0], sizes = [1, 8, 32], strides = [1, 1, 1]} : vector<2x8x32xf32> to vector<1x8x32xf32>
    %673 = vector.shape_cast %672 : vector<1x8x32xf32> to vector<8x32xf32>
    %c0_138 = arith.constant 0 : index
    %c32_139 = arith.constant 32 : index
    %c0_140 = arith.constant 0 : index
    %674 = vector.load %arg13[%c0_138, %c32_139, %c0_140] : memref<2x64x32xf32, #tpu.memory_space<vmem>>, vector<1x8x32xf32>
    %675 = vector.shape_cast %674 : vector<1x8x32xf32> to vector<8x32xf32>
    %676 = vector.shape_cast %673 : vector<8x32xf32> to vector<1x8x32xf32>
    tpu.vector_store %arg13[%c0_138, %c32_139, %c0_140], %676 {strides = array<i32>} : memref<2x64x32xf32, #tpu.memory_space<vmem>>, vector<1x8x32xf32>,
    %677 = vector.extract_strided_slice %671 {offsets = [1, 0, 0], sizes = [1, 8, 32], strides = [1, 1, 1]} : vector<2x8x32xf32> to vector<1x8x32xf32>
    %678 = vector.shape_cast %677 : vector<1x8x32xf32> to vector<8x32xf32>
    %c1_141 = arith.constant 1 : index
    %c24_142 = arith.constant 24 : index
    %c0_143 = arith.constant 0 : index
    %679 = vector.load %arg13[%c1_141, %c24_142, %c0_143] : memref<2x64x32xf32, #tpu.memory_space<vmem>>, vector<1x8x32xf32>
    %680 = vector.shape_cast %679 : vector<1x8x32xf32> to vector<8x32xf32>
    %681 = vector.shape_cast %678 : vector<8x32xf32> to vector<1x8x32xf32>
    tpu.vector_store %arg13[%c1_141, %c24_142, %c0_143], %681 {strides = array<i32>} : memref<2x64x32xf32, #tpu.memory_space<vmem>>, vector<1x8x32xf32>,
    %cst_144 = arith.constant dense<0.000000e+00> : vector<2x8x96xf32>
    %682 = tpu.matmul %670, %433, %cst_144 {dimension_numbers = #tpu.dot_dimension_numbers<[2], [1], [1], [2], [0, 0, 0, 1, 1, 2], [0], [0]>} : vector<2x8x32xf32>, vector<2x32x96xf32>, vector<2x8x96xf32> -> vector<2x8x96xf32>
    %683 = vector.extract_strided_slice %500 {offsets = [0, 0, 0], sizes = [2, 8, 64], strides = [1, 1, 1]} : vector<2x8x96xf32> to vector<2x8x64xf32>
    %684 = vector.extract_strided_slice %682 {offsets = [0, 0, 0], sizes = [2, 8, 64], strides = [1, 1, 1]} : vector<2x8x96xf32> to vector<2x8x64xf32>
    %685 = arith.addf %683, %684 : vector<2x8x64xf32>
    %686 = arith.negf %685 : vector<2x8x64xf32>
    %687 = math.exp %686 : vector<2x8x64xf32>
    %cst_145 = arith.constant 1.000000e+00 : f32
    %688 = vector.broadcast %cst_145 : f32 to vector<2x8x64xf32>
    %689 = arith.addf %688, %687 : vector<2x8x64xf32>
    %690 = arith.divf %688, %689 : vector<2x8x64xf32>
    %691 = vector.extract_strided_slice %690 {offsets = [0, 0, 0], sizes = [2, 8, 32], strides = [1, 1, 1]} : vector<2x8x64xf32> to vector<2x8x32xf32>
    %692 = vector.extract_strided_slice %690 {offsets = [0, 0, 32], sizes = [2, 8, 32], strides = [1, 1, 1]} : vector<2x8x64xf32> to vector<2x8x32xf32>
    %693 = vector.extract_strided_slice %500 {offsets = [0, 0, 64], sizes = [2, 8, 32], strides = [1, 1, 1]} : vector<2x8x96xf32> to vector<2x8x32xf32>
    %694 = vector.extract_strided_slice %682 {offsets = [0, 0, 64], sizes = [2, 8, 32], strides = [1, 1, 1]} : vector<2x8x96xf32> to vector<2x8x32xf32>
    %695 = arith.addf %694, %446 : vector<2x8x32xf32>
    %696 = arith.mulf %691, %695 : vector<2x8x32xf32>
    %697 = arith.addf %693, %696 : vector<2x8x32xf32>
    %698 = math.tanh %697 : vector<2x8x32xf32>
    %699 = arith.subf %670, %698 : vector<2x8x32xf32>
    %700 = arith.mulf %692, %699 : vector<2x8x32xf32>
    %701 = arith.addf %698, %700 : vector<2x8x32xf32>
    %702 = arith.subf %701, %670 : vector<2x8x32xf32>
    %703 = arith.mulf %62, %702 : vector<2x8x32xf32>
    %704 = arith.addf %670, %703 : vector<2x8x32xf32>
    %705 = arith.mulf %62, %704 : vector<2x8x32xf32>
    %706 = vector.extract_strided_slice %705 {offsets = [0, 0, 0], sizes = [1, 8, 32], strides = [1, 1, 1]} : vector<2x8x32xf32> to vector<1x8x32xf32>
    %707 = vector.shape_cast %706 : vector<1x8x32xf32> to vector<8x32xf32>
    %c0_146 = arith.constant 0 : index
    %c40_147 = arith.constant 40 : index
    %c0_148 = arith.constant 0 : index
    %708 = vector.load %arg13[%c0_146, %c40_147, %c0_148] : memref<2x64x32xf32, #tpu.memory_space<vmem>>, vector<1x8x32xf32>
    %709 = vector.shape_cast %708 : vector<1x8x32xf32> to vector<8x32xf32>
    %710 = vector.shape_cast %707 : vector<8x32xf32> to vector<1x8x32xf32>
    tpu.vector_store %arg13[%c0_146, %c40_147, %c0_148], %710 {strides = array<i32>} : memref<2x64x32xf32, #tpu.memory_space<vmem>>, vector<1x8x32xf32>,
    %711 = vector.extract_strided_slice %705 {offsets = [1, 0, 0], sizes = [1, 8, 32], strides = [1, 1, 1]} : vector<2x8x32xf32> to vector<1x8x32xf32>
    %712 = vector.shape_cast %711 : vector<1x8x32xf32> to vector<8x32xf32>
    %c1_149 = arith.constant 1 : index
    %c16_150 = arith.constant 16 : index
    %c0_151 = arith.constant 0 : index
    %713 = vector.load %arg13[%c1_149, %c16_150, %c0_151] : memref<2x64x32xf32, #tpu.memory_space<vmem>>, vector<1x8x32xf32>
    %714 = vector.shape_cast %713 : vector<1x8x32xf32> to vector<8x32xf32>
    %715 = vector.shape_cast %712 : vector<8x32xf32> to vector<1x8x32xf32>
    tpu.vector_store %arg13[%c1_149, %c16_150, %c0_151], %715 {strides = array<i32>} : memref<2x64x32xf32, #tpu.memory_space<vmem>>, vector<1x8x32xf32>,
    %cst_152 = arith.constant dense<0.000000e+00> : vector<2x8x96xf32>
    %716 = tpu.matmul %704, %433, %cst_152 {dimension_numbers = #tpu.dot_dimension_numbers<[2], [1], [1], [2], [0, 0, 0, 1, 1, 2], [0], [0]>} : vector<2x8x32xf32>, vector<2x32x96xf32>, vector<2x8x96xf32> -> vector<2x8x96xf32>
    %717 = vector.extract_strided_slice %505 {offsets = [0, 0, 0], sizes = [2, 8, 64], strides = [1, 1, 1]} : vector<2x8x96xf32> to vector<2x8x64xf32>
    %718 = vector.extract_strided_slice %716 {offsets = [0, 0, 0], sizes = [2, 8, 64], strides = [1, 1, 1]} : vector<2x8x96xf32> to vector<2x8x64xf32>
    %719 = arith.addf %717, %718 : vector<2x8x64xf32>
    %720 = arith.negf %719 : vector<2x8x64xf32>
    %721 = math.exp %720 : vector<2x8x64xf32>
    %cst_153 = arith.constant 1.000000e+00 : f32
    %722 = vector.broadcast %cst_153 : f32 to vector<2x8x64xf32>
    %723 = arith.addf %722, %721 : vector<2x8x64xf32>
    %724 = arith.divf %722, %723 : vector<2x8x64xf32>
    %725 = vector.extract_strided_slice %724 {offsets = [0, 0, 0], sizes = [2, 8, 32], strides = [1, 1, 1]} : vector<2x8x64xf32> to vector<2x8x32xf32>
    %726 = vector.extract_strided_slice %724 {offsets = [0, 0, 32], sizes = [2, 8, 32], strides = [1, 1, 1]} : vector<2x8x64xf32> to vector<2x8x32xf32>
    %727 = vector.extract_strided_slice %505 {offsets = [0, 0, 64], sizes = [2, 8, 32], strides = [1, 1, 1]} : vector<2x8x96xf32> to vector<2x8x32xf32>
    %728 = vector.extract_strided_slice %716 {offsets = [0, 0, 64], sizes = [2, 8, 32], strides = [1, 1, 1]} : vector<2x8x96xf32> to vector<2x8x32xf32>
    %729 = arith.addf %728, %446 : vector<2x8x32xf32>
    %730 = arith.mulf %725, %729 : vector<2x8x32xf32>
    %731 = arith.addf %727, %730 : vector<2x8x32xf32>
    %732 = math.tanh %731 : vector<2x8x32xf32>
    %733 = arith.subf %704, %732 : vector<2x8x32xf32>
    %734 = arith.mulf %726, %733 : vector<2x8x32xf32>
    %735 = arith.addf %732, %734 : vector<2x8x32xf32>
    %736 = arith.subf %735, %704 : vector<2x8x32xf32>
    %737 = arith.mulf %67, %736 : vector<2x8x32xf32>
    %738 = arith.addf %704, %737 : vector<2x8x32xf32>
    %739 = arith.mulf %67, %738 : vector<2x8x32xf32>
    %740 = vector.extract_strided_slice %739 {offsets = [0, 0, 0], sizes = [1, 8, 32], strides = [1, 1, 1]} : vector<2x8x32xf32> to vector<1x8x32xf32>
    %741 = vector.shape_cast %740 : vector<1x8x32xf32> to vector<8x32xf32>
    %c0_154 = arith.constant 0 : index
    %c48_155 = arith.constant 48 : index
    %c0_156 = arith.constant 0 : index
    %742 = vector.load %arg13[%c0_154, %c48_155, %c0_156] : memref<2x64x32xf32, #tpu.memory_space<vmem>>, vector<1x8x32xf32>
    %743 = vector.shape_cast %742 : vector<1x8x32xf32> to vector<8x32xf32>
    %744 = vector.shape_cast %741 : vector<8x32xf32> to vector<1x8x32xf32>
    tpu.vector_store %arg13[%c0_154, %c48_155, %c0_156], %744 {strides = array<i32>} : memref<2x64x32xf32, #tpu.memory_space<vmem>>, vector<1x8x32xf32>,
    %745 = vector.extract_strided_slice %739 {offsets = [1, 0, 0], sizes = [1, 8, 32], strides = [1, 1, 1]} : vector<2x8x32xf32> to vector<1x8x32xf32>
    %746 = vector.shape_cast %745 : vector<1x8x32xf32> to vector<8x32xf32>
    %c1_157 = arith.constant 1 : index
    %c8_158 = arith.constant 8 : index
    %c0_159 = arith.constant 0 : index
    %747 = vector.load %arg13[%c1_157, %c8_158, %c0_159] : memref<2x64x32xf32, #tpu.memory_space<vmem>>, vector<1x8x32xf32>
    %748 = vector.shape_cast %747 : vector<1x8x32xf32> to vector<8x32xf32>
    %749 = vector.shape_cast %746 : vector<8x32xf32> to vector<1x8x32xf32>
    tpu.vector_store %arg13[%c1_157, %c8_158, %c0_159], %749 {strides = array<i32>} : memref<2x64x32xf32, #tpu.memory_space<vmem>>, vector<1x8x32xf32>,
    %cst_160 = arith.constant dense<0.000000e+00> : vector<2x8x96xf32>
    %750 = tpu.matmul %738, %433, %cst_160 {dimension_numbers = #tpu.dot_dimension_numbers<[2], [1], [1], [2], [0, 0, 0, 1, 1, 2], [0], [0]>} : vector<2x8x32xf32>, vector<2x32x96xf32>, vector<2x8x96xf32> -> vector<2x8x96xf32>
    %751 = vector.extract_strided_slice %510 {offsets = [0, 0, 0], sizes = [2, 8, 64], strides = [1, 1, 1]} : vector<2x8x96xf32> to vector<2x8x64xf32>
    %752 = vector.extract_strided_slice %750 {offsets = [0, 0, 0], sizes = [2, 8, 64], strides = [1, 1, 1]} : vector<2x8x96xf32> to vector<2x8x64xf32>
    %753 = arith.addf %751, %752 : vector<2x8x64xf32>
    %754 = arith.negf %753 : vector<2x8x64xf32>
    %755 = math.exp %754 : vector<2x8x64xf32>
    %cst_161 = arith.constant 1.000000e+00 : f32
    %756 = vector.broadcast %cst_161 : f32 to vector<2x8x64xf32>
    %757 = arith.addf %756, %755 : vector<2x8x64xf32>
    %758 = arith.divf %756, %757 : vector<2x8x64xf32>
    %759 = vector.extract_strided_slice %758 {offsets = [0, 0, 0], sizes = [2, 8, 32], strides = [1, 1, 1]} : vector<2x8x64xf32> to vector<2x8x32xf32>
    %760 = vector.extract_strided_slice %758 {offsets = [0, 0, 32], sizes = [2, 8, 32], strides = [1, 1, 1]} : vector<2x8x64xf32> to vector<2x8x32xf32>
    %761 = vector.extract_strided_slice %510 {offsets = [0, 0, 64], sizes = [2, 8, 32], strides = [1, 1, 1]} : vector<2x8x96xf32> to vector<2x8x32xf32>
    %762 = vector.extract_strided_slice %750 {offsets = [0, 0, 64], sizes = [2, 8, 32], strides = [1, 1, 1]} : vector<2x8x96xf32> to vector<2x8x32xf32>
    %763 = arith.addf %762, %446 : vector<2x8x32xf32>
    %764 = arith.mulf %759, %763 : vector<2x8x32xf32>
    %765 = arith.addf %761, %764 : vector<2x8x32xf32>
    %766 = math.tanh %765 : vector<2x8x32xf32>
    %767 = arith.subf %738, %766 : vector<2x8x32xf32>
    %768 = arith.mulf %760, %767 : vector<2x8x32xf32>
    %769 = arith.addf %766, %768 : vector<2x8x32xf32>
    %770 = arith.subf %769, %738 : vector<2x8x32xf32>
    %771 = arith.mulf %72, %770 : vector<2x8x32xf32>
    %772 = arith.addf %738, %771 : vector<2x8x32xf32>
    %773 = arith.mulf %72, %772 : vector<2x8x32xf32>
    %774 = vector.extract_strided_slice %773 {offsets = [0, 0, 0], sizes = [1, 8, 32], strides = [1, 1, 1]} : vector<2x8x32xf32> to vector<1x8x32xf32>
    %775 = vector.shape_cast %774 : vector<1x8x32xf32> to vector<8x32xf32>
    %c0_162 = arith.constant 0 : index
    %c56_163 = arith.constant 56 : index
    %c0_164 = arith.constant 0 : index
    %776 = vector.load %arg13[%c0_162, %c56_163, %c0_164] : memref<2x64x32xf32, #tpu.memory_space<vmem>>, vector<1x8x32xf32>
    %777 = vector.shape_cast %776 : vector<1x8x32xf32> to vector<8x32xf32>
    %778 = vector.shape_cast %775 : vector<8x32xf32> to vector<1x8x32xf32>
    tpu.vector_store %arg13[%c0_162, %c56_163, %c0_164], %778 {strides = array<i32>} : memref<2x64x32xf32, #tpu.memory_space<vmem>>, vector<1x8x32xf32>,
    %779 = vector.extract_strided_slice %773 {offsets = [1, 0, 0], sizes = [1, 8, 32], strides = [1, 1, 1]} : vector<2x8x32xf32> to vector<1x8x32xf32>
    %780 = vector.shape_cast %779 : vector<1x8x32xf32> to vector<8x32xf32>
    %c1_165 = arith.constant 1 : index
    %c0_166 = arith.constant 0 : index
    %c0_167 = arith.constant 0 : index
    %781 = vector.load %arg13[%c1_165, %c0_166, %c0_167] : memref<2x64x32xf32, #tpu.memory_space<vmem>>, vector<1x8x32xf32>
    %782 = vector.shape_cast %781 : vector<1x8x32xf32> to vector<8x32xf32>
    %783 = vector.shape_cast %780 : vector<8x32xf32> to vector<1x8x32xf32>
    tpu.vector_store %arg13[%c1_165, %c0_166, %c0_167], %783 {strides = array<i32>} : memref<2x64x32xf32, #tpu.memory_space<vmem>>, vector<1x8x32xf32>,
    %784 = vector.extract_strided_slice %772 {offsets = [0, 0, 0], sizes = [1, 8, 32], strides = [1, 1, 1]} : vector<2x8x32xf32> to vector<1x8x32xf32>
    %785 = vector.shape_cast %784 : vector<1x8x32xf32> to vector<8x32xf32>
    %c2 = arith.constant 2 : index
    %c0_168 = arith.constant 0 : index
    %c0_169 = arith.constant 0 : index
    %786 = vector.load %arg11[%c2, %c0_168, %c0_169] : memref<4x8x32xf32, #tpu.memory_space<vmem>>, vector<1x8x32xf32>
    %787 = vector.shape_cast %786 : vector<1x8x32xf32> to vector<8x32xf32>
    %788 = vector.shape_cast %785 : vector<8x32xf32> to vector<1x8x32xf32>
    tpu.vector_store %arg11[%c2, %c0_168, %c0_169], %788 {strides = array<i32>} : memref<4x8x32xf32, #tpu.memory_space<vmem>>, vector<1x8x32xf32>,
    %789 = vector.extract_strided_slice %772 {offsets = [1, 0, 0], sizes = [1, 8, 32], strides = [1, 1, 1]} : vector<2x8x32xf32> to vector<1x8x32xf32>
    %790 = vector.shape_cast %789 : vector<1x8x32xf32> to vector<8x32xf32>
    %c3 = arith.constant 3 : index
    %c0_170 = arith.constant 0 : index
    %c0_171 = arith.constant 0 : index
    %791 = vector.load %arg11[%c3, %c0_170, %c0_171] : memref<4x8x32xf32, #tpu.memory_space<vmem>>, vector<1x8x32xf32>
    %792 = vector.shape_cast %791 : vector<1x8x32xf32> to vector<8x32xf32>
    %793 = vector.shape_cast %790 : vector<8x32xf32> to vector<1x8x32xf32>
    tpu.vector_store %arg11[%c3, %c0_170, %c0_171], %793 {strides = array<i32>} : memref<4x8x32xf32, #tpu.memory_space<vmem>>, vector<1x8x32xf32>,
    %c0_172 = arith.constant 0 : index
    %c0_173 = arith.constant 0 : index
    %c0_174 = arith.constant 0 : index
    %794 = vector.load %arg13[%c0_172, %c0_173, %c0_174] : memref<2x64x32xf32, #tpu.memory_space<vmem>>, vector<1x64x32xf32>
    %795 = vector.shape_cast %794 : vector<1x64x32xf32> to vector<64x32xf32>
    %c1_175 = arith.constant 1 : index
    %c0_176 = arith.constant 0 : index
    %c0_177 = arith.constant 0 : index
    %796 = vector.load %arg13[%c1_175, %c0_176, %c0_177] : memref<2x64x32xf32, #tpu.memory_space<vmem>>, vector<1x64x32xf32>
    %797 = vector.shape_cast %796 : vector<1x64x32xf32> to vector<64x32xf32>
    %798 = arith.addf %795, %797 : vector<64x32xf32>
    %c0_178 = arith.constant 0 : index
    %c0_179 = arith.constant 0 : index
    %799 = vector.load %arg10[%c0_178, %c0_179] : memref<64x32xf32, #tpu.memory_space<vmem>>, vector<64x32xf32>
    tpu.vector_store %arg10[%c0_178, %c0_179], %798 {strides = array<i32>} : memref<64x32xf32, #tpu.memory_space<vmem>>, vector<64x32xf32>,
    return
  }
}

</mosaic_0001>

<bundles_post_ra>
// kernel: tpu_custom_call.1
= control target key start
LH: loop header
LB: loop body
LE: loop exit
PB: predicated region body
PF: predicated region fallthrough
CT: control target
= control target key end

     0   :  { %17 = vsyncpa [#allocation5], 0  ;;  %s7315_s0 = inlined_call_operand.vmem [shape: f32[64,16], index: 0, kind: input, shape index: {}]   ;;  %s7316_s1 = inlined_call_operand.vmem [shape: s32[8,1], index: 1, kind: input, shape index: {}]   ;;  %s7317_s2 = inlined_call_operand.vmem [shape: f32[2,1,16,96], index: 2, kind: input, shape index: {}]   ;;  %s7318_s3 = inlined_call_operand.vmem [shape: f32[2,32,96], index: 3, kind: input, shape index: {}]   ;;  %s7319_s4 = inlined_call_operand.vmem [shape: f32[2,1,96], index: 4, kind: input, shape index: {}]   ;;  %s7320_s5 = inlined_call_operand.vmem [shape: f32[2,1,96], index: 5, kind: input, shape index: {}]   ;;  %s7321_s6 = inlined_call_operand.hbm [shape: f32[2,2,32,96], index: 6, kind: input, shape index: {}]   ;;  %s7322_s7 = inlined_call_operand.hbm [shape: f32[2,32,96], index: 7, kind: input, shape index: {}]   ;;  %s7323_s8 = inlined_call_operand.vmem [shape: f32[2,1,96], index: 8, kind: input, shape index: {}]   ;;  %s7324_s9 = inlined_call_operand.vmem [shape: f32[2,1,96], index: 9, kind: input, shape index: {}]   ;;  %s7325_s10 = inlined_call_operand.vmem [shape: f32[64,32], index: 10, kind: output, shape index: {0}]   ;;  %s7326_s11 = inlined_call_operand.hbm [shape: f32[4,8,32], index: 11, kind: output, shape index: {1}]  }
   0x1   :  { %18 = vsyncpa [#allocation8], 0 }
   0x2   :  { %19 = vsyncpa [#allocation6], 0  ;;  %s6079_s17 = smov [#allocation4]   ;;  %s6007_s21 = scalar_lea.hbm %s7321_s6, 2048 }
   0x3   :  { %s37_s18 = sshll.u32 %s6079_s17, 4  ;;  %p6008_p0 = scmp.ne.s32.totalorder %s7321_s6, %s6007_s21  ;;  %s38_s18 = int_to_ptr.vmem [resolvable:$true] %s37_s18 }
   0x4   :  { %p6011_p1 = scmp.lt.u32.totalorder %s6007_s21, %s7321_s6 }
   0x6   :  { %p6013_p2 = pnand %p6011_p1, %p6008_p0 }
   0x8   :  { %6016 = shalt.err (!%p6013_p2)
}
   0x9   :  { %s6017_s26 = scalar_lea.vmem %s38_s18, 2048  ;;  %p6022_p4 = scmp.lt.s32.totalorder %s38_s18, %s38_s18 }
   0xa   :  { %p6018_p3 = scmp.ne.s32.totalorder %s38_s18, %s6017_s26  ;;  %p6023_p5 = scmp.lt.s32.totalorder %s6017_s26, %s6017_s26 }
   0xc   :  { %p6024_p6 = por %p6023_p5, %p6022_p4 }
   0xe   :  { %p6025_p7 = pnand %p6024_p6, %p6018_p3 }
  0x10   :  { %6028 = shalt.err (!%p6025_p7)
}
  0x11   :  { %s6080_s27 = smov 128   ;;  %s6081_s28 = smov 8  }
  0x12   :  { %43 = dma.hbm_to_vmem [thread:$0]  %s7321_s6, 2048, %s38_s18, [#allocation5], %s6080_s27, %s6080_s27, %s6081_s28  }
  0x13   :  { %s6082_s12 = smov [#allocation7]   ;;  %s6029_s16 = scalar_lea.hbm %s7322_s7, 1024 }
  0x14   :  { %s49_s13 = sshll.u32 %s6082_s12, 4  ;;  %p6030_p8 = scmp.ne.s32.totalorder %s7322_s7, %s6029_s16  ;;  %s50_s13 = int_to_ptr.vmem [resolvable:$true] %s49_s13 }
  0x15   :  { %p6033_p9 = scmp.lt.u32.totalorder %s6029_s16, %s7322_s7 }
  0x17   :  { %p6035_p10 = pnand %p6033_p9, %p6030_p8 }
  0x19   :  { %6038 = shalt.err (!%p6035_p10)
}
  0x1a   :  { %s6039_s22 = scalar_lea.vmem %s50_s13, 1024  ;;  %p6044_p12 = scmp.lt.s32.totalorder %s50_s13, %s50_s13 }
  0x1b   :  { %p6040_p11 = scmp.ne.s32.totalorder %s50_s13, %s6039_s22  ;;  %p6045_p13 = scmp.lt.s32.totalorder %s6039_s22, %s6039_s22 }
  0x1d   :  { %p6046_p0 = por %p6045_p13, %p6044_p12 }
  0x1f   :  { %p6047_p1 = pnand %p6046_p0, %p6040_p11 }
  0x21   :  { %6050 = shalt.err (!%p6047_p1)
}
  0x22   :  { %55 = dma.hbm_to_vmem [thread:$0]  %s7322_s7, 1024, %s50_s13, [#allocation8], %s6080_s27, %s6080_s27, %s6081_s28  }
  0x23   :  { %6073 = dma.done.wait [#allocation5], 2048  }
  0x24   :  { %6074 = vsyncadd [#allocation5], 4294965248 }
  0x25   :  { %6075 = dma.done.wait [#allocation8], 1024  }
  0x26   :  { %6076 = vsyncadd [#allocation8], 4294966272  ;;  %vm211_vm0 = vcmask 130048   ;;  %v141_v0 = vld [vmem:[%s7317_s2 + $0x10] sm:$0xff]  ;;  %v142_v1 = vld [vmem:[%s7317_s2 + $0x18] sm:$0xff]  ;;  %v6083_v13 = vmov 0.0|0.0   ;;  %v163_v31 = vlaneseq }
  0x27   :  { %v131_v2 = vld [vmem:[%s7315_s0] sm:$0xff]  ;;  %v5556_v3 = vpack.c.bf16 %v142_v1, %v141_v0  ;;  %v140_v5 = vld [vmem:[%s7317_s2 + $0x8] sm:$0xff]  ;;  %v133_v11 = vld [vmem:[%s7315_s0 + $0x10] sm:$0xff]  ;;  %vm6084_vm1 = vmmov 0   ;;  %v6085_v27 = vmov 0.0   ;;  %vm193_vm2 = vcmask 523264  }
  0x28   :  { %5108 = vmatprep.mubr.msk.f32.mxu1 %vm211_vm0, %v131_v2  ;;  %v139_v4 = vld [vmem:[%s7317_s2] sm:$0xff]  ;;  %5092 = vmatprep.mubr.msk.f32.mxu0 %vm211_vm0, %v131_v2  ;;  %v148_v8 = vld [vmem:[%s7318_s3 + $0x28] sm:$0xff]  ;;  %v149_v12 = vld [vmem:[%s7318_s3 + $0x30] sm:$0xff]  ;;  %v6086_v29 = vmov 1966171168   ;;  %v6306_v38 = vshrl.u32 %v163_v31, 7 }
  0x29   :  { %v5552_v6 = vpack.c.bf16 %v140_v5, %v139_v4  ;;  %v147_v7 = vld [vmem:[%s7318_s3 + $0x20] sm:$0xff]  ;;  %5557 = vmatprep.subr.bf16.mxu1 %v5556_v3  ;;  %v132_v9 = vld [vmem:[%s7315_s0 + $0x8] sm:$0xff]  ;;  %v150_v14 = vld [vmem:[%s7318_s3 + $0x38] sm:$0xff]  ;;  %v161_v30 = vunpack.c.l.s4 %v6086_v29  ;;  %s6089_s12 = smov 96   ;;  %vm450_vm5 = vcmask 261120   ;;  %s6091_s29 = smov [#allocation9]  }
  0x2a   :  { %5559 = vmatpush3.bf16.msra.mxu1 %v5556_v3  ;;  %v6208_v10 = vpack.c.bf16 %v148_v8, %v147_v7  ;;  %v143_v15 = vld [vmem:[%s7318_s3] sm:$0xff]  ;;  %v144_v16 = vld [vmem:[%s7318_s3 + $0x8] sm:$0xff]  ;;  %v145_v18 = vld [vmem:[%s7318_s3 + $0x10] sm:$0xff]  ;;  %v6241_v21 = vpack.c.bf16 %v150_v14, %v149_v12  ;;  %v343_v46 = vsub.s32 1, %v6306_v38  ;;  %v6318_v48 = vsub.s32 0, %v6306_v38  ;;  %s4729_s30 = sshll.u32 %s6091_s29, 4  ;;  %s4730_s30 = int_to_ptr.vmem [resolvable:$true] %s4729_s30 }
  0x2b   :  { %5553 = vmatprep.subr.bf16.mxu0 %v5552_v6  ;;  %5566 = vmatprep.subr.bf16.mxu1 %v6083_v13  ;;  %v6227_v17 = vpack.c.bf16 %v144_v16, %v143_v15  ;;  %v146_v19 = vld [vmem:[%s7318_s3 + $0x18] sm:$0xff]  ;;  %v135_v22 = vld [vmem:[%s7315_s0 + $0x20] sm:$0xff]  ;;  %v136_v24 = vld [vmem:[%s7315_s0 + $0x28] sm:$0xff]  ;;  %v162_v37 = vunpack.c.0.s8 %v161_v30  ;;  %s6051_s7 = scalar_lea.vmem %s4730_s30, 512  ;;  %p6056_p3 = scmp.lt.s32.totalorder %s4730_s30, %s4730_s30 }
  0x2c   :  { %5555 = vmatpush3.bf16.msra.mxu0 %v5552_v6  ;;  %v134_v20 = vld [vmem:[%s7315_s0 + $0x18] sm:$0xff]  ;;  %v6250_v23 = vpack.c.bf16 %v146_v19, %v145_v18  ;;  %v137_v25 = vld [vmem:[%s7315_s0 + $0x30] sm:$0xff]  ;;  %v151_v28 = vld [vmem:[%s7319_s4] sm:$0x1]  ;;  %p6052_p2 = scmp.ne.s32.totalorder %s4730_s30, %s6051_s7  ;;  %p6057_p4 = scmp.lt.s32.totalorder %s6051_s7, %s6051_s7 }
  0x2d   :  { %5560 = vmatprep.subr.bf16.mxu0 %v6083_v13  ;;  %5109 = vmatmul.mubr.msk.f32.vlgmr.msra.gmra.mrb[0].mxu1 %vm211_vm0, %v132_v9  ;;  %v138_v26 = vld [vmem:[%s7315_s0 + $0x38] sm:$0xff]  ;;  %v152_v32 = vld [vmem:[%s7319_s4 + $0x1] sm:$0x1]  ;;  %v153_v33 = vld [vmem:[%s7320_s5] sm:$0x1]  ;;  %v6309_v40 = vsub.s32 %v162_v37, %v6306_v38  ;;  %s6087_s4 = smov 64  }
  0x2e   :  { %5568 = vmatpush3.bf16.msra.mxu1 %v6208_v10  ;;  %5111 = vmatprep.mubr.msk.f32.mxu1 %vm211_vm0, %v133_v11  ;;  %v154_v34 = vld [vmem:[%s7320_s5 + $0x1] sm:$0x1]  ;;  %v155_v35 = vadd.f32 %v153_v33, %v151_v28  ;;  %v177_v41 = vcombine.low %v151_v28, %v152_v32  ;;  %p6058_p5 = por %p6057_p4, %p6056_p3 }
  0x2f   :  { %5093 = vmatmul.mubr.msk.f32.vlgmr.msra.gmra.mrb[0].mxu0 %vm211_vm0, %v132_v9  ;;  %5569 = vmatprep.subr.bf16.mxu1 %v6083_v13  ;;  %v156_v36 = vadd.f32 %v154_v34, %v152_v32  ;;  %v6346_v14 = vrot.slane %v154_v34, %v6318_v48 }
  0x30   :  { %5095 = vmatprep.mubr.msk.f32.mxu0 %vm211_vm0, %v133_v11  ;;  %5562 = vmatpush3.bf16.msra.mxu0 %v6227_v17  ;;  %v184_v43 = vrot.slane %v177_v41, %v6309_v40  ;;  %p6059_p6 = pnand %p6058_p5, %p6052_p2 }
  0x31   :  { %5112 = vmatmul.mubr.msk.f32.gmra.mrb[2].mxu1 %vm211_vm0, %v134_v20  ;;  %5563 = vmatprep.subr.bf16.mxu0 %v6083_v13  ;;  %v159_v39 = vcombine.low %v155_v35, %v156_v36 }
  0x32   :  { %5114 = vmatprep.mubr.msk.f32.mxu1 %vm211_vm0, %v135_v22  ;;  %5571 = vmatpush3.bf16.msra.mxu1 %v6241_v21  ;;  %v191_v45 = vrot.slane %v184_v43, %v6309_v40 }
  0x33   :  { %5096 = vmatmul.mubr.msk.f32.gmra.mrb[2].mxu0 %vm211_vm0, %v134_v20  ;;  %5578 = vmatprep.subr.bf16.mxu1 %v6083_v13  ;;  %v166_v42 = vrot.slane %v159_v39, %v6309_v40  ;;  %v6353_v20 = vrot.slane %v153_v33, %v6318_v48 }
  0x34   :  { %5098 = vmatprep.mubr.msk.f32.mxu0 %vm211_vm0, %v135_v22  ;;  %5565 = vmatpush3.bf16.msra.mxu0 %v6250_v23 }
  0x35   :  { %5115 = vmatmul.mubr.msk.f32.gmra.mrb[4].mxu1 %vm211_vm0, %v136_v24  ;;  %5572 = vmatprep.subr.bf16.mxu0 %v6083_v13  ;;  %v173_v44 = vrot.slane %v166_v42, %v6309_v40 }
  0x36   :  { %5117 = vmatprep.mubr.msk.f32.mxu1 %vm211_vm0, %v137_v25 }
  0x37   :  { %5099 = vmatmul.mubr.msk.f32.gmra.mrb[4].mxu0 %vm211_vm0, %v136_v24  ;;  %v194_v47 = vsel %vm193_vm2, %v173_v44, %v191_v45 }
  0x38   :  { %5101 = vmatprep.mubr.msk.f32.mxu0 %vm211_vm0, %v137_v25  ;;  %v344_v49 = vrot.slane %v194_v47, %v343_v46  ;;  %v210_v50 = vrot.slane %v194_v47, %v6318_v48 }
  0x39   :  { %5118 = vmatmul.mubr.msk.f32.gmra.mrb[6].mxu1 %vm211_vm0, %v138_v26 }
  0x3a   :  { %5139 = vmatprep.mubr.msk.f32.mxu1 %vm6084_vm1, %v6085_v27 }
  0x3b   :  { %5102 = vmatmul.mubr.msk.f32.gmra.mrb[6].mxu0 %vm211_vm0, %v138_v26 }
  0x3c   :  { %5128 = vmatprep.mubr.msk.f32.mxu0 %vm6084_vm1, %v6085_v27 }
  0x3d   :  { %5140 = vmatmul.mubr.f32.vlgmr.msra.gmra.mrb[8].mxu1 %v6085_v27 }
  0x3e   :  { %5580 = vmatpush3.bf16.msra.mxu1 %v6208_v10  ;;  %5161 = vmatprep.mubr.msk.f32.mxu1 %vm6084_vm1, %v6085_v27 }
  0x3f   :  { %5129 = vmatmul.mubr.f32.vlgmr.msra.gmra.mrb[8].mxu0 %v6085_v27  ;;  %5581 = vmatprep.subr.bf16.mxu1 %v6083_v13 }
  0x40   :  { %5574 = vmatpush3.bf16.msra.mxu0 %v6227_v17  ;;  %5150 = vmatprep.mubr.msk.f32.mxu0 %vm6084_vm1, %v6085_v27 }
  0x41   :  { %5575 = vmatprep.subr.bf16.mxu0 %v6083_v13 }
  0x42   :  { %5583 = vmatpush3.bf16.msra.mxu1 %v6241_v21 }
  0x43   :  { %5590 = vmatprep.subr.bf16.mxu1 %v6083_v13 }
  0x44   :  { %5577 = vmatpush3.bf16.msra.mxu0 %v6250_v23 }
  0x45   :  { %5584 = vmatprep.subr.bf16.mxu0 %v6083_v13 }
 0x100   :  { %v5110_v51 = vpop.f32.mrb[0].mxu1 }
 0x101   :  { %v6323_v52 = vadd.f32 %v5110_v51, %v344_v49  ;;  %v411_v53 = vpop.f32.mrb[1].mxu1  ;;  %v6088_v51 = vmov 0  }
 0x102   :  { %v6325_v54 = vadd.f32 %v411_v53, %v344_v49  ;;  %v5094_v55 = vpop.f32.mrb[0].mxu0  ;;  %5813 = vset.pattern.permute.xlu0 %v6088_v51  ;;  %5814 = vset.pattern.permute.xlu1 %v6088_v51 }
 0x103   :  { %v6327_v56 = vadd.f32 %v5094_v55, %v210_v50  ;;  %v302_v57 = vpop.f32.mrb[1].mxu0 }
 0x104   :  { %v5113_v58 = vpop.f32.mrb[2].mxu1  ;;  %v303_v32 = vadd.f32 %v302_v57, %v210_v50 }
 0x105   :  { %v6329_v59 = vadd.f32 %v5113_v58, %v344_v49  ;;  %v421_v60 = vpop.f32.mrb[3].mxu1 }
 0x106   :  { %v6331_v61 = vadd.f32 %v421_v60, %v344_v49  ;;  %v5097_v62 = vpop.f32.mrb[2].mxu0  ;;  %v6366_v60 = vld [vmem:[%s7316_s1] sm:$0xff]  ;;  %s6090_s1 = smov 32  }
 0x107   :  { %v6333_v63 = vadd.f32 %v5097_v62, %v210_v50  ;;  %v312_v0 = vpop.f32.mrb[3].mxu0  ;;  %vm88_vm3 = vcmp.gt.s32.totalorder %v6366_v60, 7  ;;  %vm67_vm4 = vcmp.gt.s32.totalorder %v6366_v60, 0  ;;  %vm85_vm6 = vcmp.gt.s32.totalorder %v6366_v60, 6 }
 0x108   :  { %v5116_v1 = vpop.f32.mrb[4].mxu1  ;;  %v6335_v2 = vadd.f32 %v312_v0, %v210_v50  ;;  %vm70_vm7 = vcmp.gt.s32.totalorder %v6366_v60, 1  ;;  %vm82_vm8 = vcmp.gt.s32.totalorder %v6366_v60, 5  ;;  %vm73_vm9 = vcmp.gt.s32.totalorder %v6366_v60, 2 }
 0x109   :  { %v6337_v3 = vadd.f32 %v5116_v1, %v344_v49  ;;  %v431_v4 = vpop.f32.mrb[5].mxu1  ;;  %vm79_vm10 = vcmp.gt.s32.totalorder %v6366_v60, 4  ;;  %vm76_vm11 = vcmp.gt.s32.totalorder %v6366_v60, 3 }
 0x10a   :  { %v6339_v5 = vadd.f32 %v431_v4, %v344_v49  ;;  %v5100_v6 = vpop.f32.mrb[4].mxu0  ;;  %v4751_v4 = vsel %vm88_vm3, 1.0, %v6085_v27 }
 0x10b   :  { %v6341_v7 = vadd.f32 %v5100_v6, %v210_v50  ;;  %v322_v8 = vpop.f32.mrb[5].mxu0 }
 0x10c   :  { %v5119_v9 = vpop.f32.mrb[6].mxu1  ;;  %v6343_v11 = vadd.f32 %v322_v8, %v210_v50 }
 0x10d   :  { %v441_v12 = vpop.f32.mrb[7].mxu1  ;;  %v447_v31 = vadd.f32 %v5119_v9, %v344_v49 }
 0x10e   :  { %v6348_v15 = vadd.f32 %v441_v12, %v344_v49  ;;  %v5103_v16 = vpop.f32.mrb[6].mxu0 }
 0x10f   :  { %v6350_v18 = vadd.f32 %v5103_v16, %v210_v50  ;;  %v332_v19 = vpop.f32.mrb[7].mxu0  ;;  %v4744_v16 = vsel %vm67_vm4, 1.0, %v6085_v27 }
 0x110   :  { %v590_v22 = vpop.f32.mrb[8].mxu1  ;;  %v6355_v24 = vadd.f32 %v332_v19, %v210_v50 }
 0x111   :  { %v5141_v25 = vpop.f32.mrb[9].mxu1  ;;  %v609_v26 = vadd.f32 %v590_v22, %v6346_v14  ;;  %v595_v34 = vadd.f32 %v590_v22, %v447_v31 }
 0x112   :  { %v520_v28 = vpop.f32.mrb[8].mxu0 }
 0x113   :  { %614 = vrot.lane.b32.xlu0 %v609_v26, %s6087_s4  ;;  %v608_v29 = vadd.f32 %v520_v28, %v6353_v20  ;;  %v5130_v30 = vpop.f32.mrb[9].mxu0  ;;  %v4769_v33 = vmul.f32 -1.442695, %v595_v34  ;;  %v594_v35 = vadd.f32 %v520_v28, %v303_v32 }
 0x115   :  { %5815 = vpow2.f32 %v4769_v33  ;;  %v4768_v36 = vmul.f32 -1.442695, %v594_v35 }
 0x117   :  { %612 = vrot.lane.b32.xlu0 %v608_v29, %s6087_s4  ;;  %5817 = vpow2.f32 %v4768_v36 }
 0x11f   :  { %v5816_v37 = vpop.eup %5815 }
 0x120   :  { %v603_v39 = vadd.f32 1.0, %v5816_v37 }
 0x121   :  { %v5818_v41 = vpop.eup %5817 }
 0x122   :  { %5819 = vrcp.f32 %v603_v39  ;;  %v602_v42 = vadd.f32 1.0, %v5818_v41 }
 0x124   :  { %5821 = vrcp.f32 %v602_v42 }
 0x12c   :  { %v5820_v43 = vpop.eup %5819 }
 0x12e   :  { %v5822_v47 = vpop.eup %5821 }
 0x185   :  { %v615_v44 = vpop.permute.xlu0 %614 }
 0x186   :  { %v619_v45 = vmul.f32 %v5820_v43, %v615_v44 }
 0x188   :  { %624 = vrot.lane.b32.xlu1 %v619_v45, %s6087_s4 }
 0x189   :  { %v613_v49 = vpop.permute.xlu0 %612 }
 0x18a   :  { %v618_v50 = vmul.f32 %v5822_v47, %v613_v49 }
 0x18c   :  { %622 = vrot.lane.b32.xlu1 %v618_v50, %s6087_s4 }
 0x1fa   :  { %v625_v53 = vpop.permute.xlu1 %624 }
 0x1fb   :  { %v629_v55 = vadd.f32 %v625_v53, %v447_v31 }
 0x1fd   :  { %5823 = vtanh.f32 %v629_v55 }
 0x1fe   :  { %v623_v57 = vpop.permute.xlu1 %622 }
 0x1ff   :  { %v628_v58 = vadd.f32 %v623_v57, %v303_v32 }
 0x201   :  { %5825 = vtanh.f32 %v628_v58 }
 0x207   :  { %v5824_v62 = vpop.eup %5823 }
 0x208   :  { %v633_v0 = vsub.f32 0.0, %v5824_v62 }
 0x20a   :  { %638 = vrot.lane.b32.xlu0 %v633_v0, %s6089_s12 }
 0x20b   :  { %v5826_v1 = vpop.eup %5825 }
 0x20c   :  { %v632_v6 = vsub.f32 0.0, %v5826_v1 }
 0x20e   :  { %636 = vrot.lane.b32.xlu1 %v632_v6, %s6089_s12  ;;  %98 = vperm.xlu0 %5813, %v4751_v4  }
 0x27c   :  { %v639_v8 = vpop.permute.xlu0 %638 }
 0x27d   :  { %v643_v9 = vmul.f32 %v5820_v43, %v639_v8 }
 0x27f   :  { %648 = vrot.lane.b32.xlu1 %v643_v9, %s6090_s1 }
 0x280   :  { %v637_v12 = vpop.permute.xlu1 %636 }
 0x281   :  { %v642_v19 = vmul.f32 %v5822_v47, %v637_v12 }
 0x283   :  { %646 = vrot.lane.b32.xlu0 %v642_v19, %s6090_s1  ;;  %93 = vperm.xlu1 %5814, %v4744_v16   ;;  %v4750_v19 = vsel %vm85_vm6, 1.0, %v6085_v27 }
 0x28d   :  { %v6376_v26 = vpop.permute.xlu0 %98 }
 0x2f1   :  { %v649_v22 = vpop.permute.xlu1 %648 }
 0x2f2   :  { %v653_v25 = vadd.f32 %v5824_v62, %v649_v22  ;;  %v4745_v22 = vsel %vm70_vm7, 1.0, %v6085_v27 }
 0x2f4   :  { %v6379_v28 = vmul.f32 %v653_v25, %v6376_v26 }
 0x2f5   :  { %v647_v29 = vpop.permute.xlu0 %646 }
 0x2f6   :  { %747 = vrot.lane.b32.xlu1 %v6379_v28, %s6087_s4  ;;  %v652_v30 = vadd.f32 %v5826_v1, %v647_v29 }
 0x302   :  { %v6383_v31 = vpop.permute.xlu1 %93 }
 0x303   :  { %v6386_v32 = vmul.f32 %v652_v30, %v6383_v31 }
 0x305   :  { %672 = vrot.lane.b32.xlu0 %v6386_v32, %s6087_s4 }
 0x368   :  { %v748_v34 = vpop.permute.xlu1 %747 }
 0x369   :  { %5162 = vmatmul.mubr.msk.f32.vlgmr.msra.gmra.mrb[10].mxu1 %vm450_vm5, %v748_v34 }
 0x36a   :  { %5592 = vmatpush3.bf16.msra.mxu1 %v6208_v10  ;;  %5183 = vmatprep.mubr.msk.f32.mxu1 %vm6084_vm1, %v6085_v27 }
 0x36b   :  { %5593 = vmatprep.subr.bf16.mxu1 %v6083_v13 }
 0x36e   :  { %5595 = vmatpush3.bf16.msra.mxu1 %v6241_v21 }
 0x36f   :  { %5602 = vmatprep.subr.bf16.mxu1 %v6083_v13 }
 0x377   :  { %v673_v33 = vpop.permute.xlu0 %672 }
 0x378   :  { %5151 = vmatmul.mubr.msk.f32.vlgmr.msra.gmra.mrb[10].mxu0 %vm450_vm5, %v673_v33 }
 0x379   :  { %5586 = vmatpush3.bf16.msra.mxu0 %v6227_v17  ;;  %5172 = vmatprep.mubr.msk.f32.mxu0 %vm6084_vm1, %v6085_v27 }
 0x37a   :  { %5587 = vmatprep.subr.bf16.mxu0 %v6083_v13 }
 0x37d   :  { %5589 = vmatpush3.bf16.msra.mxu0 %v6250_v23 }
 0x37e   :  { %5596 = vmatprep.subr.bf16.mxu0 %v6083_v13 }
 0x43c   :  { %v817_v35 = vpop.f32.mrb[10].mxu1 }
 0x43d   :  { %v836_v36 = vadd.f32 %v817_v35, %v6346_v14  ;;  %v5163_v37 = vpop.f32.mrb[11].mxu1  ;;  %v822_v43 = vadd.f32 %v817_v35, %v6348_v15 }
 0x43f   :  { %841 = vrot.lane.b32.xlu1 %v836_v36, %s6087_s4  ;;  %v4773_v44 = vmul.f32 -1.442695, %v822_v43 }
 0x441   :  { %5827 = vpow2.f32 %v4773_v44 }
 0x44b   :  { %v742_v39 = vpop.f32.mrb[10].mxu0  ;;  %v5828_v47 = vpop.eup %5827 }
 0x44c   :  { %v835_v41 = vadd.f32 %v742_v39, %v6353_v20  ;;  %v5152_v42 = vpop.f32.mrb[11].mxu0  ;;  %v821_v45 = vadd.f32 %v742_v39, %v6327_v56  ;;  %v830_v50 = vadd.f32 1.0, %v5828_v47 }
 0x44e   :  { %839 = vrot.lane.b32.xlu0 %v835_v41, %s6087_s4  ;;  %v4772_v49 = vmul.f32 -1.442695, %v821_v45 }
 0x450   :  { %5829 = vpow2.f32 %v4772_v49 }
 0x451   :  { %5831 = vrcp.f32 %v830_v50 }
 0x45a   :  { %v5830_v51 = vpop.eup %5829 }
 0x45b   :  { %v5832_v53 = vpop.eup %5831  ;;  %v829_v57 = vadd.f32 1.0, %v5830_v51 }
 0x45d   :  { %5833 = vrcp.f32 %v829_v57 }
 0x467   :  { %v5834_v62 = vpop.eup %5833 }
 0x4b1   :  { %v842_v55 = vpop.permute.xlu1 %841 }
 0x4b2   :  { %v846_v58 = vmul.f32 %v5832_v53, %v842_v55 }
 0x4b4   :  { %851 = vrot.lane.b32.xlu1 %v846_v58, %s6087_s4 }
 0x4c0   :  { %v840_v0 = vpop.permute.xlu0 %839 }
 0x4c1   :  { %v845_v1 = vmul.f32 %v5834_v62, %v840_v0 }
 0x4c3   :  { %849 = vrot.lane.b32.xlu0 %v845_v1, %s6087_s4 }
 0x526   :  { %v852_v4 = vpop.permute.xlu1 %851 }
 0x527   :  { %v856_v6 = vadd.f32 %v852_v4, %v6348_v15 }
 0x529   :  { %5835 = vtanh.f32 %v856_v6 }
 0x533   :  { %v5836_v8 = vpop.eup %5835 }
 0x534   :  { %v860_v9 = vsub.f32 %v6379_v28, %v5836_v8 }
 0x535   :  { %v850_v12 = vpop.permute.xlu0 %849 }
 0x536   :  { %v855_v16 = vadd.f32 %v850_v12, %v6327_v56  ;;  %865 = vrot.lane.b32.xlu1 %v860_v9, %s6089_s12 }
 0x538   :  { %5837 = vtanh.f32 %v855_v16 }
 0x53a   :  { %108 = vperm.xlu1 %5814, %v4750_v19  }
 0x53e   :  { %103 = vperm.xlu1 %5814, %v4745_v22  }
 0x542   :  { %v5838_v15 = vpop.eup %5837 }
 0x543   :  { %v859_v25 = vsub.f32 %v6386_v32, %v5838_v15 }
 0x545   :  { %863 = vrot.lane.b32.xlu0 %v859_v25, %s6089_s12 }
 0x5a8   :  { %v866_v29 = vpop.permute.xlu1 %865 }
 0x5a9   :  { %v870_v30 = vmul.f32 %v5832_v53, %v866_v29 }
 0x5ab   :  { %875 = vrot.lane.b32.xlu0 %v870_v30, %s6090_s1 }
 0x5b7   :  { %v864_v56 = vpop.permute.xlu0 %863 }
 0x5b8   :  { %v869_v34 = vmul.f32 %v5834_v62, %v864_v56 }
 0x5b9   :  { %v6425_v37 = vpop.permute.xlu1 %108 }
 0x5ba   :  { %873 = vrot.lane.b32.xlu0 %v869_v34, %s6090_s1 }
 0x5bd   :  { %v6434_v45 = vpop.permute.xlu1 %103 }
 0x61d   :  { %v876_v33 = vpop.permute.xlu0 %875 }
 0x61e   :  { %v880_v35 = vadd.f32 %v5836_v8, %v876_v33 }
 0x620   :  { %v882_v36 = vsub.f32 %v880_v35, %v6379_v28 }
 0x622   :  { %v884_v39 = vmul.f32 %v882_v36, %v6425_v37 }
 0x624   :  { %v6429_v41 = vadd.f32 %v884_v39, %v6379_v28 }
 0x626   :  { %975 = vrot.lane.b32.xlu1 %v6429_v41, %s6087_s4 }
 0x62c   :  { %v874_v42 = vpop.permute.xlu0 %873 }
 0x62d   :  { %v879_v43 = vadd.f32 %v5838_v15, %v874_v42 }
 0x62f   :  { %v881_v44 = vsub.f32 %v879_v43, %v6386_v32  ;;  %v4749_v43 = vsel %vm82_vm8, 1.0, %v6085_v27 }
 0x631   :  { %v883_v47 = vmul.f32 %v881_v44, %v6434_v45  ;;  %v4746_v44 = vsel %vm73_vm9, 1.0, %v6085_v27 }
 0x633   :  { %v6438_v49 = vadd.f32 %v883_v47, %v6386_v32 }
 0x635   :  { %900 = vrot.lane.b32.xlu0 %v6438_v49, %s6087_s4 }
 0x698   :  { %v976_v50 = vpop.permute.xlu1 %975 }
 0x699   :  { %5184 = vmatmul.mubr.msk.f32.vlgmr.msra.gmra.mrb[12].mxu1 %vm450_vm5, %v976_v50 }
 0x69a   :  { %5604 = vmatpush3.bf16.msra.mxu1 %v6208_v10  ;;  %5205 = vmatprep.mubr.msk.f32.mxu1 %vm6084_vm1, %v6085_v27 }
 0x69b   :  { %5605 = vmatprep.subr.bf16.mxu1 %v6083_v13 }
 0x69e   :  { %5607 = vmatpush3.bf16.msra.mxu1 %v6241_v21 }
 0x69f   :  { %5614 = vmatprep.subr.bf16.mxu1 %v6083_v13 }
 0x6a7   :  { %v901_v51 = vpop.permute.xlu0 %900 }
 0x6a8   :  { %5173 = vmatmul.mubr.msk.f32.vlgmr.msra.gmra.mrb[12].mxu0 %vm450_vm5, %v901_v51 }
 0x6a9   :  { %5598 = vmatpush3.bf16.msra.mxu0 %v6227_v17  ;;  %5194 = vmatprep.mubr.msk.f32.mxu0 %vm6084_vm1, %v6085_v27 }
 0x6aa   :  { %5599 = vmatprep.subr.bf16.mxu0 %v6083_v13 }
 0x6ad   :  { %5601 = vmatpush3.bf16.msra.mxu0 %v6250_v23 }
 0x6ae   :  { %5608 = vmatprep.subr.bf16.mxu0 %v6083_v13 }
 0x76c   :  { %v1045_v53 = vpop.f32.mrb[12].mxu1 }
 0x76d   :  { %v1064_v55 = vadd.f32 %v1045_v53, %v6346_v14  ;;  %v5185_v57 = vpop.f32.mrb[13].mxu1  ;;  %v1050_v1 = vadd.f32 %v1045_v53, %v6337_v3 }
 0x76f   :  { %1069 = vrot.lane.b32.xlu1 %v1064_v55, %s6087_s4  ;;  %v4777_v4 = vmul.f32 -1.442695, %v1050_v1 }
 0x771   :  { %5839 = vpow2.f32 %v4777_v4 }
 0x77b   :  { %v970_v58 = vpop.f32.mrb[12].mxu0  ;;  %v5840_v8 = vpop.eup %5839 }
 0x77c   :  { %v1063_v62 = vadd.f32 %v970_v58, %v6353_v20  ;;  %v5174_v0 = vpop.f32.mrb[13].mxu0  ;;  %v1049_v6 = vadd.f32 %v970_v58, %v6335_v2  ;;  %v1058_v12 = vadd.f32 1.0, %v5840_v8 }
 0x77e   :  { %1067 = vrot.lane.b32.xlu0 %v1063_v62, %s6087_s4  ;;  %v4776_v9 = vmul.f32 -1.442695, %v1049_v6 }
 0x780   :  { %5841 = vpow2.f32 %v4776_v9 }
 0x781   :  { %5843 = vrcp.f32 %v1058_v12 }
 0x78a   :  { %v5842_v16 = vpop.eup %5841 }
 0x78b   :  { %v5844_v19 = vpop.eup %5843  ;;  %v1057_v15 = vadd.f32 1.0, %v5842_v16 }
 0x78d   :  { %5845 = vrcp.f32 %v1057_v15 }
 0x797   :  { %v5846_v29 = vpop.eup %5845 }
 0x7e1   :  { %v1070_v22 = vpop.permute.xlu1 %1069 }
 0x7e2   :  { %v1074_v25 = vmul.f32 %v5844_v19, %v1070_v22 }
 0x7e4   :  { %1079 = vrot.lane.b32.xlu1 %v1074_v25, %s6087_s4 }
 0x7f0   :  { %v1068_v30 = vpop.permute.xlu0 %1067 }
 0x7f1   :  { %v1073_v56 = vmul.f32 %v5846_v29, %v1068_v30 }
 0x7f3   :  { %1077 = vrot.lane.b32.xlu0 %v1073_v56, %s6087_s4 }
 0x856   :  { %v1080_v34 = vpop.permute.xlu1 %1079 }
 0x857   :  { %v1084_v33 = vadd.f32 %v1080_v34, %v6337_v3 }
 0x859   :  { %5847 = vtanh.f32 %v1084_v33 }
 0x863   :  { %v5848_v35 = vpop.eup %5847 }
 0x864   :  { %v1088_v36 = vsub.f32 %v6429_v41, %v5848_v35 }
 0x865   :  { %v1078_v39 = vpop.permute.xlu0 %1077 }
 0x866   :  { %v1083_v42 = vadd.f32 %v1078_v39, %v6335_v2  ;;  %1093 = vrot.lane.b32.xlu1 %v1088_v36, %s6089_s12 }
 0x868   :  { %5849 = vtanh.f32 %v1083_v42 }
 0x86a   :  { %118 = vperm.xlu1 %5814, %v4749_v43  }
 0x86e   :  { %113 = vperm.xlu1 %5814, %v4746_v44  }
 0x872   :  { %v5850_v3 = vpop.eup %5849 }
 0x873   :  { %v1087_v47 = vsub.f32 %v6438_v49, %v5850_v3 }
 0x875   :  { %1091 = vrot.lane.b32.xlu0 %v1087_v47, %s6089_s12 }
 0x8d8   :  { %v1094_v50 = vpop.permute.xlu1 %1093 }
 0x8d9   :  { %v1098_v51 = vmul.f32 %v5844_v19, %v1094_v50 }
 0x8db   :  { %1103 = vrot.lane.b32.xlu0 %v1098_v51, %s6090_s1 }
 0x8e7   :  { %v1092_v2 = vpop.permute.xlu0 %1091 }
 0x8e8   :  { %v1097_v53 = vmul.f32 %v5846_v29, %v1092_v2 }
 0x8e9   :  { %v6477_v62 = vpop.permute.xlu1 %118 }
 0x8ea   :  { %1101 = vrot.lane.b32.xlu0 %v1097_v53, %s6090_s1 }
 0x8ed   :  { %v6486_v9 = vpop.permute.xlu1 %113 }
 0x94d   :  { %v1104_v55 = vpop.permute.xlu0 %1103 }
 0x94e   :  { %v1108_v57 = vadd.f32 %v5848_v35, %v1104_v55 }
 0x950   :  { %v1110_v58 = vsub.f32 %v1108_v57, %v6429_v41 }
 0x952   :  { %v1112_v0 = vmul.f32 %v1110_v58, %v6477_v62 }
 0x954   :  { %v6481_v1 = vadd.f32 %v1112_v0, %v6429_v41 }
 0x956   :  { %1203 = vrot.lane.b32.xlu1 %v6481_v1, %s6087_s4 }
 0x95c   :  { %v1102_v4 = vpop.permute.xlu0 %1101 }
 0x95d   :  { %v1107_v6 = vadd.f32 %v5850_v3, %v1102_v4 }
 0x95f   :  { %v1109_v8 = vsub.f32 %v1107_v6, %v6438_v49 }
 0x961   :  { %v1111_v12 = vmul.f32 %v1109_v8, %v6486_v9 }
 0x963   :  { %v6490_v16 = vadd.f32 %v1111_v12, %v6438_v49  ;;  %v4748_v12 = vsel %vm79_vm10, 1.0, %v6085_v27 }
 0x965   :  { %1128 = vrot.lane.b32.xlu0 %v6490_v16, %s6087_s4 }
 0x9c8   :  { %v1204_v19 = vpop.permute.xlu1 %1203 }
 0x9c9   :  { %5206 = vmatmul.mubr.msk.f32.vlgmr.msra.gmra.mrb[14].mxu1 %vm450_vm5, %v1204_v19  ;;  %v4747_v19 = vsel %vm76_vm11, 1.0, %v6085_v27 }
 0x9ca   :  { %5616 = vmatpush3.bf16.msra.mxu1 %v6208_v10  ;;  %5227 = vmatprep.mubr.msk.f32.mxu1 %vm6084_vm1, %v6085_v27 }
 0x9cb   :  { %5617 = vmatprep.subr.bf16.mxu1 %v6083_v13 }
 0x9ce   :  { %5619 = vmatpush3.bf16.msra.mxu1 %v6241_v21 }
 0x9cf   :  { %5626 = vmatprep.subr.bf16.mxu1 %v6083_v13 }
 0x9d7   :  { %v1129_v22 = vpop.permute.xlu0 %1128 }
 0x9d8   :  { %5195 = vmatmul.mubr.msk.f32.vlgmr.msra.gmra.mrb[14].mxu0 %vm450_vm5, %v1129_v22 }
 0x9d9   :  { %5610 = vmatpush3.bf16.msra.mxu0 %v6227_v17  ;;  %5216 = vmatprep.mubr.msk.f32.mxu0 %vm6084_vm1, %v6085_v27 }
 0x9da   :  { %5611 = vmatprep.subr.bf16.mxu0 %v6083_v13 }
 0x9dd   :  { %5613 = vmatpush3.bf16.msra.mxu0 %v6250_v23 }
 0x9de   :  { %5620 = vmatprep.subr.bf16.mxu0 %v6083_v13 }
 0xa9c   :  { %v1273_v15 = vpop.f32.mrb[14].mxu1 }
 0xa9d   :  { %v1292_v25 = vadd.f32 %v1273_v15, %v6346_v14  ;;  %v5207_v29 = vpop.f32.mrb[15].mxu1  ;;  %v1278_v33 = vadd.f32 %v1273_v15, %v6339_v5 }
 0xa9f   :  { %1297 = vrot.lane.b32.xlu1 %v1292_v25, %s6087_s4  ;;  %v4781_v35 = vmul.f32 -1.442695, %v1278_v33 }
 0xaa1   :  { %5851 = vpow2.f32 %v4781_v35 }
 0xaab   :  { %v1198_v30 = vpop.f32.mrb[14].mxu0  ;;  %v5852_v39 = vpop.eup %5851 }
 0xaac   :  { %v1291_v56 = vadd.f32 %v1198_v30, %v6353_v20  ;;  %v5196_v34 = vpop.f32.mrb[15].mxu0  ;;  %v1277_v36 = vadd.f32 %v1198_v30, %v6333_v63  ;;  %v1286_v43 = vadd.f32 1.0, %v5852_v39 }
 0xaae   :  { %1295 = vrot.lane.b32.xlu0 %v1291_v56, %s6087_s4  ;;  %v4780_v42 = vmul.f32 -1.442695, %v1277_v36 }
 0xab0   :  { %5853 = vpow2.f32 %v4780_v42 }
 0xab1   :  { %5855 = vrcp.f32 %v1286_v43 }
 0xaba   :  { %v5854_v44 = vpop.eup %5853 }
 0xabb   :  { %v5856_v3 = vpop.eup %5855  ;;  %v1285_v50 = vadd.f32 1.0, %v5854_v44 }
 0xabd   :  { %5857 = vrcp.f32 %v1285_v50 }
 0xac7   :  { %v5858_v2 = vpop.eup %5857 }
 0xb11   :  { %v1298_v47 = vpop.permute.xlu1 %1297 }
 0xb12   :  { %v1302_v51 = vmul.f32 %v5856_v3, %v1298_v47 }
 0xb14   :  { %1307 = vrot.lane.b32.xlu1 %v1302_v51, %s6087_s4 }
 0xb20   :  { %v1296_v53 = vpop.permute.xlu0 %1295 }
 0xb21   :  { %v1301_v55 = vmul.f32 %v5858_v2, %v1296_v53 }
 0xb23   :  { %1305 = vrot.lane.b32.xlu0 %v1301_v55, %s6087_s4 }
 0xb86   :  { %v1308_v57 = vpop.permute.xlu1 %1307 }
 0xb87   :  { %v1312_v58 = vadd.f32 %v1308_v57, %v6339_v5 }
 0xb89   :  { %5859 = vtanh.f32 %v1312_v58 }
 0xb93   :  { %v5860_v0 = vpop.eup %5859 }
 0xb94   :  { %v1316_v4 = vsub.f32 %v6481_v1, %v5860_v0 }
 0xb95   :  { %v1306_v6 = vpop.permute.xlu0 %1305 }
 0xb96   :  { %v1311_v8 = vadd.f32 %v1306_v6, %v6333_v63  ;;  %1321 = vrot.lane.b32.xlu1 %v1316_v4, %s6089_s12 }
 0xb98   :  { %5861 = vtanh.f32 %v1311_v8 }
 0xb9a   :  { %128 = vperm.xlu1 %5814, %v4748_v12  }
 0xb9e   :  { %123 = vperm.xlu1 %5814, %v4747_v19  }
 0xba2   :  { %v5862_v5 = vpop.eup %5861 }
 0xba3   :  { %v1315_v22 = vsub.f32 %v6490_v16, %v5862_v5 }
 0xba5   :  { %1319 = vrot.lane.b32.xlu0 %v1315_v22, %s6089_s12 }
 0xc08   :  { %v1322_v15 = vpop.permute.xlu1 %1321 }
 0xc09   :  { %v1326_v25 = vmul.f32 %v5856_v3, %v1322_v15 }
 0xc0b   :  { %1331 = vrot.lane.b32.xlu0 %v1326_v25, %s6090_s1 }
 0xc17   :  { %v1320_v63 = vpop.permute.xlu0 %1319 }
 0xc18   :  { %v1325_v29 = vmul.f32 %v5858_v2, %v1320_v63 }
 0xc19   :  { %v6529_v34 = vpop.permute.xlu1 %128 }
 0xc1a   :  { %1329 = vrot.lane.b32.xlu0 %v1325_v29, %s6090_s1 }
 0xc1d   :  { %v6538_v43 = vpop.permute.xlu1 %123 }
 0xc7d   :  { %v1332_v30 = vpop.permute.xlu0 %1331 }
 0xc7e   :  { %v1336_v56 = vadd.f32 %v5860_v0, %v1332_v30 }
 0xc80   :  { %v1338_v60 = vsub.f32 %v1336_v56, %v6481_v1 }
 0xc82   :  { %v1340_v33 = vmul.f32 %v1338_v60, %v6529_v34 }
 0xc84   :  { %v6533_v35 = vadd.f32 %v1340_v33, %v6481_v1 }
 0xc86   :  { %1431 = vrot.lane.b32.xlu1 %v6533_v35, %s6087_s4 }
 0xc8c   :  { %v1330_v36 = vpop.permute.xlu0 %1329 }
 0xc8d   :  { %v1335_v39 = vadd.f32 %v5862_v5, %v1330_v36 }
 0xc8f   :  { %v1337_v42 = vsub.f32 %v1335_v39, %v6490_v16 }
 0xc91   :  { %v1339_v44 = vmul.f32 %v1337_v42, %v6538_v43 }
 0xc93   :  { %v6542_v3 = vadd.f32 %v1339_v44, %v6490_v16 }
 0xc95   :  { %1356 = vrot.lane.b32.xlu0 %v6542_v3, %s6087_s4 }
 0xcf8   :  { %v1432_v47 = vpop.permute.xlu1 %1431 }
 0xcf9   :  { %5228 = vmatmul.mubr.msk.f32.vlgmr.msra.gmra.mrb[16].mxu1 %vm450_vm5, %v1432_v47 }
 0xcfa   :  { %5628 = vmatpush3.bf16.msra.mxu1 %v6208_v10  ;;  %5249 = vmatprep.mubr.msk.f32.mxu1 %vm6084_vm1, %v6085_v27 }
 0xcfb   :  { %5629 = vmatprep.subr.bf16.mxu1 %v6083_v13 }
 0xcfe   :  { %5631 = vmatpush3.bf16.msra.mxu1 %v6241_v21 }
 0xcff   :  { %5638 = vmatprep.subr.bf16.mxu1 %v6083_v13 }
 0xd07   :  { %v1357_v50 = vpop.permute.xlu0 %1356 }
 0xd08   :  { %5217 = vmatmul.mubr.msk.f32.vlgmr.msra.gmra.mrb[16].mxu0 %vm450_vm5, %v1357_v50 }
 0xd09   :  { %5622 = vmatpush3.bf16.msra.mxu0 %v6227_v17  ;;  %5238 = vmatprep.mubr.msk.f32.mxu0 %vm6084_vm1, %v6085_v27 }
 0xd0a   :  { %5623 = vmatprep.subr.bf16.mxu0 %v6083_v13 }
 0xd0d   :  { %5625 = vmatpush3.bf16.msra.mxu0 %v6250_v23 }
 0xd0e   :  { %5632 = vmatprep.subr.bf16.mxu0 %v6083_v13 }
 0xdcc   :  { %v1501_v51 = vpop.f32.mrb[16].mxu1 }
 0xdcd   :  { %v1520_v2 = vadd.f32 %v1501_v51, %v6346_v14  ;;  %v5229_v53 = vpop.f32.mrb[17].mxu1  ;;  %v1506_v0 = vadd.f32 %v1501_v51, %v6329_v59 }
 0xdcf   :  { %1525 = vrot.lane.b32.xlu1 %v1520_v2, %s6087_s4  ;;  %v4785_v4 = vmul.f32 -1.442695, %v1506_v0 }
 0xdd1   :  { %5863 = vpow2.f32 %v4785_v4 }
 0xddb   :  { %v1426_v55 = vpop.f32.mrb[16].mxu0  ;;  %v5864_v8 = vpop.eup %5863 }
 0xddc   :  { %v1519_v57 = vadd.f32 %v1426_v55, %v6353_v20  ;;  %v5218_v58 = vpop.f32.mrb[17].mxu0  ;;  %v1505_v6 = vadd.f32 %v1426_v55, %v6343_v11  ;;  %v1514_v19 = vadd.f32 1.0, %v5864_v8 }
 0xdde   :  { %1523 = vrot.lane.b32.xlu0 %v1519_v57, %s6087_s4  ;;  %v4784_v12 = vmul.f32 -1.442695, %v1505_v6 }
 0xde0   :  { %5865 = vpow2.f32 %v4784_v12 }
 0xde1   :  { %5867 = vrcp.f32 %v1514_v19 }
 0xdea   :  { %v5866_v5 = vpop.eup %5865 }
 0xdeb   :  { %v5868_v22 = vpop.eup %5867  ;;  %v1513_v25 = vadd.f32 1.0, %v5866_v5 }
 0xded   :  { %5869 = vrcp.f32 %v1513_v25 }
 0xdf7   :  { %v5870_v29 = vpop.eup %5869 }
 0xe41   :  { %v1526_v15 = vpop.permute.xlu1 %1525 }
 0xe42   :  { %v1530_v63 = vmul.f32 %v5868_v22, %v1526_v15 }
 0xe44   :  { %1535 = vrot.lane.b32.xlu1 %v1530_v63, %s6087_s4 }
 0xe50   :  { %v1524_v30 = vpop.permute.xlu0 %1523 }
 0xe51   :  { %v1529_v56 = vmul.f32 %v5870_v29, %v1524_v30 }
 0xe53   :  { %1533 = vrot.lane.b32.xlu0 %v1529_v56, %s6087_s4 }
 0xeb6   :  { %v1536_v60 = vpop.permute.xlu1 %1535 }
 0xeb7   :  { %v1540_v33 = vadd.f32 %v1536_v60, %v6329_v59 }
 0xeb9   :  { %5871 = vtanh.f32 %v1540_v33 }
 0xec3   :  { %v5872_v36 = vpop.eup %5871 }
 0xec4   :  { %v1544_v39 = vsub.f32 %v6533_v35, %v5872_v36 }
 0xec5   :  { %v1534_v42 = vpop.permute.xlu0 %1533 }
 0xec6   :  { %v1539_v44 = vadd.f32 %v1534_v42, %v6343_v11  ;;  %1549 = vrot.lane.b32.xlu1 %v1544_v39, %s6089_s12 }
 0xec8   :  { %5873 = vtanh.f32 %v1539_v44 }
 0xed2   :  { %v5874_v47 = vpop.eup %5873 }
 0xed3   :  { %v1543_v50 = vsub.f32 %v6542_v3, %v5874_v47 }
 0xed5   :  { %1547 = vrot.lane.b32.xlu0 %v1543_v50, %s6089_s12 }
 0xf38   :  { %v1550_v51 = vpop.permute.xlu1 %1549 }
 0xf39   :  { %v1554_v2 = vmul.f32 %v5868_v22, %v1550_v51 }
 0xf3b   :  { %1559 = vrot.lane.b32.xlu1 %v1554_v2, %s6090_s1 }
 0xf47   :  { %v1548_v59 = vpop.permute.xlu0 %1547 }
 0xf48   :  { %v1553_v53 = vmul.f32 %v5870_v29, %v1548_v59 }
 0xf4a   :  { %1557 = vrot.lane.b32.xlu0 %v1553_v53, %s6090_s1 }
 0xfad   :  { %v1560_v55 = vpop.permute.xlu1 %1559 }
 0xfae   :  { %v1564_v57 = vadd.f32 %v5872_v36, %v1560_v55 }
 0xfb0   :  { %v1566_v11 = vsub.f32 %v1564_v57, %v6533_v35 }
 0xfb2   :  { %v1568_v58 = vmul.f32 %v1566_v11, %v6538_v43 }
 0xfb4   :  { %v6579_v0 = vadd.f32 %v1568_v58, %v6533_v35 }
 0xfb6   :  { %1659 = vrot.lane.b32.xlu1 %v6579_v0, %s6087_s4 }
 0xfbc   :  { %v1558_v4 = vpop.permute.xlu0 %1557 }
 0xfbd   :  { %v1563_v6 = vadd.f32 %v5874_v47, %v1558_v4 }
 0xfbf   :  { %v1565_v8 = vsub.f32 %v1563_v6, %v6542_v3 }
 0xfc1   :  { %v1567_v12 = vmul.f32 %v1565_v8, %v6529_v34 }
 0xfc3   :  { %v6586_v19 = vadd.f32 %v1567_v12, %v6542_v3 }
 0xfc5   :  { %1584 = vrot.lane.b32.xlu0 %v6586_v19, %s6087_s4 }
0x1028   :  { %v1660_v5 = vpop.permute.xlu1 %1659 }
0x1029   :  { %5250 = vmatmul.mubr.msk.f32.vlgmr.msra.gmra.mrb[18].mxu1 %vm450_vm5, %v1660_v5 }
0x102a   :  { %5640 = vmatpush3.bf16.msra.mxu1 %v6208_v10  ;;  %5271 = vmatprep.mubr.msk.f32.mxu1 %vm6084_vm1, %v6085_v27 }
0x102b   :  { %5641 = vmatprep.subr.bf16.mxu1 %v6083_v13 }
0x102e   :  { %5643 = vmatpush3.bf16.msra.mxu1 %v6241_v21 }
0x102f   :  { %5650 = vmatprep.subr.bf16.mxu1 %v6083_v13 }
0x1037   :  { %v1585_v22 = vpop.permute.xlu0 %1584 }
0x1038   :  { %5239 = vmatmul.mubr.msk.f32.vlgmr.msra.gmra.mrb[18].mxu0 %vm450_vm5, %v1585_v22 }
0x1039   :  { %5634 = vmatpush3.bf16.msra.mxu0 %v6227_v17  ;;  %5260 = vmatprep.mubr.msk.f32.mxu0 %vm6084_vm1, %v6085_v27 }
0x103a   :  { %5635 = vmatprep.subr.bf16.mxu0 %v6083_v13 }
0x103d   :  { %5637 = vmatpush3.bf16.msra.mxu0 %v6250_v23 }
0x103e   :  { %5644 = vmatprep.subr.bf16.mxu0 %v6083_v13 }
0x10fc   :  { %v1729_v15 = vpop.f32.mrb[18].mxu1 }
0x10fd   :  { %v1748_v25 = vadd.f32 %v1729_v15, %v6346_v14  ;;  %v5251_v63 = vpop.f32.mrb[19].mxu1  ;;  %v1734_v60 = vadd.f32 %v1729_v15, %v6331_v61 }
0x10ff   :  { %1753 = vrot.lane.b32.xlu1 %v1748_v25, %s6087_s4  ;;  %v4789_v33 = vmul.f32 -1.442695, %v1734_v60 }
0x1101   :  { %5875 = vpow2.f32 %v4789_v33 }
0x110b   :  { %v1654_v29 = vpop.f32.mrb[18].mxu0  ;;  %v5876_v39 = vpop.eup %5875 }
0x110c   :  { %v1747_v30 = vadd.f32 %v1654_v29, %v6353_v20  ;;  %v5240_v56 = vpop.f32.mrb[19].mxu0  ;;  %v1733_v36 = vadd.f32 %v1654_v29, %v6341_v7  ;;  %v1742_v44 = vadd.f32 1.0, %v5876_v39 }
0x110e   :  { %1751 = vrot.lane.b32.xlu0 %v1747_v30, %s6087_s4  ;;  %v4788_v42 = vmul.f32 -1.442695, %v1733_v36 }
0x1110   :  { %5877 = vpow2.f32 %v4788_v42 }
0x1111   :  { %5879 = vrcp.f32 %v1742_v44 }
0x111a   :  { %v5878_v47 = vpop.eup %5877 }
0x111b   :  { %v5880_v50 = vpop.eup %5879  ;;  %v1741_v2 = vadd.f32 1.0, %v5878_v47 }
0x111d   :  { %5881 = vrcp.f32 %v1741_v2 }
0x1127   :  { %v5882_v53 = vpop.eup %5881 }
0x1171   :  { %v1754_v51 = vpop.permute.xlu1 %1753 }
0x1172   :  { %v1758_v59 = vmul.f32 %v5880_v50, %v1754_v51 }
0x1174   :  { %1763 = vrot.lane.b32.xlu1 %v1758_v59, %s6087_s4 }
0x1180   :  { %v1752_v55 = vpop.permute.xlu0 %1751 }
0x1181   :  { %v1757_v57 = vmul.f32 %v5882_v53, %v1752_v55 }
0x1183   :  { %1761 = vrot.lane.b32.xlu0 %v1757_v57, %s6087_s4 }
0x11e6   :  { %v1764_v11 = vpop.permute.xlu1 %1763 }
0x11e7   :  { %v1768_v58 = vadd.f32 %v1764_v11, %v6331_v61 }
0x11e9   :  { %5883 = vtanh.f32 %v1768_v58 }
0x11f3   :  { %v5884_v4 = vpop.eup %5883 }
0x11f4   :  { %v1772_v6 = vsub.f32 %v6579_v0, %v5884_v4 }
0x11f5   :  { %v1762_v8 = vpop.permute.xlu0 %1761 }
0x11f6   :  { %v1767_v12 = vadd.f32 %v1762_v8, %v6341_v7  ;;  %1777 = vrot.lane.b32.xlu1 %v1772_v6, %s6089_s12 }
0x11f8   :  { %5885 = vtanh.f32 %v1767_v12 }
0x1202   :  { %v5886_v5 = vpop.eup %5885 }
0x1203   :  { %v1771_v22 = vsub.f32 %v6586_v19, %v5886_v5 }
0x1205   :  { %1775 = vrot.lane.b32.xlu0 %v1771_v22, %s6089_s12 }
0x1268   :  { %v1778_v15 = vpop.permute.xlu1 %1777 }
0x1269   :  { %v1782_v25 = vmul.f32 %v5880_v50, %v1778_v15 }
0x126b   :  { %1787 = vrot.lane.b32.xlu1 %v1782_v25, %s6090_s1 }
0x1277   :  { %v1776_v61 = vpop.permute.xlu0 %1775 }
0x1278   :  { %v1781_v63 = vmul.f32 %v5882_v53, %v1776_v61 }
0x127a   :  { %1785 = vrot.lane.b32.xlu0 %v1781_v63, %s6090_s1 }
0x12dd   :  { %v1788_v29 = vpop.permute.xlu1 %1787 }
0x12de   :  { %v1792_v30 = vadd.f32 %v5884_v4, %v1788_v29 }
0x12e0   :  { %v1794_v7 = vsub.f32 %v1792_v30, %v6579_v0 }
0x12e2   :  { %v1796_v56 = vmul.f32 %v1794_v7, %v6486_v9 }
0x12e4   :  { %v6623_v60 = vadd.f32 %v1796_v56, %v6579_v0 }
0x12e6   :  { %1887 = vrot.lane.b32.xlu1 %v6623_v60, %s6087_s4 }
0x12ec   :  { %v1786_v33 = vpop.permute.xlu0 %1785 }
0x12ed   :  { %v1791_v36 = vadd.f32 %v5886_v5, %v1786_v33 }
0x12ef   :  { %v1793_v39 = vsub.f32 %v1791_v36, %v6586_v19 }
0x12f1   :  { %v1795_v42 = vmul.f32 %v1793_v39, %v6477_v62 }
0x12f3   :  { %v6630_v44 = vadd.f32 %v1795_v42, %v6586_v19 }
0x12f5   :  { %1812 = vrot.lane.b32.xlu0 %v6630_v44, %s6087_s4 }
0x1358   :  { %v1888_v47 = vpop.permute.xlu1 %1887 }
0x1359   :  { %5272 = vmatmul.mubr.msk.f32.vlgmr.msra.gmra.mrb[20].mxu1 %vm450_vm5, %v1888_v47 }
0x135a   :  { %5652 = vmatpush3.bf16.msra.mxu1 %v6208_v10  ;;  %5293 = vmatprep.mubr.msk.f32.mxu1 %vm6084_vm1, %v6085_v27 }
0x135b   :  { %5653 = vmatprep.subr.bf16.mxu1 %v6083_v13 }
0x135e   :  { %5655 = vmatpush3.bf16.msra.mxu1 %v6241_v21 }
0x1367   :  { %v1813_v50 = vpop.permute.xlu0 %1812 }
0x1368   :  { %5261 = vmatmul.mubr.msk.f32.vlgmr.msra.gmra.mrb[20].mxu0 %vm450_vm5, %v1813_v50 }
0x1369   :  { %5646 = vmatpush3.bf16.msra.mxu0 %v6227_v17  ;;  %5282 = vmatprep.mubr.msk.f32.mxu0 %vm6084_vm1, %v6085_v27 }
0x136a   :  { %5647 = vmatprep.subr.bf16.mxu0 %v6083_v13 }
0x136d   :  { %5649 = vmatpush3.bf16.msra.mxu0 %v6250_v23 }
0x142c   :  { %v1957_v10 = vpop.f32.mrb[20].mxu1 }
0x142d   :  { %v1976_v51 = vadd.f32 %v1957_v10, %v6346_v14  ;;  %v5273_v2 = vpop.f32.mrb[21].mxu1  ;;  %v1962_v17 = vadd.f32 %v1957_v10, %v6323_v52 }
0x142f   :  { %1981 = vrot.lane.b32.xlu1 %v1976_v51, %s6087_s4  ;;  %v4793_v55 = vmul.f32 -1.442695, %v1962_v17 }
0x1431   :  { %5887 = vpow2.f32 %v4793_v55 }
0x143b   :  { %v1882_v59 = vpop.f32.mrb[20].mxu0  ;;  %v5888_v11 = vpop.eup %5887 }
0x143c   :  { %v1975_v21 = vadd.f32 %v1882_v59, %v6353_v20  ;;  %v5262_v53 = vpop.f32.mrb[21].mxu0  ;;  %v1961_v57 = vadd.f32 %v1882_v59, %v6355_v24  ;;  %v1970_v58 = vadd.f32 1.0, %v5888_v11 }
0x143e   :  { %1979 = vrot.lane.b32.xlu0 %v1975_v21, %s6087_s4  ;;  %v4792_v23 = vmul.f32 -1.442695, %v1961_v57 }
0x1440   :  { %5889 = vpow2.f32 %v4792_v23 }
0x1441   :  { %5891 = vrcp.f32 %v1970_v58 }
0x144a   :  { %v5890_v4 = vpop.eup %5889 }
0x144b   :  { %v5892_v6 = vpop.eup %5891  ;;  %v1969_v12 = vadd.f32 1.0, %v5890_v4 }
0x144d   :  { %5893 = vrcp.f32 %v1969_v12 }
0x1457   :  { %v5894_v22 = vpop.eup %5893 }
0x14a1   :  { %v1982_v8 = vpop.permute.xlu1 %1981 }
0x14a2   :  { %v1986_v5 = vmul.f32 %v5892_v6, %v1982_v8 }
0x14a4   :  { %1991 = vrot.lane.b32.xlu1 %v1986_v5, %s6087_s4 }
0x14b0   :  { %v1980_v15 = vpop.permute.xlu0 %1979 }
0x14b1   :  { %v1985_v25 = vmul.f32 %v5894_v22, %v1980_v15 }
0x14b3   :  { %1989 = vrot.lane.b32.xlu0 %v1985_v25, %s6087_s4 }
0x1516   :  { %v1992_v61 = vpop.permute.xlu1 %1991 }
0x1517   :  { %v1996_v63 = vadd.f32 %v1992_v61, %v6323_v52 }
0x1519   :  { %5895 = vtanh.f32 %v1996_v63 }
0x1523   :  { %v5896_v29 = vpop.eup %5895 }
0x1524   :  { %v2000_v30 = vsub.f32 %v6623_v60, %v5896_v29 }
0x1525   :  { %v1990_v7 = vpop.permute.xlu0 %1989 }
0x1526   :  { %v1995_v56 = vadd.f32 %v1990_v7, %v6355_v24  ;;  %2005 = vrot.lane.b32.xlu1 %v2000_v30, %s6089_s12 }
0x1528   :  { %5897 = vtanh.f32 %v1995_v56 }
0x1532   :  { %v5898_v33 = vpop.eup %5897 }
0x1533   :  { %v1999_v36 = vsub.f32 %v6630_v44, %v5898_v33 }
0x1535   :  { %2003 = vrot.lane.b32.xlu0 %v1999_v36, %s6089_s12 }
0x1598   :  { %v2006_v39 = vpop.permute.xlu1 %2005 }
0x1599   :  { %v2010_v42 = vmul.f32 %v5892_v6, %v2006_v39 }
0x159b   :  { %2015 = vrot.lane.b32.xlu1 %v2010_v42, %s6090_s1 }
0x15a7   :  { %v2004_v52 = vpop.permute.xlu0 %2003 }
0x15a8   :  { %v2009_v47 = vmul.f32 %v5894_v22, %v2004_v52 }
0x15aa   :  { %2013 = vrot.lane.b32.xlu0 %v2009_v47, %s6090_s1 }
0x160d   :  { %v2016_v50 = vpop.permute.xlu1 %2015 }
0x160e   :  { %v2020_v10 = vadd.f32 %v5896_v29, %v2016_v50 }
0x1610   :  { %v2022_v24 = vsub.f32 %v2020_v10, %v6623_v60 }
0x1612   :  { %v2024_v51 = vmul.f32 %v2022_v24, %v6434_v45 }
0x1614   :  { %v6665_v2 = vadd.f32 %v2024_v51, %v6623_v60 }
0x1616   :  { %2115 = vrot.lane.b32.xlu1 %v6665_v2, %s6087_s4 }
0x161c   :  { %v2014_v59 = vpop.permute.xlu0 %2013 }
0x161d   :  { %v2019_v21 = vadd.f32 %v5898_v33, %v2014_v59 }
0x161f   :  { %v2021_v53 = vsub.f32 %v2019_v21, %v6630_v44 }
0x1621   :  { %v2023_v17 = vmul.f32 %v2021_v53, %v6425_v37 }
0x1623   :  { %v6672_v55 = vadd.f32 %v2023_v17, %v6630_v44  ;;  %v2028_v17 = vmul.f32 %v6665_v2, %v6434_v45 }
0x1625   :  { %2040 = vrot.lane.b32.xlu0 %v6672_v55, %s6087_s4 }
0x1688   :  { %v2116_v57 = vpop.permute.xlu1 %2115 }
0x1689   :  { %5294 = vmatmul.mubr.msk.f32.vlgmr.msra.gmra.mrb[22].mxu1 %vm450_vm5, %v2116_v57  ;;  %v1116_v57 = vmul.f32 %v6481_v1, %v6477_v62  ;;  %v1799_v1 = vmul.f32 %v6630_v44, %v6477_v62 }
0x1697   :  { %v2041_v11 = vpop.permute.xlu0 %2040 }
0x1698   :  { %5283 = vmatmul.mubr.msk.f32.vlgmr.msra.gmra.mrb[22].mxu0 %vm450_vm5, %v2041_v11  ;;  %v659_v11 = vmul.f32 %v6379_v28, %v6376_v26  ;;  %v2306_v28 = vld [vmem:[#allocation4 + $0x60] sm:$0xff] }
0x175c   :  { %v2185_v23 = vpop.f32.mrb[22].mxu1 }
0x175d   :  { %v2204_v58 = vadd.f32 %v2185_v23, %v6346_v14  ;;  %v5295_v4 = vpop.f32.mrb[23].mxu1  ;;  %v2190_v5 = vadd.f32 %v2185_v23, %v6325_v54  ;;  %v887_v23 = vmul.f32 %v6438_v49, %v6434_v45 }
0x175e   :  { %v2299_v4 = vld [vmem:[#allocation4 + $0x28] sm:$0xff] }
0x175f   :  { %2209 = vrot.lane.b32.xlu1 %v2204_v58, %s6087_s4  ;;  %v4797_v22 = vmul.f32 -1.442695, %v2190_v5  ;;  %v2298_v58 = vld [vmem:[#allocation4 + $0x20] sm:$0xff]  ;;  %v2300_v5 = vld [vmem:[#allocation4 + $0x30] sm:$0xff] }
0x1761   :  { %5899 = vpow2.f32 %v4797_v22  ;;  %v2301_v22 = vld [vmem:[#allocation4 + $0x38] sm:$0xff] }
0x176b   :  { %v2110_v6 = vpop.f32.mrb[22].mxu0  ;;  %v5900_v25 = vpop.eup %5899 }
0x176c   :  { %v2203_v8 = vadd.f32 %v2110_v6, %v6353_v20  ;;  %v5284_v12 = vpop.f32.mrb[23].mxu0  ;;  %v2189_v15 = vadd.f32 %v2110_v6, %v6350_v18  ;;  %v2198_v63 = vadd.f32 1.0, %v5900_v25  ;;  %v5656_v6 = vpack.c.bf16 %v2299_v4, %v2298_v58  ;;  %v2305_v58 = vld [vmem:[#allocation4 + $0x58] sm:$0xff] }
0x176d   :  { %v5660_v25 = vpack.c.bf16 %v2301_v22, %v2300_v5 }
0x176e   :  { %2207 = vrot.lane.b32.xlu0 %v2203_v8, %s6087_s4  ;;  %v4796_v61 = vmul.f32 -1.442695, %v2189_v15  ;;  %v2307_v8 = vld [vmem:[#allocation4 + $0x68] sm:$0xff]  ;;  %5657 = vmatprep.subr.bf16.mxu0 %v5656_v6 }
0x176f   :  { %v5672_v12 = vpack.c.bf16 %v2307_v8, %v2306_v28  ;;  %5659 = vmatpush3.bf16.msra.mxu0 %v5656_v6 }
0x1770   :  { %5901 = vpow2.f32 %v4796_v61  ;;  %v2309_v61 = vld [vmem:[#allocation4 + $0x78] sm:$0xff]  ;;  %5661 = vmatprep.subr.bf16.mxu0 %v5660_v25 }
0x1771   :  { %5903 = vrcp.f32 %v2198_v63  ;;  %5673 = vmatprep.subr.bf16.mxu1 %v5672_v12 }
0x1772   :  { %5675 = vmatpush3.bf16.msra.mxu1 %v5672_v12 }
0x1773   :  { %5663 = vmatpush3.bf16.msra.mxu0 %v5660_v25 }
0x177a   :  { %v5902_v14 = vpop.eup %5901 }
0x177b   :  { %v5904_v29 = vpop.eup %5903  ;;  %v2197_v7 = vadd.f32 1.0, %v5902_v14 }
0x177d   :  { %5905 = vrcp.f32 %v2197_v7  ;;  %v2295_v7 = vld [vmem:[#allocation4 + $0x8] sm:$0xff] }
0x1787   :  { %v5906_v20 = vpop.eup %5905 }
0x17d1   :  { %v2210_v30 = vpop.permute.xlu1 %2209 }
0x17d2   :  { %v2214_v56 = vmul.f32 %v5904_v29, %v2210_v30  ;;  %v2294_v30 = vld [vmem:[#allocation4] sm:$0xff] }
0x17d4   :  { %2219 = vrot.lane.b32.xlu1 %v2214_v56, %s6087_s4  ;;  %v2302_v56 = vld [vmem:[#allocation4 + $0x40] sm:$0xff] }
0x17e0   :  { %v2208_v33 = vpop.permute.xlu0 %2207 }
0x17e1   :  { %v2213_v36 = vmul.f32 %v5906_v20, %v2208_v33  ;;  %v2303_v33 = vld [vmem:[#allocation4 + $0x48] sm:$0xff] }
0x17e3   :  { %2217 = vrot.lane.b32.xlu0 %v2213_v36, %s6087_s4 }
0x1846   :  { %v2220_v39 = vpop.permute.xlu1 %2219 }
0x1847   :  { %v2224_v42 = vadd.f32 %v2220_v39, %v6325_v54  ;;  %v5680_v39 = vpack.c.bf16 %v2303_v33, %v2302_v56 }
0x1849   :  { %5907 = vtanh.f32 %v2224_v42  ;;  %v1800_v42 = vmul.f32 %v6623_v60, %v6486_v9 }
0x1853   :  { %v5908_v52 = vpop.eup %5907 }
0x1854   :  { %v2228_v47 = vsub.f32 %v6665_v2, %v5908_v52 }
0x1855   :  { %v2218_v50 = vpop.permute.xlu0 %2217 }
0x1856   :  { %v2223_v10 = vadd.f32 %v2218_v50, %v6350_v18  ;;  %2233 = vrot.lane.b32.xlu1 %v2228_v47, %s6089_s12  ;;  %v1572_v18 = vmul.f32 %v6579_v0, %v6538_v43  ;;  %v1343_v0 = vmul.f32 %v6542_v3, %v6538_v43  ;;  %v2308_v3 = vld [vmem:[#allocation4 + $0x70] sm:$0xff]  ;;  %v1344_v47 = vmul.f32 %v6533_v35, %v6529_v34 }
0x1857   :  { %v5676_v44 = vpack.c.bf16 %v2309_v61, %v2308_v3  ;;  %v2310_v61 = vld [vmem:[#allocation7] sm:$0xff] }
0x1858   :  { %5909 = vtanh.f32 %v2223_v10 }
0x1859   :  { %5677 = vmatprep.subr.bf16.mxu1 %v5676_v44 }
0x185a   :  { %5679 = vmatpush3.bf16.msra.mxu1 %v5676_v44  ;;  %v2311_v44 = vld [vmem:[#allocation7 + $0x8] sm:$0xff] }
0x185b   :  { %5681 = vmatprep.subr.bf16.mxu1 %v5680_v39 }
0x1862   :  { %v5910_v24 = vpop.eup %5909 }
0x1863   :  { %v2227_v51 = vsub.f32 %v6672_v55, %v5910_v24 }
0x1865   :  { %2231 = vrot.lane.b32.xlu0 %v2227_v51, %s6089_s12 }
0x18c8   :  { %v2234_v59 = vpop.permute.xlu1 %2233 }
0x18c9   :  { %v2238_v21 = vmul.f32 %v5904_v29, %v2234_v59  ;;  %v888_v59 = vmul.f32 %v6429_v41, %v6425_v37  ;;  %v1115_v41 = vmul.f32 %v6490_v16, %v6486_v9 }
0x18cb   :  { %2243 = vrot.lane.b32.xlu1 %v2238_v21, %s6090_s1 }
0x18d7   :  { %v2232_v54 = vpop.permute.xlu0 %2231 }
0x18d8   :  { %v2237_v53 = vmul.f32 %v5906_v20, %v2232_v54  ;;  %v5664_v20 = vpack.c.bf16 %v2295_v7, %v2294_v30  ;;  %v2314_v30 = vld [vmem:[#allocation7 + $0x20] sm:$0xff]  ;;  %v2315_v7 = vld [vmem:[#allocation7 + $0x28] sm:$0xff] }
0x18d9   :  { %v6786_v33 = vpack.c.bf16 %v2315_v7, %v2314_v30 }
0x18da   :  { %2241 = vrot.lane.b32.xlu0 %v2237_v53, %s6090_s1  ;;  %5665 = vmatprep.subr.bf16.mxu0 %v5664_v20 }
0x18de   :  { %2035 = vrot.lane.b32.xlu0 %v2028_v17, %s6087_s4  ;;  %v1571_v17 = vmul.f32 %v6586_v19, %v6529_v34 }
0x18e2   :  { %1579 = vrot.lane.b32.xlu0 %v1572_v18, %s6087_s4 }
0x18e6   :  { %1123 = vrot.lane.b32.xlu0 %v1116_v57, %s6087_s4 }
0x18ea   :  { %666 = vrot.lane.b32.xlu0 %v659_v11, %s6087_s4 }
0x18ee   :  { %890 = vrot.lane.b32.xlu0 %v887_v23, %s6087_s4  ;;  %v2296_v23 = vld [vmem:[#allocation4 + $0x10] sm:$0xff] }
0x18f2   :  { %1346 = vrot.lane.b32.xlu0 %v1343_v0, %s6087_s4  ;;  %v2297_v0 = vld [vmem:[#allocation4 + $0x18] sm:$0xff] }
0x18f3   :  { %v5668_v28 = vpack.c.bf16 %v2297_v0, %v2296_v23 }
0x18f6   :  { %1802 = vrot.lane.b32.xlu0 %v1799_v1, %s6087_s4  ;;  %v2304_v1 = vld [vmem:[#allocation4 + $0x50] sm:$0xff] }
0x18f7   :  { %v5684_v6 = vpack.c.bf16 %v2305_v58, %v2304_v1 }
0x193d   :  { %v2244_v49 = vpop.permute.xlu1 %2243 }
0x193e   :  { %v2248_v15 = vadd.f32 %v5908_v52, %v2244_v49 }
0x1940   :  { %v2250_v63 = vsub.f32 %v2248_v15, %v6665_v2 }
0x1942   :  { %v2252_v14 = vmul.f32 %v2250_v63, %v6383_v31 }
0x1944   :  { %v6718_v29 = vadd.f32 %v2252_v14, %v6665_v2 }
0x1946   :  { %v2256_v36 = vmul.f32 %v6718_v29, %v6383_v31 }
0x1948   :  { %2263 = vrot.lane.b32.xlu1 %v2256_v36, %s6087_s4  ;;  %v2312_v36 = vld [vmem:[#allocation7 + $0x10] sm:$0xff] }
0x194c   :  { %v2242_v52 = vpop.permute.xlu0 %2241  ;;  %1807 = vrot.lane.b32.xlu1 %v1800_v42, %s6087_s4 }
0x194d   :  { %v2247_v2 = vadd.f32 %v5910_v24, %v2242_v52  ;;  %v658_v24 = vmul.f32 %v6386_v32, %v6383_v31  ;;  %v2027_v32 = vmul.f32 %v6672_v55, %v6425_v37 }
0x194f   :  { %v2249_v50 = vsub.f32 %v2247_v2, %v6672_v55  ;;  %v2316_v2 = vld [vmem:[#allocation7 + $0x30] sm:$0xff] }
0x1950   :  { %v2036_v10 = vpop.permute.xlu0 %2035  ;;  %1351 = vrot.lane.b32.xlu1 %v1344_v47, %s6087_s4  ;;  %v2317_v47 = vld [vmem:[#allocation7 + $0x38] sm:$0xff] }
0x1951   :  { %v2251_v51 = vmul.f32 %v2249_v50, %v6376_v26  ;;  %2038 = vst.msk [vmem:[#allocation2 + $0x48] sm:$0xff] %vm450_vm5, %v2036_v10 }
0x1953   :  { %v6735_v60 = vadd.f32 %v2251_v51, %v6672_v55  ;;  %v6797_v51 = vpack.c.bf16 %v2317_v47, %v2316_v2 }
0x1954   :  { %v1580_v21 = vpop.permute.xlu0 %1579  ;;  %895 = vrot.lane.b32.xlu1 %v888_v59, %s6087_s4 }
0x1955   :  { %1582 = vst.msk [vmem:[#allocation2 + $0x58] sm:$0xff] %vm450_vm5, %v1580_v21  ;;  %v2255_v35 = vmul.f32 %v6735_v60, %v6376_v26 }
0x1957   :  { %2258 = vrot.lane.b32.xlu0 %v2255_v35, %s6087_s4 }
0x1958   :  { %v1124_v54 = vpop.permute.xlu0 %1123  ;;  %661 = vrot.lane.b32.xlu1 %v658_v24, %s6087_s4  ;;  %v2287_v8 = vld [vmem:[#allocation2 + $0x48] sm:$0xff] }
0x1959   :  { %1126 = vst.msk [vmem:[#allocation2 + $0x68] sm:$0xff] %vm450_vm5, %v1124_v54 }
0x195c   :  { %v667_v53 = vpop.permute.xlu0 %666  ;;  %1118 = vrot.lane.b32.xlu1 %v1115_v41, %s6087_s4  ;;  %v2289_v5 = vld [vmem:[#allocation2 + $0x58] sm:$0xff] }
0x195d   :  { %670 = vst.msk [vmem:[#allocation2 + $0x78] sm:$0xff] %vm450_vm5, %v667_v53 }
0x1960   :  { %v891_v18 = vpop.permute.xlu0 %890  ;;  %1574 = vrot.lane.b32.xlu1 %v1571_v17, %s6087_s4  ;;  %v2291_v25 = vld [vmem:[#allocation2 + $0x68] sm:$0xff]  ;;  %v2318_v17 = vld [vmem:[%s7323_s8] sm:$0x1] }
0x1961   :  { %893 = vst.msk [vmem:[#allocation2 + $0x8] sm:$0xff] %vm450_vm5, %v891_v18  ;;  %v2319_v18 = vld [vmem:[%s7323_s8 + $0x1] sm:$0x1] }
0x1962   :  { %v2344_v23 = vcombine.low %v2318_v17, %v2319_v18 }
0x1964   :  { %v1347_v57 = vpop.permute.xlu0 %1346  ;;  %2030 = vrot.lane.b32.xlu1 %v2027_v32, %s6087_s4  ;;  %v2293_v56 = vld [vmem:[#allocation2 + $0x78] sm:$0xff]  ;;  %v2320_v32 = vld [vmem:[%s7324_s9] sm:$0x1]  ;;  %v2351_v1 = vrot.slane %v2344_v23, %v6309_v40 }
0x1965   :  { %1349 = vst.msk [vmem:[#allocation2 + $0x18] sm:$0xff] %vm450_vm5, %v1347_v57  ;;  %v2321_v57 = vld [vmem:[%s7324_s9 + $0x1] sm:$0x1] }
0x1968   :  { %v1803_v16 = vpop.permute.xlu0 %1802  ;;  %v2279_v50 = vld [vmem:[#allocation2 + $0x8] sm:$0xff] }
0x1969   :  { %1805 = vst.msk [vmem:[#allocation2 + $0x28] sm:$0xff] %vm450_vm5, %v1803_v16  ;;  %v2322_v16 = vadd.f32 %v2320_v32, %v2318_v17 }
0x196c   :  { %v2281_v35 = vld [vmem:[#allocation2 + $0x18] sm:$0xff] }
0x1970   :  { %v2283_v54 = vld [vmem:[#allocation2 + $0x28] sm:$0xff] }
0x19ba   :  { %v2264_v11 = vpop.permute.xlu1 %2263 }
0x19bb   :  { %2266 = vst.msk [vmem:[#allocation2 + $0x40] sm:$0xff] %vm450_vm5, %v2264_v11  ;;  %v2323_v11 = vadd.f32 %v2321_v57, %v2319_v18 }
0x19be   :  { %v1808_v19 = vpop.permute.xlu1 %1807 }
0x19bf   :  { %1810 = vst.msk [vmem:[#allocation2 + $0x50] sm:$0xff] %vm450_vm5, %v1808_v19  ;;  %v2326_v19 = vcombine.low %v2322_v16, %v2323_v11 }
0x19c1   :  { %v2333_v0 = vrot.slane %v2326_v19, %v6309_v40 }
0x19c2   :  { %v1352_v4 = vpop.permute.xlu1 %1351  ;;  %v2286_v55 = vld [vmem:[#allocation2 + $0x40] sm:$0xff] }
0x19c3   :  { %1354 = vst.msk [vmem:[#allocation2 + $0x60] sm:$0xff] %vm450_vm5, %v1352_v4  ;;  %5304 = vmatprep.mubr.msk.f32.mxu0 %vm450_vm5, %v2286_v55  ;;  %5344 = vmatprep.mubr.msk.f32.mxu1 %vm450_vm5, %v2286_v55  ;;  %v2340_v58 = vrot.slane %v2333_v0, %v6309_v40  ;;  %v2358_v4 = vrot.slane %v2351_v1, %v6309_v40 }
0x19c4   :  { %5305 = vmatmul.mubr.msk.f32.vlgmr.msra.gmra.mrb[24].mxu0 %vm450_vm5, %v2287_v8  ;;  %5345 = vmatmul.mubr.msk.f32.vlgmr.msra.gmra.mrb[24].mxu1 %vm450_vm5, %v2287_v8 }
0x19c5   :  { %5667 = vmatpush3.bf16.msra.mxu0 %v5664_v20  ;;  %5683 = vmatpush3.bf16.msra.mxu1 %v5680_v39  ;;  %v6784_v20 = vpack.c.bf16 %v2311_v44, %v2310_v61  ;;  %v2313_v39 = vld [vmem:[#allocation7 + $0x18] sm:$0xff]  ;;  %v2360_v55 = vsel %vm193_vm2, %v2340_v58, %v2358_v4 }
0x19c6   :  { %v896_v12 = vpop.permute.xlu1 %895  ;;  %v2288_v49 = vld [vmem:[#allocation2 + $0x50] sm:$0xff]  ;;  %5669 = vmatprep.subr.bf16.mxu0 %v5668_v28  ;;  %5685 = vmatprep.subr.bf16.mxu1 %v5684_v6  ;;  %v6795_v10 = vpack.c.bf16 %v2313_v39, %v2312_v36 }
0x19c7   :  { %898 = vst.msk [vmem:[#allocation2 + $0x70] sm:$0xff] %vm450_vm5, %v896_v12  ;;  %5307 = vmatprep.mubr.msk.f32.mxu0 %vm450_vm5, %v2288_v49  ;;  %5347 = vmatprep.mubr.msk.f32.mxu1 %vm450_vm5, %v2288_v49 }
0x19c8   :  { %5308 = vmatmul.mubr.msk.f32.gmra.mrb[26].mxu0 %vm450_vm5, %v2289_v5  ;;  %5348 = vmatmul.mubr.msk.f32.gmra.mrb[26].mxu1 %vm450_vm5, %v2289_v5 }
0x19c9   :  { %v2259_v22 = vpop.permute.xlu0 %2258  ;;  %5671 = vmatpush3.bf16.msra.mxu0 %v5668_v28  ;;  %5687 = vmatpush3.bf16.msra.mxu1 %v5684_v6  ;;  %v2634_v28 = vrot.slane %v2360_v55, %v6318_v48  ;;  %v2856_v6 = vrot.slane %v2360_v55, %v343_v46 }
0x19ca   :  { %2261 = vst.msk [vmem:[#allocation2 + $0x38] sm:$0xff] %vm450_vm5, %v2259_v22  ;;  %v662_v3 = vpop.permute.xlu1 %661  ;;  %v2290_v15 = vld [vmem:[#allocation2 + $0x60] sm:$0xff]  ;;  %5688 = vmatprep.subr.bf16.mxu0 %v6083_v13  ;;  %5694 = vmatprep.subr.bf16.mxu1 %v6083_v13 }
0x19cb   :  { %664 = vst.msk [vmem:[#allocation2] sm:$0xff] %vm450_vm5, %v662_v3  ;;  %5310 = vmatprep.mubr.msk.f32.mxu0 %vm450_vm5, %v2290_v15  ;;  %5350 = vmatprep.mubr.msk.f32.mxu1 %vm450_vm5, %v2290_v15 }
0x19cc   :  { %5311 = vmatmul.mubr.msk.f32.gmra.mrb[28].mxu0 %vm450_vm5, %v2291_v25  ;;  %5351 = vmatmul.mubr.msk.f32.gmra.mrb[28].mxu1 %vm450_vm5, %v2291_v25 }
0x19ce   :  { %v1119_v63 = vpop.permute.xlu1 %1118  ;;  %v2292_v14 = vld [vmem:[#allocation2 + $0x70] sm:$0xff] }
0x19cf   :  { %1121 = vst.msk [vmem:[#allocation2 + $0x10] sm:$0xff] %vm450_vm5, %v1119_v63  ;;  %5313 = vmatprep.mubr.msk.f32.mxu0 %vm450_vm5, %v2292_v14  ;;  %5353 = vmatprep.mubr.msk.f32.mxu1 %vm450_vm5, %v2292_v14 }
0x19d0   :  { %5314 = vmatmul.mubr.msk.f32.gmra.mrb[30].mxu0 %vm450_vm5, %v2293_v56  ;;  %5354 = vmatmul.mubr.msk.f32.gmra.mrb[30].mxu1 %vm450_vm5, %v2293_v56 }
0x19d1   :  { %v2285_v53 = vld [vmem:[#allocation2 + $0x38] sm:$0xff] }
0x19d2   :  { %v1575_v42 = vpop.permute.xlu1 %1574  ;;  %v2278_v52 = vld [vmem:[#allocation2] sm:$0xff] }
0x19d3   :  { %1577 = vst.msk [vmem:[#allocation2 + $0x20] sm:$0xff] %vm450_vm5, %v1575_v42  ;;  %5324 = vmatprep.mubr.msk.f32.mxu0 %vm450_vm5, %v2278_v52  ;;  %5364 = vmatprep.mubr.msk.f32.mxu1 %vm450_vm5, %v2278_v52 }
0x19d4   :  { %5325 = vmatmul.mubr.msk.f32.vlgmr.msra.gmra.mrb[24].mxu0 %vm450_vm5, %v2279_v50  ;;  %5365 = vmatmul.mubr.msk.f32.vlgmr.msra.gmra.mrb[24].mxu1 %vm450_vm5, %v2279_v50 }
0x19d5   :  { %5690 = vmatpush3.bf16.msra.mxu0 %v6784_v20  ;;  %5696 = vmatpush3.bf16.msra.mxu1 %v6786_v33 }
0x19d6   :  { %v2031_v59 = vpop.permute.xlu1 %2030  ;;  %v2280_v21 = vld [vmem:[#allocation2 + $0x10] sm:$0xff]  ;;  %5691 = vmatprep.subr.bf16.mxu0 %v6083_v13  ;;  %5697 = vmatprep.subr.bf16.mxu1 %v6083_v13 }
0x19d7   :  { %2033 = vst.msk [vmem:[#allocation2 + $0x30] sm:$0xff] %vm450_vm5, %v2031_v59  ;;  %5327 = vmatprep.mubr.msk.f32.mxu0 %vm450_vm5, %v2280_v21  ;;  %5367 = vmatprep.mubr.msk.f32.mxu1 %vm450_vm5, %v2280_v21 }
0x19d8   :  { %5328 = vmatmul.mubr.msk.f32.gmra.mrb[26].mxu0 %vm450_vm5, %v2281_v35  ;;  %5368 = vmatmul.mubr.msk.f32.gmra.mrb[26].mxu1 %vm450_vm5, %v2281_v35 }
0x19d9   :  { %5693 = vmatpush3.bf16.msra.mxu0 %v6795_v10  ;;  %5699 = vmatpush3.bf16.msra.mxu1 %v6797_v51 }
0x19da   :  { %v2282_v24 = vld [vmem:[#allocation2 + $0x20] sm:$0xff]  ;;  %5700 = vmatprep.subr.bf16.mxu0 %v6083_v13  ;;  %5706 = vmatprep.subr.bf16.mxu1 %v6083_v13 }
0x19db   :  { %5330 = vmatprep.mubr.msk.f32.mxu0 %vm450_vm5, %v2282_v24  ;;  %5370 = vmatprep.mubr.msk.f32.mxu1 %vm450_vm5, %v2282_v24  ;;  %v6881_v24 = vrot.slane %v2320_v32, %v6318_v48 }
0x19dc   :  { %5331 = vmatmul.mubr.msk.f32.gmra.mrb[28].mxu0 %vm450_vm5, %v2283_v54  ;;  %5371 = vmatmul.mubr.msk.f32.gmra.mrb[28].mxu1 %vm450_vm5, %v2283_v54  ;;  %v6884_v54 = vrot.slane %v2321_v57, %v6318_v48 }
0x19de   :  { %v2284_v41 = vld [vmem:[#allocation2 + $0x30] sm:$0xff] }
0x19df   :  { %5333 = vmatprep.mubr.msk.f32.mxu0 %vm450_vm5, %v2284_v41  ;;  %5373 = vmatprep.mubr.msk.f32.mxu1 %vm450_vm5, %v2284_v41 }
0x19e0   :  { %5334 = vmatmul.mubr.msk.f32.gmra.mrb[30].mxu0 %vm450_vm5, %v2285_v53  ;;  %5374 = vmatmul.mubr.msk.f32.gmra.mrb[30].mxu1 %vm450_vm5, %v2285_v53 }
0x19e1   :  { %5384 = vmatprep.mubr.msk.f32.mxu0 %vm6084_vm1, %v6085_v27  ;;  %5395 = vmatprep.mubr.msk.f32.mxu1 %vm6084_vm1, %v6085_v27 }
0x19e4   :  { %5385 = vmatmul.mubr.f32.vlgmr.msra.gmra.mrb[32].mxu0 %v6085_v27  ;;  %5396 = vmatmul.mubr.f32.vlgmr.msra.gmra.mrb[32].mxu1 %v6085_v27 }
0x19e5   :  { %5702 = vmatpush3.bf16.msra.mxu0 %v6784_v20  ;;  %5708 = vmatpush3.bf16.msra.mxu1 %v6786_v33 }
0x19e6   :  { %5703 = vmatprep.subr.bf16.mxu0 %v6083_v13  ;;  %5709 = vmatprep.subr.bf16.mxu1 %v6083_v13 }
0x19e7   :  { %5406 = vmatprep.mubr.msk.f32.mxu0 %vm6084_vm1, %v6085_v27  ;;  %5417 = vmatprep.mubr.msk.f32.mxu1 %vm6084_vm1, %v6085_v27 }
0x19e9   :  { %5705 = vmatpush3.bf16.msra.mxu0 %v6795_v10  ;;  %5711 = vmatpush3.bf16.msra.mxu1 %v6797_v51 }
0x19ea   :  { %5712 = vmatprep.subr.bf16.mxu0 %v6083_v13  ;;  %5718 = vmatprep.subr.bf16.mxu1 %v6083_v13 }
0x1aa7   :  { %v5326_v8 = vpop.f32.mrb[24].mxu0  ;;  %v5366_v12 = vpop.f32.mrb[24].mxu1 }
0x1aa8   :  { %v6856_v49 = vadd.f32 %v5326_v8, %v2634_v28  ;;  %v6858_v5 = vadd.f32 %v5366_v12, %v2856_v6  ;;  %v2592_v22 = vpop.f32.mrb[25].mxu0  ;;  %v2814_v3 = vpop.f32.mrb[25].mxu1 }
0x1aa9   :  { %v6860_v15 = vadd.f32 %v2856_v6, %v2814_v3  ;;  %v2635_v32 = vadd.f32 %v2634_v28, %v2592_v22 }
0x1aab   :  { %v5329_v25 = vpop.f32.mrb[26].mxu0  ;;  %v5369_v61 = vpop.f32.mrb[26].mxu1 }
0x1aac   :  { %v6862_v40 = vadd.f32 %v5329_v25, %v2634_v28  ;;  %v6864_v44 = vadd.f32 %v5369_v61, %v2856_v6  ;;  %v2602_v63 = vpop.f32.mrb[27].mxu0  ;;  %v2824_v14 = vpop.f32.mrb[27].mxu1 }
0x1aad   :  { %v6866_v38 = vadd.f32 %v2634_v28, %v2602_v63  ;;  %v6868_v46 = vadd.f32 %v2856_v6, %v2824_v14 }
0x1aaf   :  { %v5332_v30 = vpop.f32.mrb[28].mxu0  ;;  %v5372_v7 = vpop.f32.mrb[28].mxu1 }
0x1ab0   :  { %v6870_v56 = vadd.f32 %v5332_v30, %v2634_v28  ;;  %v6872_v36 = vadd.f32 %v5372_v7, %v2856_v6  ;;  %v2612_v39 = vpop.f32.mrb[29].mxu0  ;;  %v2834_v42 = vpop.f32.mrb[29].mxu1 }
0x1ab1   :  { %v6874_v52 = vadd.f32 %v2634_v28, %v2612_v39  ;;  %v6876_v2 = vadd.f32 %v2856_v6, %v2834_v42 }
0x1ab3   :  { %v5335_v47 = vpop.f32.mrb[30].mxu0  ;;  %v5375_v50 = vpop.f32.mrb[30].mxu1 }
0x1ab4   :  { %v6878_v59 = vadd.f32 %v5335_v47, %v2634_v28  ;;  %v2622_v21 = vpop.f32.mrb[31].mxu0  ;;  %v2844_v35 = vpop.f32.mrb[31].mxu1  ;;  %v2864_v0 = vadd.f32 %v5375_v50, %v2856_v6 }
0x1ab5   :  { %v6886_v41 = vadd.f32 %v2634_v28, %v2622_v21  ;;  %v6888_v53 = vadd.f32 %v2856_v6, %v2844_v35 }
0x1ab7   :  { %v2931_v17 = vpop.f32.mrb[32].mxu0  ;;  %v3001_v18 = vpop.f32.mrb[32].mxu1 }
0x1ab8   :  { %v3019_v16 = vadd.f32 %v2931_v17, %v6881_v24  ;;  %v3020_v11 = vadd.f32 %v3001_v18, %v6884_v54  ;;  %v5386_v19 = vpop.f32.mrb[33].mxu0  ;;  %v5397_v23 = vpop.f32.mrb[33].mxu1  ;;  %v3005_v48 = vadd.f32 %v2931_v17, %v2635_v32  ;;  %v3006_v57 = vadd.f32 %v3001_v18, %v2864_v0 }
0x1aba   :  { %3023 = vrot.lane.b32.xlu1 %v3019_v16, %s6087_s4  ;;  %3025 = vrot.lane.b32.xlu0 %v3020_v11, %s6087_s4  ;;  %v4830_v1 = vmul.f32 -1.442695, %v3005_v48  ;;  %v4831_v58 = vmul.f32 -1.442695, %v3006_v57 }
0x1abc   :  { %5911 = vpow2.f32 %v4830_v1 }
0x1abd   :  { %5913 = vpow2.f32 %v4831_v58 }
0x1ac6   :  { %v5912_v4 = vpop.eup %5911 }
0x1ac7   :  { %v5914_v55 = vpop.eup %5913  ;;  %v3013_v8 = vadd.f32 1.0, %v5912_v4 }
0x1ac8   :  { %v3014_v12 = vadd.f32 1.0, %v5914_v55 }
0x1ac9   :  { %5915 = vrcp.f32 %v3013_v8 }
0x1aca   :  { %5917 = vrcp.f32 %v3014_v12 }
0x1ad3   :  { %v5916_v3 = vpop.eup %5915 }
0x1ad4   :  { %v5918_v25 = vpop.eup %5917 }
0x1b2c   :  { %v3024_v61 = vpop.permute.xlu1 %3023  ;;  %v3026_v63 = vpop.permute.xlu0 %3025 }
0x1b2d   :  { %v3029_v14 = vmul.f32 %v5916_v3, %v3024_v61  ;;  %v3030_v30 = vmul.f32 %v5918_v25, %v3026_v63 }
0x1b2f   :  { %3033 = vrot.lane.b32.xlu1 %v3029_v14, %s6087_s4  ;;  %3035 = vrot.lane.b32.xlu0 %v3030_v30, %s6087_s4 }
0x1ba1   :  { %v3034_v28 = vpop.permute.xlu1 %3033  ;;  %v3036_v6 = vpop.permute.xlu0 %3035 }
0x1ba2   :  { %v3039_v22 = vadd.f32 %v3034_v28, %v2635_v32  ;;  %v3040_v7 = vadd.f32 %v3036_v6, %v2864_v0 }
0x1ba4   :  { %5919 = vtanh.f32 %v3039_v22 }
0x1ba5   :  { %5921 = vtanh.f32 %v3040_v7 }
0x1bae   :  { %v5920_v39 = vpop.eup %5919 }
0x1baf   :  { %v5922_v42 = vpop.eup %5921  ;;  %v3043_v47 = vsub.f32 0.0, %v5920_v39 }
0x1bb0   :  { %v3044_v50 = vsub.f32 0.0, %v5922_v42 }
0x1bb1   :  { %3047 = vrot.lane.b32.xlu1 %v3043_v47, %s6089_s12 }
0x1bb2   :  { %3049 = vrot.lane.b32.xlu0 %v3044_v50, %s6089_s12 }
0x1c23   :  { %v3048_v21 = vpop.permute.xlu1 %3047 }
0x1c24   :  { %v3053_v35 = vmul.f32 %v5916_v3, %v3048_v21  ;;  %v3050_v17 = vpop.permute.xlu0 %3049 }
0x1c25   :  { %v3054_v18 = vmul.f32 %v5918_v25, %v3050_v17 }
0x1c26   :  { %3057 = vrot.lane.b32.xlu1 %v3053_v35, %s6090_s1 }
0x1c27   :  { %3059 = vrot.lane.b32.xlu0 %v3054_v18, %s6090_s1 }
0x1c98   :  { %v3058_v16 = vpop.permute.xlu1 %3057 }
0x1c99   :  { %v3063_v11 = vadd.f32 %v5920_v39, %v3058_v16  ;;  %v3060_v19 = vpop.permute.xlu0 %3059 }
0x1c9a   :  { %v3064_v23 = vadd.f32 %v5922_v42, %v3060_v19 }
0x1c9b   :  { %v6901_v32 = vmul.f32 %v3063_v11, %v6383_v31 }
0x1c9c   :  { %v6904_v0 = vmul.f32 %v3064_v23, %v6376_v26 }
0x1c9d   :  { %3083 = vrot.lane.b32.xlu1 %v6901_v32, %s6087_s4 }
0x1c9e   :  { %3158 = vrot.lane.b32.xlu0 %v6904_v0, %s6087_s4 }
0x1d0f   :  { %v3084_v48 = vpop.permute.xlu1 %3083 }
0x1d10   :  { %v3159_v57 = vpop.permute.xlu0 %3158  ;;  %5407 = vmatmul.mubr.msk.f32.vlgmr.msra.gmra.mrb[34].mxu0 %vm450_vm5, %v3084_v48 }
0x1d11   :  { %5418 = vmatmul.mubr.msk.f32.vlgmr.msra.gmra.mrb[34].mxu1 %vm450_vm5, %v3159_v57  ;;  %5714 = vmatpush3.bf16.msra.mxu0 %v6784_v20 }
0x1d12   :  { %5720 = vmatpush3.bf16.msra.mxu1 %v6786_v33  ;;  %5715 = vmatprep.subr.bf16.mxu0 %v6083_v13 }
0x1d13   :  { %5721 = vmatprep.subr.bf16.mxu1 %v6083_v13  ;;  %5428 = vmatprep.mubr.msk.f32.mxu0 %vm6084_vm1, %v6085_v27 }
0x1d14   :  { %5439 = vmatprep.mubr.msk.f32.mxu1 %vm6084_vm1, %v6085_v27 }
0x1d15   :  { %5717 = vmatpush3.bf16.msra.mxu0 %v6795_v10 }
0x1d16   :  { %5723 = vmatpush3.bf16.msra.mxu1 %v6797_v51  ;;  %5724 = vmatprep.subr.bf16.mxu0 %v6083_v13 }
0x1d17   :  { %5730 = vmatprep.subr.bf16.mxu1 %v6083_v13 }
0x1de3   :  { %v3153_v1 = vpop.f32.mrb[34].mxu0 }
0x1de4   :  { %v3246_v58 = vadd.f32 %v3153_v1, %v6881_v24  ;;  %v3228_v4 = vpop.f32.mrb[34].mxu1  ;;  %v5408_v55 = vpop.f32.mrb[35].mxu0  ;;  %v3232_v3 = vadd.f32 %v3153_v1, %v6856_v49 }
0x1de5   :  { %v3247_v8 = vadd.f32 %v3228_v4, %v6884_v54  ;;  %v5419_v12 = vpop.f32.mrb[35].mxu1  ;;  %v3233_v25 = vadd.f32 %v3228_v4, %v6888_v53 }
0x1de6   :  { %3250 = vrot.lane.b32.xlu1 %v3246_v58, %s6087_s4  ;;  %v4834_v61 = vmul.f32 -1.442695, %v3232_v3 }
0x1de7   :  { %3252 = vrot.lane.b32.xlu0 %v3247_v8, %s6087_s4  ;;  %v4835_v63 = vmul.f32 -1.442695, %v3233_v25 }
0x1de8   :  { %5923 = vpow2.f32 %v4834_v61 }
0x1de9   :  { %5925 = vpow2.f32 %v4835_v63 }
0x1df2   :  { %v5924_v14 = vpop.eup %5923 }
0x1df3   :  { %v5926_v30 = vpop.eup %5925  ;;  %v3240_v28 = vadd.f32 1.0, %v5924_v14 }
0x1df4   :  { %v3241_v6 = vadd.f32 1.0, %v5926_v30 }
0x1df5   :  { %5927 = vrcp.f32 %v3240_v28 }
0x1df6   :  { %5929 = vrcp.f32 %v3241_v6 }
0x1dff   :  { %v5928_v22 = vpop.eup %5927 }
0x1e00   :  { %v5930_v39 = vpop.eup %5929 }
0x1e58   :  { %v3251_v7 = vpop.permute.xlu1 %3250 }
0x1e59   :  { %v3256_v42 = vmul.f32 %v5928_v22, %v3251_v7  ;;  %v3253_v47 = vpop.permute.xlu0 %3252 }
0x1e5a   :  { %v3257_v50 = vmul.f32 %v5930_v39, %v3253_v47 }
0x1e5b   :  { %3260 = vrot.lane.b32.xlu1 %v3256_v42, %s6087_s4 }
0x1e5c   :  { %3262 = vrot.lane.b32.xlu0 %v3257_v50, %s6087_s4 }
0x1ecd   :  { %v3261_v21 = vpop.permute.xlu1 %3260 }
0x1ece   :  { %v3266_v35 = vadd.f32 %v3261_v21, %v6856_v49  ;;  %v3263_v17 = vpop.permute.xlu0 %3262 }
0x1ecf   :  { %v3267_v18 = vadd.f32 %v3263_v17, %v6888_v53 }
0x1ed0   :  { %5931 = vtanh.f32 %v3266_v35 }
0x1ed1   :  { %5933 = vtanh.f32 %v3267_v18 }
0x1eda   :  { %v5932_v16 = vpop.eup %5931 }
0x1edb   :  { %v5934_v11 = vpop.eup %5933  ;;  %v3270_v19 = vsub.f32 %v6901_v32, %v5932_v16 }
0x1edc   :  { %v3271_v23 = vsub.f32 %v6904_v0, %v5934_v11 }
0x1edd   :  { %3274 = vrot.lane.b32.xlu1 %v3270_v19, %s6089_s12 }
0x1ede   :  { %3276 = vrot.lane.b32.xlu0 %v3271_v23, %s6089_s12 }
0x1f4f   :  { %v3275_v48 = vpop.permute.xlu1 %3274 }
0x1f50   :  { %v3280_v57 = vmul.f32 %v5928_v22, %v3275_v48  ;;  %v3277_v1 = vpop.permute.xlu0 %3276 }
0x1f51   :  { %v3281_v58 = vmul.f32 %v5930_v39, %v3277_v1 }
0x1f52   :  { %3284 = vrot.lane.b32.xlu1 %v3280_v57, %s6090_s1 }
0x1f53   :  { %3286 = vrot.lane.b32.xlu0 %v3281_v58, %s6090_s1 }
0x1fc4   :  { %v3285_v49 = vpop.permute.xlu1 %3284 }
0x1fc5   :  { %v3290_v53 = vadd.f32 %v5932_v16, %v3285_v49  ;;  %v3287_v4 = vpop.permute.xlu0 %3286 }
0x1fc6   :  { %v3291_v55 = vadd.f32 %v5934_v11, %v3287_v4 }
0x1fc7   :  { %v3292_v8 = vsub.f32 %v3290_v53, %v6901_v32 }
0x1fc8   :  { %v3293_v12 = vsub.f32 %v3291_v55, %v6904_v0 }
0x1fc9   :  { %v3294_v3 = vmul.f32 %v3292_v8, %v6434_v45 }
0x1fca   :  { %v3295_v25 = vmul.f32 %v3293_v12, %v6425_v37 }
0x1fcb   :  { %v6945_v61 = vadd.f32 %v3294_v3, %v6901_v32 }
0x1fcc   :  { %v6948_v63 = vadd.f32 %v3295_v25, %v6904_v0 }
0x1fcd   :  { %3311 = vrot.lane.b32.xlu1 %v6945_v61, %s6087_s4 }
0x1fce   :  { %3386 = vrot.lane.b32.xlu0 %v6948_v63, %s6087_s4 }
0x203f   :  { %v3312_v14 = vpop.permute.xlu1 %3311 }
0x2040   :  { %v3387_v30 = vpop.permute.xlu0 %3386  ;;  %5429 = vmatmul.mubr.msk.f32.vlgmr.msra.gmra.mrb[36].mxu0 %vm450_vm5, %v3312_v14 }
0x2041   :  { %5440 = vmatmul.mubr.msk.f32.vlgmr.msra.gmra.mrb[36].mxu1 %vm450_vm5, %v3387_v30  ;;  %5726 = vmatpush3.bf16.msra.mxu0 %v6784_v20 }
0x2042   :  { %5732 = vmatpush3.bf16.msra.mxu1 %v6786_v33  ;;  %5727 = vmatprep.subr.bf16.mxu0 %v6083_v13 }
0x2043   :  { %5733 = vmatprep.subr.bf16.mxu1 %v6083_v13  ;;  %5450 = vmatprep.mubr.msk.f32.mxu0 %vm6084_vm1, %v6085_v27 }
0x2044   :  { %5461 = vmatprep.mubr.msk.f32.mxu1 %vm6084_vm1, %v6085_v27 }
0x2045   :  { %5729 = vmatpush3.bf16.msra.mxu0 %v6795_v10 }
0x2046   :  { %5735 = vmatpush3.bf16.msra.mxu1 %v6797_v51  ;;  %5736 = vmatprep.subr.bf16.mxu0 %v6083_v13 }
0x2047   :  { %5742 = vmatprep.subr.bf16.mxu1 %v6083_v13 }
0x2113   :  { %v3381_v28 = vpop.f32.mrb[36].mxu0 }
0x2114   :  { %v3474_v6 = vadd.f32 %v3381_v28, %v6881_v24  ;;  %v3456_v22 = vpop.f32.mrb[36].mxu1  ;;  %v5430_v7 = vpop.f32.mrb[37].mxu0  ;;  %v3460_v47 = vadd.f32 %v3381_v28, %v6866_v38 }
0x2115   :  { %v3475_v39 = vadd.f32 %v3456_v22, %v6884_v54  ;;  %v5441_v42 = vpop.f32.mrb[37].mxu1  ;;  %v3461_v50 = vadd.f32 %v3456_v22, %v6872_v36 }
0x2116   :  { %3478 = vrot.lane.b32.xlu1 %v3474_v6, %s6087_s4  ;;  %v4838_v21 = vmul.f32 -1.442695, %v3460_v47 }
0x2117   :  { %3480 = vrot.lane.b32.xlu0 %v3475_v39, %s6087_s4  ;;  %v4839_v35 = vmul.f32 -1.442695, %v3461_v50 }
0x2118   :  { %5935 = vpow2.f32 %v4838_v21 }
0x2119   :  { %5937 = vpow2.f32 %v4839_v35 }
0x2122   :  { %v5936_v17 = vpop.eup %5935 }
0x2123   :  { %v5938_v18 = vpop.eup %5937  ;;  %v3468_v16 = vadd.f32 1.0, %v5936_v17 }
0x2124   :  { %v3469_v11 = vadd.f32 1.0, %v5938_v18 }
0x2125   :  { %5939 = vrcp.f32 %v3468_v16 }
0x2126   :  { %5941 = vrcp.f32 %v3469_v11 }
0x212f   :  { %v5940_v19 = vpop.eup %5939 }
0x2130   :  { %v5942_v48 = vpop.eup %5941 }
0x2188   :  { %v3479_v23 = vpop.permute.xlu1 %3478 }
0x2189   :  { %v3484_v57 = vmul.f32 %v5940_v19, %v3479_v23  ;;  %v3481_v1 = vpop.permute.xlu0 %3480 }
0x218a   :  { %v3485_v58 = vmul.f32 %v5942_v48, %v3481_v1 }
0x218b   :  { %3488 = vrot.lane.b32.xlu1 %v3484_v57, %s6087_s4 }
0x218c   :  { %3490 = vrot.lane.b32.xlu0 %v3485_v58, %s6087_s4 }
0x21fd   :  { %v3489_v49 = vpop.permute.xlu1 %3488 }
0x21fe   :  { %v3494_v53 = vadd.f32 %v3489_v49, %v6866_v38  ;;  %v3491_v4 = vpop.permute.xlu0 %3490 }
0x21ff   :  { %v3495_v55 = vadd.f32 %v3491_v4, %v6872_v36 }
0x2200   :  { %5943 = vtanh.f32 %v3494_v53 }
0x2201   :  { %5945 = vtanh.f32 %v3495_v55 }
0x220a   :  { %v5944_v8 = vpop.eup %5943 }
0x220b   :  { %v5946_v12 = vpop.eup %5945  ;;  %v3498_v3 = vsub.f32 %v6945_v61, %v5944_v8 }
0x220c   :  { %v3499_v25 = vsub.f32 %v6948_v63, %v5946_v12 }
0x220d   :  { %3502 = vrot.lane.b32.xlu1 %v3498_v3, %s6089_s12 }
0x220e   :  { %3504 = vrot.lane.b32.xlu0 %v3499_v25, %s6089_s12 }
0x227f   :  { %v3503_v14 = vpop.permute.xlu1 %3502 }
0x2280   :  { %v3508_v30 = vmul.f32 %v5940_v19, %v3503_v14  ;;  %v3505_v28 = vpop.permute.xlu0 %3504 }
0x2281   :  { %v3509_v6 = vmul.f32 %v5942_v48, %v3505_v28 }
0x2282   :  { %3512 = vrot.lane.b32.xlu1 %v3508_v30, %s6090_s1 }
0x2283   :  { %3514 = vrot.lane.b32.xlu0 %v3509_v6, %s6090_s1 }
0x22f4   :  { %v3513_v38 = vpop.permute.xlu1 %3512 }
0x22f5   :  { %v3518_v36 = vadd.f32 %v5944_v8, %v3513_v38  ;;  %v3515_v22 = vpop.permute.xlu0 %3514 }
0x22f6   :  { %v3519_v7 = vadd.f32 %v5946_v12, %v3515_v22 }
0x22f7   :  { %v3520_v39 = vsub.f32 %v3518_v36, %v6945_v61 }
0x22f8   :  { %v3521_v42 = vsub.f32 %v3519_v7, %v6948_v63 }
0x22f9   :  { %v3522_v47 = vmul.f32 %v3520_v39, %v6486_v9 }
0x22fa   :  { %v3523_v50 = vmul.f32 %v3521_v42, %v6477_v62 }
0x22fb   :  { %v6989_v21 = vadd.f32 %v3522_v47, %v6945_v61 }
0x22fc   :  { %v6992_v35 = vadd.f32 %v3523_v50, %v6948_v63 }
0x22fd   :  { %3539 = vrot.lane.b32.xlu1 %v6989_v21, %s6087_s4 }
0x22fe   :  { %3614 = vrot.lane.b32.xlu0 %v6992_v35, %s6087_s4 }
0x236f   :  { %v3540_v17 = vpop.permute.xlu1 %3539 }
0x2370   :  { %v3615_v18 = vpop.permute.xlu0 %3614  ;;  %5451 = vmatmul.mubr.msk.f32.vlgmr.msra.gmra.mrb[38].mxu0 %vm450_vm5, %v3540_v17 }
0x2371   :  { %5462 = vmatmul.mubr.msk.f32.vlgmr.msra.gmra.mrb[38].mxu1 %vm450_vm5, %v3615_v18  ;;  %5738 = vmatpush3.bf16.msra.mxu0 %v6784_v20 }
0x2372   :  { %5744 = vmatpush3.bf16.msra.mxu1 %v6786_v33  ;;  %5739 = vmatprep.subr.bf16.mxu0 %v6083_v13 }
0x2373   :  { %5745 = vmatprep.subr.bf16.mxu1 %v6083_v13  ;;  %5472 = vmatprep.mubr.msk.f32.mxu0 %vm6084_vm1, %v6085_v27 }
0x2374   :  { %5483 = vmatprep.mubr.msk.f32.mxu1 %vm6084_vm1, %v6085_v27 }
0x2375   :  { %5741 = vmatpush3.bf16.msra.mxu0 %v6795_v10 }
0x2376   :  { %5747 = vmatpush3.bf16.msra.mxu1 %v6797_v51  ;;  %5748 = vmatprep.subr.bf16.mxu0 %v6083_v13 }
0x2377   :  { %5754 = vmatprep.subr.bf16.mxu1 %v6083_v13 }
0x2443   :  { %v3609_v16 = vpop.f32.mrb[38].mxu0 }
0x2444   :  { %v3702_v11 = vadd.f32 %v3609_v16, %v6881_v24  ;;  %v3684_v19 = vpop.f32.mrb[38].mxu1  ;;  %v5452_v23 = vpop.f32.mrb[39].mxu0  ;;  %v3688_v1 = vadd.f32 %v3609_v16, %v6862_v40 }
0x2445   :  { %v3703_v48 = vadd.f32 %v3684_v19, %v6884_v54  ;;  %v5463_v57 = vpop.f32.mrb[39].mxu1  ;;  %v3689_v58 = vadd.f32 %v3684_v19, %v6876_v2 }
0x2446   :  { %3706 = vrot.lane.b32.xlu1 %v3702_v11, %s6087_s4  ;;  %v4842_v49 = vmul.f32 -1.442695, %v3688_v1 }
0x2447   :  { %3708 = vrot.lane.b32.xlu0 %v3703_v48, %s6087_s4  ;;  %v4843_v53 = vmul.f32 -1.442695, %v3689_v58 }
0x2448   :  { %5947 = vpow2.f32 %v4842_v49 }
0x2449   :  { %5949 = vpow2.f32 %v4843_v53 }
0x2452   :  { %v5948_v4 = vpop.eup %5947 }
0x2453   :  { %v5950_v55 = vpop.eup %5949  ;;  %v3696_v8 = vadd.f32 1.0, %v5948_v4 }
0x2454   :  { %v3697_v12 = vadd.f32 1.0, %v5950_v55 }
0x2455   :  { %5951 = vrcp.f32 %v3696_v8 }
0x2456   :  { %5953 = vrcp.f32 %v3697_v12 }
0x245f   :  { %v5952_v3 = vpop.eup %5951 }
0x2460   :  { %v5954_v14 = vpop.eup %5953 }
0x24b8   :  { %v3707_v25 = vpop.permute.xlu1 %3706 }
0x24b9   :  { %v3712_v30 = vmul.f32 %v5952_v3, %v3707_v25  ;;  %v3709_v28 = vpop.permute.xlu0 %3708 }
0x24ba   :  { %v3713_v6 = vmul.f32 %v5954_v14, %v3709_v28 }
0x24bb   :  { %3716 = vrot.lane.b32.xlu1 %v3712_v30, %s6087_s4 }
0x24bc   :  { %3718 = vrot.lane.b32.xlu0 %v3713_v6, %s6087_s4 }
0x252d   :  { %v3717_v38 = vpop.permute.xlu1 %3716 }
0x252e   :  { %v3722_v36 = vadd.f32 %v3717_v38, %v6862_v40  ;;  %v3719_v22 = vpop.permute.xlu0 %3718 }
0x252f   :  { %v3723_v7 = vadd.f32 %v3719_v22, %v6876_v2 }
0x2530   :  { %5955 = vtanh.f32 %v3722_v36 }
0x2531   :  { %5957 = vtanh.f32 %v3723_v7 }
0x253a   :  { %v5956_v39 = vpop.eup %5955 }
0x253b   :  { %v5958_v42 = vpop.eup %5957  ;;  %v3726_v47 = vsub.f32 %v6989_v21, %v5956_v39 }
0x253c   :  { %v3727_v50 = vsub.f32 %v6992_v35, %v5958_v42 }
0x253d   :  { %3730 = vrot.lane.b32.xlu1 %v3726_v47, %s6089_s12 }
0x253e   :  { %3732 = vrot.lane.b32.xlu0 %v3727_v50, %s6089_s12 }
0x25af   :  { %v3731_v17 = vpop.permute.xlu1 %3730 }
0x25b0   :  { %v3736_v18 = vmul.f32 %v5952_v3, %v3731_v17  ;;  %v3733_v16 = vpop.permute.xlu0 %3732 }
0x25b1   :  { %v3737_v11 = vmul.f32 %v5954_v14, %v3733_v16 }
0x25b2   :  { %3740 = vrot.lane.b32.xlu1 %v3736_v18, %s6090_s1 }
0x25b3   :  { %3742 = vrot.lane.b32.xlu0 %v3737_v11, %s6090_s1 }
0x2624   :  { %v3741_v40 = vpop.permute.xlu1 %3740 }
0x2625   :  { %v3746_v2 = vadd.f32 %v5956_v39, %v3741_v40  ;;  %v3743_v19 = vpop.permute.xlu0 %3742 }
0x2626   :  { %v3747_v23 = vadd.f32 %v5958_v42, %v3743_v19 }
0x2627   :  { %v3748_v48 = vsub.f32 %v3746_v2, %v6989_v21 }
0x2628   :  { %v3749_v57 = vsub.f32 %v3747_v23, %v6992_v35 }
0x2629   :  { %v3750_v1 = vmul.f32 %v3748_v48, %v6538_v43 }
0x262a   :  { %v3751_v58 = vmul.f32 %v3749_v57, %v6529_v34 }
0x262b   :  { %v7033_v49 = vadd.f32 %v3750_v1, %v6989_v21 }
0x262c   :  { %v7036_v53 = vadd.f32 %v3751_v58, %v6992_v35 }
0x262d   :  { %3767 = vrot.lane.b32.xlu1 %v7033_v49, %s6087_s4 }
0x262e   :  { %3842 = vrot.lane.b32.xlu0 %v7036_v53, %s6087_s4 }
0x269f   :  { %v3768_v4 = vpop.permute.xlu1 %3767 }
0x26a0   :  { %v3843_v55 = vpop.permute.xlu0 %3842  ;;  %5473 = vmatmul.mubr.msk.f32.vlgmr.msra.gmra.mrb[40].mxu0 %vm450_vm5, %v3768_v4 }
0x26a1   :  { %5484 = vmatmul.mubr.msk.f32.vlgmr.msra.gmra.mrb[40].mxu1 %vm450_vm5, %v3843_v55  ;;  %5750 = vmatpush3.bf16.msra.mxu0 %v6784_v20 }
0x26a2   :  { %5756 = vmatpush3.bf16.msra.mxu1 %v6786_v33  ;;  %5751 = vmatprep.subr.bf16.mxu0 %v6083_v13 }
0x26a3   :  { %5757 = vmatprep.subr.bf16.mxu1 %v6083_v13  ;;  %5494 = vmatprep.mubr.msk.f32.mxu0 %vm6084_vm1, %v6085_v27 }
0x26a4   :  { %5505 = vmatprep.mubr.msk.f32.mxu1 %vm6084_vm1, %v6085_v27 }
0x26a5   :  { %5753 = vmatpush3.bf16.msra.mxu0 %v6795_v10 }
0x26a6   :  { %5759 = vmatpush3.bf16.msra.mxu1 %v6797_v51  ;;  %5760 = vmatprep.subr.bf16.mxu0 %v6083_v13 }
0x26a7   :  { %5766 = vmatprep.subr.bf16.mxu1 %v6083_v13 }
0x2773   :  { %v3837_v8 = vpop.f32.mrb[40].mxu0 }
0x2774   :  { %v3930_v12 = vadd.f32 %v3837_v8, %v6881_v24  ;;  %v3912_v3 = vpop.f32.mrb[40].mxu1  ;;  %v5474_v25 = vpop.f32.mrb[41].mxu0  ;;  %v3916_v28 = vadd.f32 %v3837_v8, %v6874_v52 }
0x2775   :  { %v3931_v14 = vadd.f32 %v3912_v3, %v6884_v54  ;;  %v5485_v30 = vpop.f32.mrb[41].mxu1  ;;  %v3917_v6 = vadd.f32 %v3912_v3, %v6864_v44 }
0x2776   :  { %3934 = vrot.lane.b32.xlu1 %v3930_v12, %s6087_s4  ;;  %v4846_v38 = vmul.f32 -1.442695, %v3916_v28 }
0x2777   :  { %3936 = vrot.lane.b32.xlu0 %v3931_v14, %s6087_s4  ;;  %v4847_v36 = vmul.f32 -1.442695, %v3917_v6 }
0x2778   :  { %5959 = vpow2.f32 %v4846_v38 }
0x2779   :  { %5961 = vpow2.f32 %v4847_v36 }
0x2782   :  { %v5960_v22 = vpop.eup %5959 }
0x2783   :  { %v5962_v7 = vpop.eup %5961  ;;  %v3924_v39 = vadd.f32 1.0, %v5960_v22 }
0x2784   :  { %v3925_v42 = vadd.f32 1.0, %v5962_v7 }
0x2785   :  { %5963 = vrcp.f32 %v3924_v39 }
0x2786   :  { %5965 = vrcp.f32 %v3925_v42 }
0x278f   :  { %v5964_v47 = vpop.eup %5963 }
0x2790   :  { %v5966_v17 = vpop.eup %5965 }
0x27e8   :  { %v3935_v50 = vpop.permute.xlu1 %3934 }
0x27e9   :  { %v3940_v18 = vmul.f32 %v5964_v47, %v3935_v50  ;;  %v3937_v16 = vpop.permute.xlu0 %3936 }
0x27ea   :  { %v3941_v11 = vmul.f32 %v5966_v17, %v3937_v16 }
0x27eb   :  { %3944 = vrot.lane.b32.xlu1 %v3940_v18, %s6087_s4 }
0x27ec   :  { %3946 = vrot.lane.b32.xlu0 %v3941_v11, %s6087_s4 }
0x285d   :  { %v3945_v40 = vpop.permute.xlu1 %3944 }
0x285e   :  { %v3950_v2 = vadd.f32 %v3945_v40, %v6874_v52  ;;  %v3947_v19 = vpop.permute.xlu0 %3946 }
0x285f   :  { %v3951_v23 = vadd.f32 %v3947_v19, %v6864_v44 }
0x2860   :  { %5967 = vtanh.f32 %v3950_v2 }
0x2861   :  { %5969 = vtanh.f32 %v3951_v23 }
0x286a   :  { %v5968_v48 = vpop.eup %5967 }
0x286b   :  { %v5970_v57 = vpop.eup %5969  ;;  %v3954_v1 = vsub.f32 %v7033_v49, %v5968_v48 }
0x286c   :  { %v3955_v58 = vsub.f32 %v7036_v53, %v5970_v57 }
0x286d   :  { %3958 = vrot.lane.b32.xlu1 %v3954_v1, %s6089_s12 }
0x286e   :  { %3960 = vrot.lane.b32.xlu0 %v3955_v58, %s6089_s12 }
0x28df   :  { %v3959_v4 = vpop.permute.xlu1 %3958 }
0x28e0   :  { %v3964_v55 = vmul.f32 %v5964_v47, %v3959_v4  ;;  %v3961_v8 = vpop.permute.xlu0 %3960 }
0x28e1   :  { %v3965_v12 = vmul.f32 %v5966_v17, %v3961_v8 }
0x28e2   :  { %3968 = vrot.lane.b32.xlu1 %v3964_v55, %s6090_s1 }
0x28e3   :  { %3970 = vrot.lane.b32.xlu0 %v3965_v12, %s6090_s1 }
0x2954   :  { %v3969_v44 = vpop.permute.xlu1 %3968 }
0x2955   :  { %v3974_v52 = vadd.f32 %v5968_v48, %v3969_v44  ;;  %v3971_v3 = vpop.permute.xlu0 %3970 }
0x2956   :  { %v3975_v25 = vadd.f32 %v5970_v57, %v3971_v3 }
0x2957   :  { %v3976_v14 = vsub.f32 %v3974_v52, %v7033_v49 }
0x2958   :  { %v3977_v30 = vsub.f32 %v3975_v25, %v7036_v53 }
0x2959   :  { %v3978_v28 = vmul.f32 %v3976_v14, %v6529_v34 }
0x295a   :  { %v3979_v6 = vmul.f32 %v3977_v30, %v6538_v43 }
0x295b   :  { %v7077_v38 = vadd.f32 %v3978_v28, %v7033_v49 }
0x295c   :  { %v7080_v36 = vadd.f32 %v3979_v6, %v7036_v53 }
0x295d   :  { %3995 = vrot.lane.b32.xlu1 %v7077_v38, %s6087_s4 }
0x295e   :  { %4070 = vrot.lane.b32.xlu0 %v7080_v36, %s6087_s4 }
0x29cf   :  { %v3996_v22 = vpop.permute.xlu1 %3995 }
0x29d0   :  { %v4071_v7 = vpop.permute.xlu0 %4070  ;;  %5495 = vmatmul.mubr.msk.f32.vlgmr.msra.gmra.mrb[42].mxu0 %vm450_vm5, %v3996_v22 }
0x29d1   :  { %5506 = vmatmul.mubr.msk.f32.vlgmr.msra.gmra.mrb[42].mxu1 %vm450_vm5, %v4071_v7  ;;  %5762 = vmatpush3.bf16.msra.mxu0 %v6784_v20 }
0x29d2   :  { %5768 = vmatpush3.bf16.msra.mxu1 %v6786_v33  ;;  %5763 = vmatprep.subr.bf16.mxu0 %v6083_v13 }
0x29d3   :  { %5769 = vmatprep.subr.bf16.mxu1 %v6083_v13  ;;  %5516 = vmatprep.mubr.msk.f32.mxu0 %vm6084_vm1, %v6085_v27 }
0x29d4   :  { %5527 = vmatprep.mubr.msk.f32.mxu1 %vm6084_vm1, %v6085_v27 }
0x29d5   :  { %5765 = vmatpush3.bf16.msra.mxu0 %v6795_v10 }
0x29d6   :  { %5771 = vmatpush3.bf16.msra.mxu1 %v6797_v51  ;;  %5772 = vmatprep.subr.bf16.mxu0 %v6083_v13 }
0x29d7   :  { %5778 = vmatprep.subr.bf16.mxu1 %v6083_v13 }
0x2aa3   :  { %v4065_v39 = vpop.f32.mrb[42].mxu0 }
0x2aa4   :  { %v4158_v42 = vadd.f32 %v4065_v39, %v6881_v24  ;;  %v4140_v47 = vpop.f32.mrb[42].mxu1  ;;  %v5496_v50 = vpop.f32.mrb[43].mxu0  ;;  %v4144_v16 = vadd.f32 %v4065_v39, %v6870_v56 }
0x2aa5   :  { %v4159_v17 = vadd.f32 %v4140_v47, %v6884_v54  ;;  %v5507_v18 = vpop.f32.mrb[43].mxu1  ;;  %v4145_v11 = vadd.f32 %v4140_v47, %v6868_v46 }
0x2aa6   :  { %4162 = vrot.lane.b32.xlu1 %v4158_v42, %s6087_s4  ;;  %v4850_v40 = vmul.f32 -1.442695, %v4144_v16 }
0x2aa7   :  { %4164 = vrot.lane.b32.xlu0 %v4159_v17, %s6087_s4  ;;  %v4851_v2 = vmul.f32 -1.442695, %v4145_v11 }
0x2aa8   :  { %5971 = vpow2.f32 %v4850_v40 }
0x2aa9   :  { %5973 = vpow2.f32 %v4851_v2 }
0x2ab2   :  { %v5972_v19 = vpop.eup %5971 }
0x2ab3   :  { %v5974_v23 = vpop.eup %5973  ;;  %v4152_v48 = vadd.f32 1.0, %v5972_v19 }
0x2ab4   :  { %v4153_v57 = vadd.f32 1.0, %v5974_v23 }
0x2ab5   :  { %5975 = vrcp.f32 %v4152_v48 }
0x2ab6   :  { %5977 = vrcp.f32 %v4153_v57 }
0x2abf   :  { %v5976_v1 = vpop.eup %5975 }
0x2ac0   :  { %v5978_v4 = vpop.eup %5977 }
0x2b18   :  { %v4163_v58 = vpop.permute.xlu1 %4162 }
0x2b19   :  { %v4168_v55 = vmul.f32 %v5976_v1, %v4163_v58  ;;  %v4165_v8 = vpop.permute.xlu0 %4164 }
0x2b1a   :  { %v4169_v12 = vmul.f32 %v5978_v4, %v4165_v8 }
0x2b1b   :  { %4172 = vrot.lane.b32.xlu1 %v4168_v55, %s6087_s4 }
0x2b1c   :  { %4174 = vrot.lane.b32.xlu0 %v4169_v12, %s6087_s4 }
0x2b8d   :  { %v4173_v44 = vpop.permute.xlu1 %4172 }
0x2b8e   :  { %v4178_v52 = vadd.f32 %v4173_v44, %v6870_v56  ;;  %v4175_v3 = vpop.permute.xlu0 %4174 }
0x2b8f   :  { %v4179_v25 = vadd.f32 %v4175_v3, %v6868_v46 }
0x2b90   :  { %5979 = vtanh.f32 %v4178_v52 }
0x2b91   :  { %5981 = vtanh.f32 %v4179_v25 }
0x2b9a   :  { %v5980_v14 = vpop.eup %5979 }
0x2b9b   :  { %v5982_v30 = vpop.eup %5981  ;;  %v4182_v28 = vsub.f32 %v7077_v38, %v5980_v14 }
0x2b9c   :  { %v4183_v6 = vsub.f32 %v7080_v36, %v5982_v30 }
0x2b9d   :  { %4186 = vrot.lane.b32.xlu1 %v4182_v28, %s6089_s12 }
0x2b9e   :  { %4188 = vrot.lane.b32.xlu0 %v4183_v6, %s6089_s12 }
0x2c0f   :  { %v4187_v22 = vpop.permute.xlu1 %4186 }
0x2c10   :  { %v4192_v7 = vmul.f32 %v5976_v1, %v4187_v22  ;;  %v4189_v39 = vpop.permute.xlu0 %4188 }
0x2c11   :  { %v4193_v42 = vmul.f32 %v5978_v4, %v4189_v39 }
0x2c12   :  { %4196 = vrot.lane.b32.xlu1 %v4192_v7, %s6090_s1 }
0x2c13   :  { %4198 = vrot.lane.b32.xlu0 %v4193_v42, %s6090_s1 }
0x2c84   :  { %v4197_v46 = vpop.permute.xlu1 %4196 }
0x2c85   :  { %v4202_v56 = vadd.f32 %v5980_v14, %v4197_v46  ;;  %v4199_v47 = vpop.permute.xlu0 %4198 }
0x2c86   :  { %v4203_v50 = vadd.f32 %v5982_v30, %v4199_v47 }
0x2c87   :  { %v4204_v17 = vsub.f32 %v4202_v56, %v7077_v38 }
0x2c88   :  { %v4205_v18 = vsub.f32 %v4203_v50, %v7080_v36 }
0x2c89   :  { %v4206_v16 = vmul.f32 %v4204_v17, %v6477_v62 }
0x2c8a   :  { %v4207_v11 = vmul.f32 %v4205_v18, %v6486_v9 }
0x2c8b   :  { %v7121_v40 = vadd.f32 %v4206_v16, %v7077_v38 }
0x2c8c   :  { %v7124_v2 = vadd.f32 %v4207_v11, %v7080_v36 }
0x2c8d   :  { %4223 = vrot.lane.b32.xlu1 %v7121_v40, %s6087_s4 }
0x2c8e   :  { %4298 = vrot.lane.b32.xlu0 %v7124_v2, %s6087_s4 }
0x2cff   :  { %v4224_v19 = vpop.permute.xlu1 %4223 }
0x2d00   :  { %v4299_v23 = vpop.permute.xlu0 %4298  ;;  %5517 = vmatmul.mubr.msk.f32.vlgmr.msra.gmra.mrb[44].mxu0 %vm450_vm5, %v4224_v19 }
0x2d01   :  { %5528 = vmatmul.mubr.msk.f32.vlgmr.msra.gmra.mrb[44].mxu1 %vm450_vm5, %v4299_v23  ;;  %5774 = vmatpush3.bf16.msra.mxu0 %v6784_v20 }
0x2d02   :  { %5780 = vmatpush3.bf16.msra.mxu1 %v6786_v33  ;;  %5775 = vmatprep.subr.bf16.mxu0 %v6083_v13 }
0x2d03   :  { %5781 = vmatprep.subr.bf16.mxu1 %v6083_v13  ;;  %5538 = vmatprep.mubr.msk.f32.mxu0 %vm6084_vm1, %v6085_v27 }
0x2d04   :  { %5549 = vmatprep.mubr.msk.f32.mxu1 %vm6084_vm1, %v6085_v27 }
0x2d05   :  { %5777 = vmatpush3.bf16.msra.mxu0 %v6795_v10 }
0x2d06   :  { %5783 = vmatpush3.bf16.msra.mxu1 %v6797_v51 }
0x2dd3   :  { %v4293_v48 = vpop.f32.mrb[44].mxu0 }
0x2dd4   :  { %v4386_v57 = vadd.f32 %v4293_v48, %v6881_v24  ;;  %v4368_v20 = vpop.f32.mrb[44].mxu1  ;;  %v5518_v1 = vpop.f32.mrb[45].mxu0  ;;  %v4372_v13 = vadd.f32 %v4293_v48, %v6886_v41 }
0x2dd5   :  { %v4387_v33 = vadd.f32 %v4368_v20, %v6884_v54  ;;  %v5529_v58 = vpop.f32.mrb[45].mxu1  ;;  %v4373_v27 = vadd.f32 %v4368_v20, %v6858_v5 }
0x2dd6   :  { %4390 = vrot.lane.b32.xlu1 %v4386_v57, %s6087_s4  ;;  %v4854_v4 = vmul.f32 -1.442695, %v4372_v13 }
0x2dd7   :  { %4392 = vrot.lane.b32.xlu0 %v4387_v33, %s6087_s4  ;;  %v4855_v10 = vmul.f32 -1.442695, %v4373_v27 }
0x2dd8   :  { %5983 = vpow2.f32 %v4854_v4 }
0x2dd9   :  { %5985 = vpow2.f32 %v4855_v10 }
0x2de2   :  { %v5984_v51 = vpop.eup %5983 }
0x2de3   :  { %v5986_v55 = vpop.eup %5985  ;;  %v4380_v8 = vadd.f32 1.0, %v5984_v51 }
0x2de4   :  { %v4381_v12 = vadd.f32 1.0, %v5986_v55 }
0x2de5   :  { %5987 = vrcp.f32 %v4380_v8 }
0x2de6   :  { %5989 = vrcp.f32 %v4381_v12 }
0x2def   :  { %v5988_v44 = vpop.eup %5987 }
0x2df0   :  { %v5990_v3 = vpop.eup %5989 }
0x2e48   :  { %v4391_v52 = vpop.permute.xlu1 %4390 }
0x2e49   :  { %v4396_v25 = vmul.f32 %v5988_v44, %v4391_v52  ;;  %v4393_v14 = vpop.permute.xlu0 %4392 }
0x2e4a   :  { %v4397_v30 = vmul.f32 %v5990_v3, %v4393_v14 }
0x2e4b   :  { %4400 = vrot.lane.b32.xlu1 %v4396_v25, %s6087_s4 }
0x2e4c   :  { %4402 = vrot.lane.b32.xlu0 %v4397_v30, %s6087_s4 }
0x2ebd   :  { %v4401_v28 = vpop.permute.xlu1 %4400 }
0x2ebe   :  { %v4406_v6 = vadd.f32 %v4401_v28, %v6886_v41  ;;  %v4403_v22 = vpop.permute.xlu0 %4402 }
0x2ebf   :  { %v4407_v7 = vadd.f32 %v4403_v22, %v6858_v5 }
0x2ec0   :  { %5991 = vtanh.f32 %v4406_v6 }
0x2ec1   :  { %5993 = vtanh.f32 %v4407_v7 }
0x2eca   :  { %v5992_v39 = vpop.eup %5991 }
0x2ecb   :  { %v5994_v42 = vpop.eup %5993  ;;  %v4410_v46 = vsub.f32 %v7121_v40, %v5992_v39 }
0x2ecc   :  { %v4411_v56 = vsub.f32 %v7124_v2, %v5994_v42 }
0x2ecd   :  { %4414 = vrot.lane.b32.xlu1 %v4410_v46, %s6089_s12 }
0x2ece   :  { %4416 = vrot.lane.b32.xlu0 %v4411_v56, %s6089_s12 }
0x2f3f   :  { %v4415_v47 = vpop.permute.xlu1 %4414 }
0x2f40   :  { %v4420_v50 = vmul.f32 %v5988_v44, %v4415_v47  ;;  %v4417_v17 = vpop.permute.xlu0 %4416 }
0x2f41   :  { %v4421_v18 = vmul.f32 %v5990_v3, %v4417_v17 }
0x2f42   :  { %4424 = vrot.lane.b32.xlu1 %v4420_v50, %s6090_s1 }
0x2f43   :  { %4426 = vrot.lane.b32.xlu0 %v4421_v18, %s6090_s1 }
0x2fb4   :  { %v4425_v5 = vpop.permute.xlu1 %4424 }
0x2fb5   :  { %v4430_v41 = vadd.f32 %v5992_v39, %v4425_v5  ;;  %v4427_v16 = vpop.permute.xlu0 %4426 }
0x2fb6   :  { %v4431_v11 = vadd.f32 %v5994_v42, %v4427_v16 }
0x2fb7   :  { %v4432_v19 = vsub.f32 %v4430_v41, %v7121_v40 }
0x2fb8   :  { %v4433_v23 = vsub.f32 %v4431_v11, %v7124_v2 }
0x2fb9   :  { %v4434_v48 = vmul.f32 %v4432_v19, %v6425_v37  ;;  %v3298_v19 = vmul.f32 %v6945_v61, %v6434_v45  ;;  %v3754_v61 = vmul.f32 %v7033_v49, %v6538_v43  ;;  %v4210_v49 = vmul.f32 %v7121_v40, %v6477_v62 }
0x2fba   :  { %v4435_v57 = vmul.f32 %v4433_v23, %v6434_v45  ;;  %v3299_v23 = vmul.f32 %v6948_v63, %v6425_v37  ;;  %v3755_v63 = vmul.f32 %v7036_v53, %v6529_v34  ;;  %v4211_v53 = vmul.f32 %v7124_v2, %v6486_v9 }
0x2fbb   :  { %v7163_v20 = vadd.f32 %v4434_v48, %v7121_v40 }
0x2fbc   :  { %v7166_v1 = vadd.f32 %v4435_v57, %v7124_v2 }
0x2fbd   :  { %4451 = vrot.lane.b32.xlu1 %v7163_v20, %s6087_s4 }
0x2fbe   :  { %4526 = vrot.lane.b32.xlu0 %v7166_v1, %s6087_s4 }
0x302f   :  { %v4452_v33 = vpop.permute.xlu1 %4451 }
0x3030   :  { %v4527_v58 = vpop.permute.xlu0 %4526  ;;  %5539 = vmatmul.mubr.msk.f32.vlgmr.msra.gmra.mrb[46].mxu0 %vm450_vm5, %v4452_v33 }
0x3031   :  { %5550 = vmatmul.mubr.msk.f32.vlgmr.msra.gmra.mrb[46].mxu1 %vm450_vm5, %v4527_v58 }
0x3103   :  { %v4521_v13 = vpop.f32.mrb[46].mxu0 }
0x3104   :  { %v4614_v27 = vadd.f32 %v4521_v13, %v6881_v24  ;;  %v4596_v4 = vpop.f32.mrb[46].mxu1  ;;  %v5540_v10 = vpop.f32.mrb[47].mxu0  ;;  %v4600_v8 = vadd.f32 %v4521_v13, %v6878_v59 }
0x3105   :  { %v4615_v51 = vadd.f32 %v4596_v4, %v6884_v54  ;;  %v5551_v55 = vpop.f32.mrb[47].mxu1  ;;  %v4601_v12 = vadd.f32 %v4596_v4, %v6860_v15 }
0x3106   :  { %4618 = vrot.lane.b32.xlu1 %v4614_v27, %s6087_s4  ;;  %v4858_v44 = vmul.f32 -1.442695, %v4600_v8 }
0x3107   :  { %4620 = vrot.lane.b32.xlu0 %v4615_v51, %s6087_s4  ;;  %v4859_v52 = vmul.f32 -1.442695, %v4601_v12 }
0x3108   :  { %5995 = vpow2.f32 %v4858_v44 }
0x3109   :  { %5997 = vpow2.f32 %v4859_v52 }
0x3112   :  { %v5996_v3 = vpop.eup %5995 }
0x3113   :  { %v5998_v25 = vpop.eup %5997  ;;  %v4608_v24 = vadd.f32 1.0, %v5996_v3 }
0x3114   :  { %v4609_v14 = vadd.f32 1.0, %v5998_v25 }
0x3115   :  { %5999 = vrcp.f32 %v4608_v24 }
0x3116   :  { %6001 = vrcp.f32 %v4609_v14 }
0x311f   :  { %v6000_v54 = vpop.eup %5999 }
0x3120   :  { %v6002_v28 = vpop.eup %6001 }
0x3178   :  { %v4619_v30 = vpop.permute.xlu1 %4618 }
0x3179   :  { %v4624_v6 = vmul.f32 %v6000_v54, %v4619_v30  ;;  %v4621_v22 = vpop.permute.xlu0 %4620 }
0x317a   :  { %v4625_v7 = vmul.f32 %v6002_v28, %v4621_v22 }
0x317b   :  { %4628 = vrot.lane.b32.xlu1 %v4624_v6, %s6087_s4 }
0x317c   :  { %4630 = vrot.lane.b32.xlu0 %v4625_v7, %s6087_s4 }
0x31ed   :  { %v4629_v39 = vpop.permute.xlu1 %4628 }
0x31ee   :  { %v4634_v42 = vadd.f32 %v4629_v39, %v6878_v59  ;;  %v4631_v46 = vpop.permute.xlu0 %4630  ;;  %v3070_v59 = vmul.f32 %v6904_v0, %v6376_v26  ;;  %v3527_v0 = vmul.f32 %v6992_v35, %v6477_v62  ;;  %v3983_v35 = vmul.f32 %v7080_v36, %v6538_v43 }
0x31ef   :  { %v4635_v56 = vadd.f32 %v4631_v46, %v6860_v15  ;;  %v3069_v15 = vmul.f32 %v6901_v32, %v6383_v31  ;;  %v3526_v32 = vmul.f32 %v6989_v21, %v6486_v9  ;;  %v3982_v21 = vmul.f32 %v7077_v38, %v6529_v34 }
0x31f0   :  { %6003 = vtanh.f32 %v4634_v42  ;;  %v4438_v34 = vmul.f32 %v7163_v20, %v6425_v37  ;;  %v4439_v43 = vmul.f32 %v7166_v1, %v6434_v45 }
0x31f1   :  { %6005 = vtanh.f32 %v4635_v56 }
0x31fa   :  { %v6004_v47 = vpop.eup %6003 }
0x31fb   :  { %v6006_v50 = vpop.eup %6005  ;;  %v4638_v17 = vsub.f32 %v7163_v20, %v6004_v47 }
0x31fc   :  { %v4639_v18 = vsub.f32 %v7166_v1, %v6006_v50 }
0x31fd   :  { %4642 = vrot.lane.b32.xlu1 %v4638_v17, %s6089_s12 }
0x31fe   :  { %4644 = vrot.lane.b32.xlu0 %v4639_v18, %s6089_s12 }
0x326f   :  { %v4643_v5 = vpop.permute.xlu1 %4642 }
0x3270   :  { %v4648_v41 = vmul.f32 %v6000_v54, %v4643_v5  ;;  %v4645_v16 = vpop.permute.xlu0 %4644 }
0x3271   :  { %v4649_v11 = vmul.f32 %v6002_v28, %v4645_v16 }
0x3272   :  { %4652 = vrot.lane.b32.xlu1 %v4648_v41, %s6090_s1 }
0x3273   :  { %4654 = vrot.lane.b32.xlu0 %v4649_v11, %s6090_s1 }
0x3276   :  { %3072 = vrot.lane.b32.xlu1 %v3069_v15, %s6087_s4 }
0x3277   :  { %3077 = vrot.lane.b32.xlu0 %v3070_v59, %s6087_s4 }
0x327a   :  { %3301 = vrot.lane.b32.xlu1 %v3298_v19, %s6087_s4 }
0x327b   :  { %3306 = vrot.lane.b32.xlu0 %v3299_v23, %s6087_s4 }
0x327e   :  { %3529 = vrot.lane.b32.xlu1 %v3526_v32, %s6087_s4 }
0x327f   :  { %3534 = vrot.lane.b32.xlu0 %v3527_v0, %s6087_s4 }
0x3282   :  { %3757 = vrot.lane.b32.xlu1 %v3754_v61, %s6087_s4 }
0x3283   :  { %3762 = vrot.lane.b32.xlu0 %v3755_v63, %s6087_s4 }
0x3286   :  { %3985 = vrot.lane.b32.xlu1 %v3982_v21, %s6087_s4 }
0x3287   :  { %3990 = vrot.lane.b32.xlu0 %v3983_v35, %s6087_s4 }
0x328a   :  { %4213 = vrot.lane.b32.xlu1 %v4210_v49, %s6087_s4 }
0x328b   :  { %4218 = vrot.lane.b32.xlu0 %v4211_v53, %s6087_s4 }
0x328e   :  { %4441 = vrot.lane.b32.xlu1 %v4438_v34, %s6087_s4 }
0x328f   :  { %4446 = vrot.lane.b32.xlu0 %v4439_v43, %s6087_s4 }
0x32e4   :  { %v4653_v38 = vpop.permute.xlu1 %4652 }
0x32e5   :  { %v4658_v36 = vadd.f32 %v6004_v47, %v4653_v38  ;;  %v4655_v62 = vpop.permute.xlu0 %4654 }
0x32e6   :  { %v4659_v40 = vadd.f32 %v6006_v50, %v4655_v62 }
0x32e7   :  { %v4660_v9 = vsub.f32 %v4658_v36, %v7163_v20 }
0x32e8   :  { %v4661_v2 = vsub.f32 %v4659_v40, %v7166_v1  ;;  %v3073_v48 = vpop.permute.xlu1 %3072 }
0x32e9   :  { %v4662_v57 = vmul.f32 %v4660_v9, %v6376_v26  ;;  %3075 = vst.msk [vmem:[#allocation3] sm:$0xff] %vm450_vm5, %v3073_v48  ;;  %v3078_v37 = vpop.permute.xlu0 %3077 }
0x32ea   :  { %v4663_v45 = vmul.f32 %v4661_v2, %v6383_v31  ;;  %3081 = vst.msk [vmem:[#allocation3 + $0x78] sm:$0xff] %vm450_vm5, %v3078_v37 }
0x32eb   :  { %v4664_v33 = vadd.f32 %v4662_v57, %v7163_v20 }
0x32ec   :  { %v4665_v58 = vadd.f32 %v4663_v45, %v7166_v1  ;;  %v3302_v13 = vpop.permute.xlu1 %3301 }
0x32ed   :  { %3304 = vst.msk [vmem:[#allocation3 + $0x8] sm:$0xff] %vm450_vm5, %v3302_v13  ;;  %v3307_v27 = vpop.permute.xlu0 %3306  ;;  %v4666_v4 = vmul.f32 %v4664_v33, %v6376_v26 }
0x32ee   :  { %3309 = vst.msk [vmem:[#allocation3 + $0x70] sm:$0xff] %vm450_vm5, %v3307_v27  ;;  %v4667_v10 = vmul.f32 %v4665_v58, %v6383_v31 }
0x32ef   :  { %4669 = vrot.lane.b32.xlu1 %v4666_v4, %s6087_s4 }
0x32f0   :  { %4674 = vrot.lane.b32.xlu0 %v4667_v10, %s6087_s4  ;;  %v3530_v51 = vpop.permute.xlu1 %3529  ;;  %v4690_v59 = vld [vmem:[#allocation3] sm:$0xff] }
0x32f1   :  { %3532 = vst.msk [vmem:[#allocation3 + $0x10] sm:$0xff] %vm450_vm5, %v3530_v51  ;;  %v3535_v20 = vpop.permute.xlu0 %3534  ;;  %v4705_v16 = vld [vmem:[#allocation3 + $0x78] sm:$0xff] }
0x32f2   :  { %3537 = vst.msk [vmem:[#allocation3 + $0x68] sm:$0xff] %vm450_vm5, %v3535_v20 }
0x32f3   :  { %2268 = vrot.lane.b32.xlu1 %v6735_v60, %s6087_s4 }
0x32f4   :  { %2273 = vrot.lane.b32.xlu0 %v6718_v29, %s6087_s4  ;;  %v3758_v26 = vpop.permute.xlu1 %3757  ;;  %v4691_v46 = vld [vmem:[#allocation3 + $0x8] sm:$0xff] }
0x32f5   :  { %3760 = vst.msk [vmem:[#allocation3 + $0x18] sm:$0xff] %vm450_vm5, %v3758_v26  ;;  %v3763_v31 = vpop.permute.xlu0 %3762  ;;  %v4704_v39 = vld [vmem:[#allocation3 + $0x70] sm:$0xff] }
0x32f6   :  { %3765 = vst.msk [vmem:[#allocation3 + $0x60] sm:$0xff] %vm450_vm5, %v3763_v31 }
0x32f7   :  { %4679 = vrot.lane.b32.xlu1 %v4664_v33, %s6087_s4 }
0x32f8   :  { %4685 = vrot.lane.b32.xlu0 %v4665_v58, %s6087_s4  ;;  %v3986_v1 = vpop.permute.xlu1 %3985  ;;  %v4692_v28 = vld [vmem:[#allocation3 + $0x10] sm:$0xff] }
0x32f9   :  { %3988 = vst.msk [vmem:[#allocation3 + $0x20] sm:$0xff] %vm450_vm5, %v3986_v1  ;;  %v3991_v55 = vpop.permute.xlu0 %3990  ;;  %v4703_v54 = vld [vmem:[#allocation3 + $0x68] sm:$0xff] }
0x32fa   :  { %3993 = vst.msk [vmem:[#allocation3 + $0x58] sm:$0xff] %vm450_vm5, %v3991_v55 }
0x32fc   :  { %v4214_v60 = vpop.permute.xlu1 %4213  ;;  %v4693_v52 = vld [vmem:[#allocation3 + $0x18] sm:$0xff] }
0x32fd   :  { %4216 = vst.msk [vmem:[#allocation3 + $0x28] sm:$0xff] %vm450_vm5, %v4214_v60  ;;  %v4219_v29 = vpop.permute.xlu0 %4218  ;;  %v4702_v8 = vld [vmem:[#allocation3 + $0x60] sm:$0xff] }
0x32fe   :  { %4221 = vst.msk [vmem:[#allocation3 + $0x50] sm:$0xff] %vm450_vm5, %v4219_v29 }
0x3300   :  { %v4694_v12 = vld [vmem:[#allocation3 + $0x20] sm:$0xff]  ;;  %v4442_v44 = vpop.permute.xlu1 %4441 }
0x3301   :  { %v4710_v3 = vadd.f32 %v4702_v8, %v4694_v12  ;;  %v4701_v25 = vld [vmem:[#allocation3 + $0x58] sm:$0xff]  ;;  %4444 = vst.msk [vmem:[#allocation3 + $0x30] sm:$0xff] %vm450_vm5, %v4442_v44  ;;  %v4447_v24 = vpop.permute.xlu0 %4446 }
0x3302   :  { %v4709_v14 = vadd.f32 %v4701_v25, %v4693_v52  ;;  %4449 = vst.msk [vmem:[#allocation3 + $0x48] sm:$0xff] %vm450_vm5, %v4447_v24 }
0x3303   :  { %4718 = vst.msk [vmem:[%s7325_s10 + $0x20] sm:$0xff] %vm450_vm5, %v4710_v3 }
0x3304   :  { %4717 = vst.msk [vmem:[%s7325_s10 + $0x18] sm:$0xff] %vm450_vm5, %v4709_v14  ;;  %v4695_v30 = vld [vmem:[#allocation3 + $0x28] sm:$0xff] }
0x3305   :  { %v4711_v6 = vadd.f32 %v4703_v54, %v4695_v30  ;;  %v4700_v22 = vld [vmem:[#allocation3 + $0x50] sm:$0xff] }
0x3306   :  { %v4708_v7 = vadd.f32 %v4700_v22, %v4692_v28 }
0x3307   :  { %4719 = vst.msk [vmem:[%s7325_s10 + $0x28] sm:$0xff] %vm450_vm5, %v4711_v6 }
0x3308   :  { %4716 = vst.msk [vmem:[%s7325_s10 + $0x10] sm:$0xff] %vm450_vm5, %v4708_v7  ;;  %v4696_v42 = vld [vmem:[#allocation3 + $0x30] sm:$0xff] }
0x3309   :  { %v4712_v56 = vadd.f32 %v4704_v39, %v4696_v42  ;;  %v4699_v47 = vld [vmem:[#allocation3 + $0x48] sm:$0xff] }
0x330a   :  { %v4707_v50 = vadd.f32 %v4699_v47, %v4691_v46 }
0x330b   :  { %4720 = vst.msk [vmem:[%s7325_s10 + $0x30] sm:$0xff] %vm450_vm5, %v4712_v56 }
0x330c   :  { %4715 = vst.msk [vmem:[%s7325_s10 + $0x8] sm:$0xff] %vm450_vm5, %v4707_v50 }
0x3361   :  { %v4670_v17 = vpop.permute.xlu1 %4669 }
0x3362   :  { %4672 = vst.msk [vmem:[#allocation3 + $0x38] sm:$0xff] %vm450_vm5, %v4670_v17  ;;  %v4675_v18 = vpop.permute.xlu0 %4674 }
0x3363   :  { %4677 = vst.msk [vmem:[#allocation3 + $0x40] sm:$0xff] %vm450_vm5, %v4675_v18 }
0x3365   :  { %v2269_v5 = vpop.permute.xlu1 %2268 }
0x3366   :  { %2271 = vst.msk [vmem:[#allocation9] sm:$0xff] %vm450_vm5, %v2269_v5  ;;  %v2274_v41 = vpop.permute.xlu0 %2273 }
0x3367   :  { %2277 = vst.msk [vmem:[#allocation9 + $0x8] sm:$0xff] %vm450_vm5, %v2274_v41 }
0x3369   :  { %v4697_v11 = vld [vmem:[#allocation3 + $0x38] sm:$0xff]  ;;  %v4680_v15 = vpop.permute.xlu1 %4679 }
0x336a   :  { %v4713_v19 = vadd.f32 %v4705_v16, %v4697_v11  ;;  %v4698_v23 = vld [vmem:[#allocation3 + $0x40] sm:$0xff]  ;;  %4683 = vst.msk [vmem:[#allocation9 + $0x10] sm:$0xff] %vm450_vm5, %v4680_v15  ;;  %v4686_v32 = vpop.permute.xlu0 %4685 }
0x336b   :  { %v4706_v0 = vadd.f32 %v4698_v23, %v4690_v59  ;;  %4689 = vst.msk [vmem:[#allocation9 + $0x18] sm:$0xff] %vm450_vm5, %v4686_v32 }
0x336c   :  { %4721 = vst.msk [vmem:[%s7325_s10 + $0x38] sm:$0xff] %vm450_vm5, %v4713_v19 }
0x336d   :  { %6062 = shalt.err (!%p6059_p6)
}
0x336e   :  { %s6063_s13 = scalar_lea.hbm %s7326_s11, 512 }
0x336f   :  { %p6064_p7 = scmp.ne.s32.totalorder %s7326_s11, %s6063_s13  ;;  %p6067_p8 = scmp.lt.u32.totalorder %s6063_s13, %s7326_s11 }
0x3371   :  { %p6069_p9 = pnand %p6067_p8, %p6064_p7 }
0x3373   :  { %6072 = shalt.err (!%p6069_p9)
}
0x3374   :  { %4735 = dma.vmem_to_hbm [thread:$0]  %s4730_s30, 512, %s7326_s11, [#allocation6], %s6080_s27, %s6080_s27, %s6081_s28  }
0x3375   :  { %4714 = vst.msk [vmem:[%s7325_s10] sm:$0xff] %vm450_vm5, %v4706_v0 }
0x3376   :  { %6077 = dma.done.wait [#allocation6], 512  }
0x3377   :  { %6078 = vsyncadd [#allocation6], 4294966784 }
0x3378   :  { %4741 = vsyncpa [#allocation5], 1 }
0x3379   :  { %4742 = vsyncpa [#allocation8], 1 }
0x337a   :  { %4743 = vsyncpa [#allocation6], 1 }

</bundles_post_ra>
